<compile_context>
chip_gen: v6e
topology: v6e:2x2x1
jax: 0.10.0
libtpu: 0.0.40
codegen_flags: <defaults>
</compile_context>

<pallas_src>
import functools

import jax
import jax.numpy as jnp
from jax import lax
from jax.experimental import pallas as pl
from jax.experimental.pallas import tpu as pltpu


def _round_up(x, m):
    return ((x + m - 1) // m) * m


def attack_head_kernel(side_ref, ns_ref, nt_ref, b1_ref, w2_ref, b2_ref, out_ref,
                       *, max_army_send):
    A = max_army_send

    # ---- packed per-edge side info: [src_armies, tgt_armies, self_mask, src_idx, tgt_idx] ----
    side = side_ref[...]                                               # (TE, 8) f32
    src_a = side[:, 0:1]                                               # (TE, 1)
    tgt_a = side[:, 1:2]
    selfm = side[:, 2:3]
    src_idx = side[:, 3:4].astype(jnp.int32)                           # (TE, 1) node ids
    tgt_idx = side[:, 4:5].astype(jnp.int32)

    TE = side.shape[0]
    N_pad = ns_ref.shape[0]

    # ---- in-kernel gather via one-hot x MXU against the pre-folded node*W1 tables ----
    node_lane = lax.broadcasted_iota(jnp.int32, (TE, N_pad), 1)
    oh_src = (node_lane == src_idx).astype(jnp.bfloat16)               # (TE, N_pad)
    oh_tgt = (node_lane == tgt_idx).astype(jnp.bfloat16)

    # fused first layer: [edge_scorer.0 | army_scorer.0] -> (TE, Hm), f32 accumulation
    h = jnp.dot(oh_src, ns_ref[...], preferred_element_type=jnp.float32)
    h = h + jnp.dot(oh_tgt, nt_ref[...], preferred_element_type=jnp.float32)
    h = jnp.maximum(h + b1_ref[...], 0.0)                              # (TE, Hm) f32

    # fused second layer (block-diagonal): lanes 0..A-1 = army logits, lane A = edge logit
    y = jnp.dot(h.astype(jnp.bfloat16), w2_ref[...],
                preferred_element_type=jnp.float32) + b2_ref[...]      # (TE, OUT_W) f32

    # ---- validity masking (f32 VPU; v5e-safe) ----
    bad = jnp.logical_or(src_a <= 2.0, tgt_a >= 3.0 * src_a).astype(jnp.float32)
    penalty = bad * 1.0 + selfm * 100.0                                # (TE, 1)

    col = lax.broadcasted_iota(jnp.int32, y.shape, 1)                  # lane index
    is_army = col < A
    is_edge = col == A
    invalid_army = jnp.logical_and(is_army,
                                   col.astype(jnp.float32) > (src_a - 1.0))
    out = jnp.where(invalid_army, jnp.float32(-1e9), y)
    out = jnp.where(is_edge, y - penalty, out)
    out_ref[...] = out.astype(out_ref.dtype)                           # lane-dense bf16 store


def pack_attack_head_params(params, max_army_send):
    """One-time weight packing (hoist out of the per-step forward path)."""
    w1e, b1e, w2e, b2e, w1a, b1a, w2a, b2a = params
    twoD = w1e.shape[0]
    # Both scorers consume the same concatenated (2*D) embedding, so the module is only
    # consistent when embed_dim == hidden_dim.  Keep this assert: the fused packing relies on it.
    assert w1a.shape[0] == twoD, "AttackHead requires embed_dim == hidden_dim"
    D = twoD // 2
    H = w1e.shape[1]
    A = max_army_send

    Hm_raw = H + w1a.shape[1]                    # H + 128
    Hm = _round_up(Hm_raw, 256)                  # full vreg tiles / 256-wide MXU granule
    OUT_W = _round_up(A + 1, 128)                # army logits lanes 0..A-1, edge logit lane A

    # fused first layer weight, split per gathered node (src / tgt halves of the 2D concat)
    w1p = jnp.concatenate([w1e, w1a], axis=1)                          # (2D, Hm_raw) f32
    w1p = jnp.pad(w1p, ((0, 0), (0, Hm - Hm_raw)))                     # (2D, Hm)
    b1p = jnp.pad(jnp.concatenate([b1e, b1a], axis=1),
                  ((0, 0), (0, Hm - Hm_raw))).astype(jnp.float32)      # (1, Hm)

    # block-diagonal second layer
    w2p = jnp.zeros((Hm, OUT_W), jnp.float32)
    w2p = w2p.at[:H, A].set(w2e[:, 0])                                 # edge column
    w2p = w2p.at[H:Hm_raw, :A].set(w2a)                                # army columns
    w2p = w2p.astype(jnp.bfloat16)
    b2p = jnp.zeros((1, OUT_W), jnp.float32)
    b2p = b2p.at[0, :A].set(b2a[0]).at[0, A].set(b2e[0, 0])

    return {
        "w1_src": w1p[:D],          # (D, Hm) f32 — folded into node table per call
        "w1_tgt": w1p[D:],          # (D, Hm) f32
        "b1p": b1p, "w2p": w2p, "b2p": b2p,
        "D": D, "Hm": Hm, "OUT_W": OUT_W, "A": A,
    }


def attack_head_forward(node_embeddings, action_edges, army_counts, packed,
                        max_army_send, *, edge_tile=512):
    """JAX wrapper: fold W1 into the node table, pack side info, run the fused kernel."""
    A = max_army_send
    assert A == packed["A"]
    D = node_embeddings.shape[-1]
    assert D == packed["D"], "node embedding dim must match packed params"
    assert edge_tile % 128 == 0
    Hm, OUT_W = packed["Hm"], packed["OUT_W"]

    N = node_embeddings.shape[0]
    N_pad = _round_up(N, 128)

    # Fold first-layer weights into the node table (gather commutes with the matmul).
    # Small (N x 2D x Hm) XLA matmul per call; streamed to the kernel as resident bf16 tables.
    ns = (node_embeddings @ packed["w1_src"]).astype(jnp.bfloat16)     # (N, Hm)
    nt = (node_embeddings @ packed["w1_tgt"]).astype(jnp.bfloat16)
    ns = jnp.pad(ns, ((0, N_pad - N), (0, 0)))
    nt = jnp.pad(nt, ((0, N_pad - N), (0, 0)))
    # NOTE: for very large node tables, replace the in-kernel one-hot gather with a manual
    # DMA gather (memory_space=pl.ANY + scalar-prefetched indices); one-hot flops scale with N.

    src = action_edges[:, 0]
    tgt = action_edges[:, 1]
    E = action_edges.shape[0]
    # Big tiles for large E (HBM/overhead bound); clamp down for small E so the grid stays tight.
    TE = min(edge_tile, _round_up(max(E, 1), 256))
    E_pad = _round_up(max(E, 1), TE)

    src_a = army_counts[src].astype(jnp.float32)
    tgt_a = army_counts[tgt].astype(jnp.float32)
    self_m = (src == tgt).astype(jnp.float32)
    side = jnp.stack([src_a, tgt_a, self_m,
                      src.astype(jnp.float32), tgt.astype(jnp.float32)], axis=1)  # (E, 5)
    side = jnp.pad(side, ((0, E_pad - E), (0, 8 - side.shape[1])))                # (E_pad, 8)

    tiled = lambda i: (i, 0)
    full = lambda i: (0, 0)

    flops = E_pad * (2 * 2 * N_pad * Hm + 2 * Hm * OUT_W)
    bytes_accessed = (E_pad * 8 * 4                 # side info
                      + E_pad * OUT_W * 2           # bf16 output
                      + 2 * N_pad * Hm * 2          # ns / nt tables
                      + Hm * OUT_W * 2              # w2p
                      + (Hm + OUT_W) * 4)           # biases
    cost = pl.CostEstimate(flops=flops, transcendentals=0,
                           bytes_accessed=bytes_accessed)

    out = pl.pallas_call(
        functools.partial(attack_head_kernel, max_army_send=A),
        out_shape=jax.ShapeDtypeStruct((E_pad, OUT_W), jnp.bfloat16),
        grid_spec=pltpu.PrefetchScalarGridSpec(
            num_scalar_prefetch=0,
            grid=(E_pad // TE,),
            in_specs=[
                pl.BlockSpec((TE, 8), tiled),        # packed side info (+ node indices)
                pl.BlockSpec((N_pad, Hm), full),     # node @ W1_src_half (bf16, resident)
                pl.BlockSpec((N_pad, Hm), full),     # node @ W1_tgt_half (bf16, resident)
                pl.BlockSpec((1, Hm), full),
                pl.BlockSpec((Hm, OUT_W), full),     # block-diagonal second-layer weight
                pl.BlockSpec((1, OUT_W), full),
            ],
            out_specs=pl.BlockSpec((TE, OUT_W), tiled),
        ),
        compiler_params=pltpu.CompilerParams(
            dimension_semantics=("parallel",),       # shard edge tiles across TCs (v7x)
        ),
        cost_estimate=cost,
    )(side, ns, nt, packed["b1p"], packed["w2p"], packed["b2p"])

    out = out[:E].astype(jnp.float32)
    return out[:, A], out[:, :A]


def reference_forward(node_embeddings, action_edges, army_counts, params, max_army_send):
    """Pure-JAX f32 reference mirroring the PyTorch forward."""
    w1e, b1e, w2e, b2e, w1a, b1a, w2a, b2a = params
    src = action_edges[:, 0]
    tgt = action_edges[:, 1]
    edge_embed = jnp.concatenate([node_embeddings[src], node_embeddings[tgt]], axis=-1)

    h = jnp.maximum(edge_embed @ w1e + b1e, 0.0)
    edge_logits = (h @ w2e + b2e)[:, 0]

    h2 = jnp.maximum(edge_embed @ w1a + b1a, 0.0)
    army_logits = h2 @ w2a + b2a

    src_armies = army_counts[src]
    tgt_armies = army_counts[tgt]
    bad_edges = (src_armies <= 2.0) | (tgt_armies >= 3.0 * src_armies)
    edge_logits = edge_logits - bad_edges.astype(jnp.float32) * 1.0
    edge_logits = edge_logits - (src == tgt).astype(jnp.float32) * 100.0

    max_sendable = src_armies - 1.0
    army_mask = jnp.arange(max_army_send, dtype=jnp.float32)[None, :]
    valid = army_mask <= max_sendable[:, None]
    army_logits = jnp.where(valid, army_logits, -1e9)
    return edge_logits, army_logits


def init_params(key, embed_dim, hidden_dim, max_army_send):
    """Deterministic synthetic parameter init (weights stored (in, out))."""
    ks = jax.random.split(key, 8)
    s = 0.1
    w1e = jax.random.normal(ks[0], (2 * hidden_dim, hidden_dim), jnp.float32) * s
    b1e = jax.random.normal(ks[1], (1, hidden_dim), jnp.float32) * s
    w2e = jax.random.normal(ks[2], (hidden_dim, 1), jnp.float32) * s
    b2e = jax.random.normal(ks[3], (1, 1), jnp.float32) * s
    w1a = jax.random.normal(ks[4], (2 * embed_dim, 128), jnp.float32) * s
    b1a = jax.random.normal(ks[5], (1, 128), jnp.float32) * s
    w2a = jax.random.normal(ks[6], (128, max_army_send), jnp.float32) * s
    b2a = jax.random.normal(ks[7], (1, max_army_send), jnp.float32) * s
    return (w1e, b1e, w2e, b2e, w1a, b1a, w2a, b2a)


if __name__ == "__main__":
    # Small shapes. The PyTorch module applies both scorers to the same concatenated node
    # embeddings, so embed_dim == hidden_dim == D is implied.
    N_NODES = 8
    D = 32                  # embed_dim == hidden_dim
    E = 16                  # number of candidate attack edges (padded inside)
    MAX_ARMY_SEND = 8

    key = jax.random.PRNGKey(0)
    k_emb, k_edge, k_army, k_par = jax.random.split(key, 4)

    node_embeddings = jax.random.normal(k_emb, (N_NODES, D), jnp.float32)
    action_edges = jax.random.randint(k_edge, (E, 2), 0, N_NODES, jnp.int32)
    army_counts = jax.random.randint(k_army, (N_NODES,), 1, 10, jnp.int32).astype(jnp.float32)
    params = init_params(k_par, D, D, MAX_ARMY_SEND)

    packed = pack_attack_head_params(params, MAX_ARMY_SEND)   # once per parameter set

    edge_logits, army_logits = attack_head_forward(
        node_embeddings, action_edges, army_counts, packed, MAX_ARMY_SEND
    )
    jax.block_until_ready((edge_logits, army_logits))

    ref_edge, ref_army = reference_forward(
        node_embeddings, action_edges, army_counts, params, MAX_ARMY_SEND
    )

    assert edge_logits.shape == (E,)
    assert army_logits.shape == (E, MAX_ARMY_SEND)
    # Kernel uses bf16 MXU operands and a bf16 output store (f32 accumulation / masking) ->
    # compare to the f32 reference at bf16-appropriate tolerance.
    assert jnp.allclose(edge_logits, ref_edge, atol=1e-1, rtol=1e-1), "edge logits mismatch"
    assert jnp.allclose(army_logits, ref_army, atol=1e-1, rtol=1e-1), "army logits mismatch"

    print("KERNEL_OK")
</pallas_src>

<mosaic_0001>
module attributes {stable_mosaic.version = 11 : i64} {
  func.func @attack_head_kernel(%arg0: i32, %arg1: memref<256x8xf32, #tpu.memory_space<vmem>>, %arg2: memref<128x256xbf16, #tpu.memory_space<vmem>>, %arg3: memref<128x256xbf16, #tpu.memory_space<vmem>>, %arg4: memref<1x256xf32, #tpu.memory_space<vmem>>, %arg5: memref<256x128xbf16, #tpu.memory_space<vmem>>, %arg6: memref<1x128xf32, #tpu.memory_space<vmem>>, %arg7: memref<256x128xbf16, #tpu.memory_space<vmem>>) attributes {dimension_semantics = [#tpu.dimension_semantics<parallel>], iteration_bounds = array<i64: 1>, scalar_prefetch = 0 : i64, scratch_operands = 0 : i64, tpu.core_type = #tpu.core_type<tc>, window_params = [{transform_indices = @transform_0, window_bounds = array<i64: 256, 8>}, {pipeline_mode = #tpu.pipeline_mode<synchronous>, transform_indices = @transform_1, window_bounds = array<i64: 128, 256>}, {pipeline_mode = #tpu.pipeline_mode<synchronous>, transform_indices = @transform_2, window_bounds = array<i64: 128, 256>}, {pipeline_mode = #tpu.pipeline_mode<synchronous>, transform_indices = @transform_3, window_bounds = array<i64: 1, 256>}, {pipeline_mode = #tpu.pipeline_mode<synchronous>, transform_indices = @transform_4, window_bounds = array<i64: 256, 128>}, {pipeline_mode = #tpu.pipeline_mode<synchronous>, transform_indices = @transform_5, window_bounds = array<i64: 1, 128>}, {transform_indices = @transform_6, window_bounds = array<i64: 256, 128>}]} {
    %c0 = arith.constant 0 : index
    %c0_0 = arith.constant 0 : index
    %0 = vector.load %arg1[%c0, %c0_0] : memref<256x8xf32, #tpu.memory_space<vmem>>, vector<256x8xf32>
    %1 = vector.extract_strided_slice %0 {offsets = [0, 0], sizes = [256, 1], strides = [1, 1]} : vector<256x8xf32> to vector<256x1xf32>
    %2 = vector.extract_strided_slice %0 {offsets = [0, 1], sizes = [256, 1], strides = [1, 1]} : vector<256x8xf32> to vector<256x1xf32>
    %3 = vector.extract_strided_slice %0 {offsets = [0, 2], sizes = [256, 1], strides = [1, 1]} : vector<256x8xf32> to vector<256x1xf32>
    %4 = vector.extract_strided_slice %0 {offsets = [0, 3], sizes = [256, 1], strides = [1, 1]} : vector<256x8xf32> to vector<256x1xf32>
    %5 = arith.fptosi %4 : vector<256x1xf32> to vector<256x1xi32>
    %6 = vector.extract_strided_slice %0 {offsets = [0, 4], sizes = [256, 1], strides = [1, 1]} : vector<256x8xf32> to vector<256x1xf32>
    %7 = arith.fptosi %6 : vector<256x1xf32> to vector<256x1xi32>
    %8 = tpu.iota {dimensions = array<i32: 1>} : vector<256x128xi32>
    %9 = vector.broadcast %5 : vector<256x1xi32> to vector<256x128xi32>
    %10 = arith.cmpi eq, %8, %9 : vector<256x128xi32>
    %11 = arith.extui %10 : vector<256x128xi1> to vector<256x128xi32>
    %12 = arith.sitofp %11 : vector<256x128xi32> to vector<256x128xf32>
    %13 = arith.truncf %12 : vector<256x128xf32> to vector<256x128xbf16>
    %14 = vector.broadcast %7 : vector<256x1xi32> to vector<256x128xi32>
    %15 = arith.cmpi eq, %8, %14 : vector<256x128xi32>
    %16 = arith.extui %15 : vector<256x128xi1> to vector<256x128xi32>
    %17 = arith.sitofp %16 : vector<256x128xi32> to vector<256x128xf32>
    %18 = arith.truncf %17 : vector<256x128xf32> to vector<256x128xbf16>
    %c0_1 = arith.constant 0 : index
    %c0_2 = arith.constant 0 : index
    %19 = vector.load %arg2[%c0_1, %c0_2] : memref<128x256xbf16, #tpu.memory_space<vmem>>, vector<128x256xbf16>
    %cst = arith.constant dense<0.000000e+00> : vector<256x256xf32>
    %20 = tpu.matmul %13, %19, %cst {dimension_numbers = #tpu.dot_dimension_numbers<[1], [0], [0], [1], [0, 0, 1, 1], [], []>} : vector<256x128xbf16>, vector<128x256xbf16>, vector<256x256xf32> -> vector<256x256xf32>
    %c0_3 = arith.constant 0 : index
    %c0_4 = arith.constant 0 : index
    %21 = vector.load %arg3[%c0_3, %c0_4] : memref<128x256xbf16, #tpu.memory_space<vmem>>, vector<128x256xbf16>
    %cst_5 = arith.constant dense<0.000000e+00> : vector<256x256xf32>
    %22 = tpu.matmul %18, %21, %cst_5 {dimension_numbers = #tpu.dot_dimension_numbers<[1], [0], [0], [1], [0, 0, 1, 1], [], []>} : vector<256x128xbf16>, vector<128x256xbf16>, vector<256x256xf32> -> vector<256x256xf32>
    %23 = arith.addf %20, %22 : vector<256x256xf32>
    %c0_6 = arith.constant 0 : index
    %c0_7 = arith.constant 0 : index
    %24 = vector.load %arg4[%c0_6, %c0_7] : memref<1x256xf32, #tpu.memory_space<vmem>>, vector<1x256xf32>
    %25 = vector.broadcast %24 : vector<1x256xf32> to vector<256x256xf32>
    %26 = arith.addf %23, %25 : vector<256x256xf32>
    %cst_8 = arith.constant 0.000000e+00 : f32
    %27 = vector.broadcast %cst_8 : f32 to vector<256x256xf32>
    %28 = arith.maximumf %26, %27 : vector<256x256xf32>
    %29 = arith.truncf %28 : vector<256x256xf32> to vector<256x256xbf16>
    %c0_9 = arith.constant 0 : index
    %c0_10 = arith.constant 0 : index
    %30 = vector.load %arg5[%c0_9, %c0_10] : memref<256x128xbf16, #tpu.memory_space<vmem>>, vector<256x128xbf16>
    %cst_11 = arith.constant dense<0.000000e+00> : vector<256x128xf32>
    %31 = tpu.matmul %29, %30, %cst_11 {dimension_numbers = #tpu.dot_dimension_numbers<[1], [0], [0], [1], [0, 0, 1, 1], [], []>} : vector<256x256xbf16>, vector<256x128xbf16>, vector<256x128xf32> -> vector<256x128xf32>
    %c0_12 = arith.constant 0 : index
    %c0_13 = arith.constant 0 : index
    %32 = vector.load %arg6[%c0_12, %c0_13] : memref<1x128xf32, #tpu.memory_space<vmem>>, vector<1x128xf32>
    %33 = vector.broadcast %32 : vector<1x128xf32> to vector<256x128xf32>
    %34 = arith.addf %31, %33 : vector<256x128xf32>
    %cst_14 = arith.constant 2.000000e+00 : f32
    %35 = vector.broadcast %cst_14 : f32 to vector<256x1xf32>
    %36 = arith.cmpf ole, %1, %35 : vector<256x1xf32>
    %cst_15 = arith.constant 3.000000e+00 : f32
    %37 = vector.broadcast %cst_15 : f32 to vector<256x1xf32>
    %38 = arith.mulf %37, %1 : vector<256x1xf32>
    %39 = arith.cmpf oge, %2, %38 : vector<256x1xf32>
    %40 = arith.ori %36, %39 : vector<256x1xi1>
    %41 = arith.extui %40 : vector<256x1xi1> to vector<256x1xi32>
    %42 = arith.sitofp %41 : vector<256x1xi32> to vector<256x1xf32>
    %cst_16 = arith.constant 1.000000e+00 : f32
    %43 = vector.broadcast %cst_16 : f32 to vector<256x1xf32>
    %44 = arith.mulf %42, %43 : vector<256x1xf32>
    %cst_17 = arith.constant 1.000000e+02 : f32
    %45 = vector.broadcast %cst_17 : f32 to vector<256x1xf32>
    %46 = arith.mulf %3, %45 : vector<256x1xf32>
    %47 = arith.addf %44, %46 : vector<256x1xf32>
    %48 = tpu.iota {dimensions = array<i32: 1>} : vector<256x128xi32>
    %c8_i32 = arith.constant 8 : i32
    %49 = vector.broadcast %c8_i32 : i32 to vector<256x128xi32>
    %50 = arith.cmpi slt, %48, %49 : vector<256x128xi32>
    %c8_i32_18 = arith.constant 8 : i32
    %51 = vector.broadcast %c8_i32_18 : i32 to vector<256x128xi32>
    %52 = arith.cmpi eq, %48, %51 : vector<256x128xi32>
    %53 = arith.sitofp %48 : vector<256x128xi32> to vector<256x128xf32>
    %cst_19 = arith.constant 1.000000e+00 : f32
    %54 = vector.broadcast %cst_19 : f32 to vector<256x1xf32>
    %55 = arith.subf %1, %54 : vector<256x1xf32>
    %56 = vector.broadcast %55 : vector<256x1xf32> to vector<256x128xf32>
    %57 = arith.cmpf ogt, %53, %56 : vector<256x128xf32>
    %58 = arith.andi %50, %57 : vector<256x128xi1>
    %cst_20 = arith.constant -1.000000e+09 : f32
    %59 = vector.broadcast %cst_20 : f32 to vector<256x128xf32>
    %60 = arith.select %58, %59, %34 : vector<256x128xi1>, vector<256x128xf32>
    %61 = vector.broadcast %47 : vector<256x1xf32> to vector<256x128xf32>
    %62 = arith.subf %34, %61 : vector<256x128xf32>
    %63 = arith.select %52, %62, %60 : vector<256x128xi1>, vector<256x128xf32>
    %64 = arith.truncf %63 : vector<256x128xf32> to vector<256x128xbf16>
    %c0_21 = arith.constant 0 : index
    %c0_22 = arith.constant 0 : index
    %65 = vector.load %arg7[%c0_21, %c0_22] : memref<256x128xbf16, #tpu.memory_space<vmem>>, vector<256x128xbf16>
    tpu.vector_store %arg7[%c0_21, %c0_22], %64 {strides = array<i32>} : memref<256x128xbf16, #tpu.memory_space<vmem>>, vector<256x128xbf16>,
    return
  }
  func.func @transform_0(%arg0: i32) -> (i32, i32) {
    %c0_i32 = arith.constant 0 : i32
    %c0_i32_0 = arith.constant 0 : i32
    return %arg0, %c0_i32 : i32, i32
  }
  func.func @transform_1(%arg0: i32) -> (i32, i32) {
    %c0_i32 = arith.constant 0 : i32
    %c0_i32_0 = arith.constant 0 : i32
    %c0_i32_1 = arith.constant 0 : i32
    return %c0_i32, %c0_i32_0 : i32, i32
  }
  func.func @transform_2(%arg0: i32) -> (i32, i32) {
    %c0_i32 = arith.constant 0 : i32
    %c0_i32_0 = arith.constant 0 : i32
    %c0_i32_1 = arith.constant 0 : i32
    return %c0_i32, %c0_i32_0 : i32, i32
  }
  func.func @transform_3(%arg0: i32) -> (i32, i32) {
    %c0_i32 = arith.constant 0 : i32
    %c0_i32_0 = arith.constant 0 : i32
    %c0_i32_1 = arith.constant 0 : i32
    return %c0_i32, %c0_i32_0 : i32, i32
  }
  func.func @transform_4(%arg0: i32) -> (i32, i32) {
    %c0_i32 = arith.constant 0 : i32
    %c0_i32_0 = arith.constant 0 : i32
    %c0_i32_1 = arith.constant 0 : i32
    return %c0_i32, %c0_i32_0 : i32, i32
  }
  func.func @transform_5(%arg0: i32) -> (i32, i32) {
    %c0_i32 = arith.constant 0 : i32
    %c0_i32_0 = arith.constant 0 : i32
    %c0_i32_1 = arith.constant 0 : i32
    return %c0_i32, %c0_i32_0 : i32, i32
  }
  func.func @transform_6(%arg0: i32) -> (i32, i32) {
    %c0_i32 = arith.constant 0 : i32
    %c0_i32_0 = arith.constant 0 : i32
    return %arg0, %c0_i32 : i32, i32
  }
}

</mosaic_0001>

<bundles_post_ra>
// kernel: tpu_custom_call.1
= control target key start
LH: loop header
LB: loop body
LE: loop exit
PB: predicated region body
PF: predicated region fallthrough
CT: control target
= control target key end

     0   :  { %11 = vsyncpa [#allocation3], 0  ;;  %s5880_s0 = inlined_call_operand.vmem [shape: f32[256,8], index: 0, kind: input, shape index: {}]   ;;  %s5881_s1 = inlined_call_operand.vmem [shape: bf16[128,256], index: 1, kind: input, shape index: {}]   ;;  %s5882_s2 = inlined_call_operand.vmem [shape: bf16[128,256], index: 2, kind: input, shape index: {}]   ;;  %s5883_s3 = inlined_call_operand.vmem [shape: f32[1,256], index: 3, kind: input, shape index: {}]   ;;  %s5884_s4 = inlined_call_operand.hbm [shape: bf16[256,128], index: 4, kind: input, shape index: {}]   ;;  %s5885_s5 = inlined_call_operand.vmem [shape: f32[1,128], index: 5, kind: input, shape index: {}]   ;;  %s5886_s6 = inlined_call_operand.hbm [shape: bf16[256,128], index: 6, kind: output, shape index: {}]  }
   0x1   :  { %12 = vsyncpa [#allocation4], 0  ;;  %s3679_s21 = smov [#allocation2]  }
   0x2   :  { %s26_s22 = sshll.u32 %s3679_s21, 4  ;;  %s27_s22 = int_to_ptr.vmem [resolvable:$true] %s26_s22 }
   0x3   :  { %s3643_s23 = scalar_lea.vmem %s27_s22, 2048  ;;  %p3648_p1 = scmp.lt.s32.totalorder %s27_s22, %s27_s22 }
   0x4   :  { %p3644_p0 = scmp.ne.s32.totalorder %s27_s22, %s3643_s23  ;;  %p3649_p2 = scmp.lt.s32.totalorder %s3643_s23, %s3643_s23 }
   0x6   :  { %p3650_p3 = por %p3649_p2, %p3648_p1 }
   0x8   :  { %p3651_p4 = pnand %p3650_p3, %p3644_p0 }
   0xa   :  { %3654 = shalt.err (!%p3651_p4)
}
   0xb   :  { %s3680_s24 = smov 64   ;;  %s3681_s25 = smov 4  }
   0xc   :  { %32 = dma.hbm_to_vmem [thread:$0]  %s5884_s4, 2048, %s27_s22, [#allocation3], %s3680_s24, %s3680_s24, %s3681_s25  }
   0xd   :  { %3675 = dma.done.wait [#allocation3], 2048  }
   0xe   :  { %3676 = vsyncadd [#allocation3], 4294965248  ;;  %v3682_v0 = vmov 3   ;;  %v3737_v1 = vld [vmem:[%s5880_s0 + $0x10] sm:$0xff]  ;;  %v3742_v2 = vld [vmem:[%s5880_s0] sm:$0xff]  ;;  %v3683_v44 = vmov 4  }
   0xf   :  { %3504 = vset.pattern.permute.xlu1 %v3682_v0  ;;  %3503 = vset.pattern.permute.xlu0 %v3682_v0  ;;  %v3747_v3 = vld [vmem:[%s5880_s0 + $0x18] sm:$0xff]  ;;  %v3431_v4 = vtrunc.f32 %v3737_v1  ;;  %v3427_v5 = vtrunc.f32 %v3742_v2  ;;  %v3755_v7 = vld [vmem:[%s5880_s0 + $0x8] sm:$0xff]  ;;  %v3766_v10 = vld [vmem:[%s5880_s0 + $0x20] sm:$0xff]  ;;  %v3684_v53 = vmov 0   ;;  %s3685_s9 = smov 1   ;;  %s3688_s10 = smov 126  }
  0x10   :  { %v3433_v6 = vtrunc.f32 %v3747_v3  ;;  %v3429_v8 = vtrunc.f32 %v3755_v7  ;;  %v3761_v9 = vld [vmem:[%s5880_s0 + $0x28] sm:$0xff]  ;;  %v3435_v16 = vtrunc.f32 %v3766_v10  ;;  %v3783_v17 = vld [vmem:[%s5880_s0 + $0x38] sm:$0xff]  ;;  %v3788_v18 = vld [vmem:[%s5880_s0 + $0x30] sm:$0xff]  ;;  %745 = vmatprep.mubr.bf16.mxu1 %v3684_v53  ;;  %665 = vmatprep.mubr.bf16.mxu0 %v3684_v53 }
  0x11   :  { %v3768_v11 = vcvt.f32.s32 %v3431_v4  ;;  %v3770_v12 = vcvt.f32.s32 %v3427_v5  ;;  %v3437_v15 = vtrunc.f32 %v3761_v9  ;;  %v3441_v21 = vtrunc.f32 %v3783_v17  ;;  %v3801_v23 = vld [vmem:[%s5880_s0 + $0x48] sm:$0xff]  ;;  %v3806_v24 = vld [vmem:[%s5880_s0 + $0x80] sm:$0xff]  ;;  %v3519_v25 = vld [vmem:[%s5882_s2 + $0x74] ss:$8 sps:$4 sm:$0xff]  }
  0x12   :  { %v3774_v13 = vcvt.f32.s32 %v3433_v6  ;;  %v3776_v14 = vcvt.f32.s32 %v3429_v8  ;;  %v3794_v20 = vcvt.f32.s32 %v3435_v16  ;;  %v3439_v22 = vtrunc.f32 %v3788_v18  ;;  %v3521_v26 = vld [vmem:[%s5882_s2 + $0x70] ss:$8 sps:$4 sm:$0xff]   ;;  %v3522_v27 = vld [vmem:[%s5882_s2 + $0x64] ss:$8 sps:$4 sm:$0xff]   ;;  %3411 = vmatprep.subr.bf16.mxu1 %v3519_v25  ;;  %633 = vmatprep.subr.bf16.mxu0 %v3519_v25  ;;  %v3524_v34 = vld [vmem:[%s5882_s2 + $0x60] ss:$8 sps:$4 sm:$0xff]  }
  0x13   :  { %112 = vperm.xlu1 %3504, %v3768_v11   ;;  %106 = vperm.xlu0 %3503, %v3770_v12   ;;  %v3792_v19 = vcvt.f32.s32 %v3437_v15  ;;  %v3819_v28 = vcvt.f32.s32 %v3441_v21  ;;  %v3445_v30 = vtrunc.f32 %v3801_v23  ;;  %v3459_v31 = vtrunc.f32 %v3806_v24  ;;  %v3828_v32 = vld [vmem:[%s5880_s0 + $0x88] sm:$0xff]  ;;  %v3833_v33 = vld [vmem:[%s5880_s0 + $0x98] sm:$0xff]  ;;  %v3852_v40 = vld [vmem:[%s5880_s0 + $0x90] sm:$0xff] }
  0x14   :  { %v3821_v29 = vcvt.f32.s32 %v3439_v22  ;;  %3419 = vmatpush1.bf16.msra.mxu1 %v3521_v26  ;;  %634 = vmatpush1.bf16.msra.mxu0 %v3521_v26  ;;  %v3525_v35 = vld [vmem:[%s5882_s2 + $0x54] ss:$8 sps:$4 sm:$0xff]   ;;  %v3461_v38 = vtrunc.f32 %v3828_v32  ;;  %v3465_v39 = vtrunc.f32 %v3833_v33  ;;  %v3857_v41 = vld [vmem:[%s5880_s0 + $0xa8] sm:$0xff]  ;;  %v3527_v42 = vld [vmem:[%s5882_s2 + $0x50] ss:$8 sps:$4 sm:$0xff]   ;;  %v3463_v49 = vtrunc.f32 %v3852_v40 }
  0x15   :  { %3412 = vmatprep.subr.bf16.mxu1 %v3522_v27  ;;  %635 = vmatprep.subr.bf16.mxu0 %v3522_v27  ;;  %v3843_v36 = vcvt.f32.s32 %v3445_v30  ;;  %v3845_v37 = vcvt.f32.s32 %v3459_v31  ;;  %v3528_v43 = vld [vmem:[%s5882_s2 + $0x44] ss:$8 sps:$4 sm:$0xff]   ;;  %v3875_v46 = vld [vmem:[%s5880_s0 + $0xb8] sm:$0xff]  ;;  %v3469_v50 = vtrunc.f32 %v3857_v41  ;;  %v3530_v51 = vld [vmem:[%s5882_s2 + $0x40] ss:$8 sps:$4 sm:$0xff]  }
  0x16   :  { %v3870_v45 = vld [vmem:[%s5880_s0 + $0xa0] sm:$0xff]  ;;  %v3878_v47 = vcvt.f32.s32 %v3461_v38  ;;  %v3880_v48 = vcvt.f32.s32 %v3465_v39  ;;  %v3531_v52 = vld [vmem:[%s5882_s2 + $0x34] ss:$8 sps:$4 sm:$0xff]   ;;  %v3900_v55 = vld [vmem:[%s5880_s0 + $0xc8] sm:$0xff]  ;;  %v3907_v57 = vcvt.f32.s32 %v3463_v49  ;;  %v3473_v60 = vtrunc.f32 %v3875_v46 }
  0x17   :  { %115 = vperm.xlu1 %3504, %v3774_v13   ;;  %109 = vperm.xlu0 %3503, %v3776_v14   ;;  %v3895_v54 = vld [vmem:[%s5880_s0 + $0xb0] sm:$0xff]  ;;  %v3909_v58 = vcvt.f32.s32 %v3469_v50  ;;  %v3467_v59 = vtrunc.f32 %v3870_v45  ;;  %v3534_v61 = vld [vmem:[%s5882_s2 + $0x24] ss:$8 sps:$4 sm:$0xff]   ;;  %v3477_v6 = vtrunc.f32 %v3900_v55  ;;  %v3933_v8 = vld [vmem:[%s5880_s0 + $0xd8] sm:$0xff] }
  0x18   :  { %3420 = vmatpush1.bf16.msra.mxu1 %v3524_v34  ;;  %636 = vmatpush1.bf16.msra.mxu0 %v3524_v34  ;;  %v3533_v56 = vld [vmem:[%s5882_s2 + $0x30] ss:$8 sps:$4 sm:$0xff]   ;;  %v3919_v62 = vld [vmem:[%s5880_s0 + $0xc0] sm:$0xff]  ;;  %v3926_v4 = vcvt.f32.s32 %v3473_v60  ;;  %v3471_v5 = vtrunc.f32 %v3895_v54  ;;  %v3537_v16 = vld [vmem:[%s5882_s2 + $0x14] ss:$8 sps:$4 sm:$0xff]   ;;  %v3481_v31 = vtrunc.f32 %v3933_v8 }
  0x19   :  { %3413 = vmatprep.subr.bf16.mxu1 %v3525_v35  ;;  %637 = vmatprep.subr.bf16.mxu0 %v3525_v35  ;;  %v3924_v63 = vcvt.f32.s32 %v3467_v59  ;;  %v3536_v15 = vld [vmem:[%s5882_s2 + $0x20] ss:$8 sps:$4 sm:$0xff]   ;;  %v3944_v21 = vld [vmem:[%s5880_s0 + $0xd0] sm:$0xff]  ;;  %v3958_v27 = vcvt.f32.s32 %v3477_v6  ;;  %v3475_v30 = vtrunc.f32 %v3919_v62  ;;  %v3540_v34 = vld [vmem:[%s5882_s2 + $0x4] ss:$8 sps:$4 sm:$0xff]  }
  0x1a   :  { %v3949_v22 = vld [vmem:[%s5880_s0 + $0xe8] sm:$0xff]  ;;  %v3539_v25 = vld [vmem:[%s5882_s2 + $0x10] ss:$8 sps:$4 sm:$0xff]   ;;  %v3956_v26 = vcvt.f32.s32 %v3471_v5  ;;  %v3968_v35 = vld [vmem:[%s5880_s0 + $0xe0] sm:$0xff]  ;;  %v3974_v39 = vcvt.f32.s32 %v3481_v31 }
  0x1b   :  { %121 = vperm.xlu1 %3504, %v3792_v19   ;;  %118 = vperm.xlu0 %3503, %v3794_v20   ;;  %v3972_v38 = vcvt.f32.s32 %v3475_v30  ;;  %v3981_v49 = vld [vmem:[%s5880_s0 + $0xf8] sm:$0xff]  ;;  %v3542_v50 = vld [vmem:[%s5882_s2] ss:$8 sps:$4 sm:$0xff]   ;;  %v3483_v59 = vtrunc.f32 %v3968_v35  ;;  %s3687_s2 = smov 127  }
  0x1c   :  { %3421 = vmatpush1.bf16.msra.mxu1 %v3527_v42  ;;  %638 = vmatpush1.bf16.msra.mxu0 %v3527_v42  ;;  %v3479_v42 = vtrunc.f32 %v3944_v21  ;;  %v3489_v60 = vtrunc.f32 %v3981_v49 }
  0x1d   :  { %3414 = vmatprep.subr.bf16.mxu1 %v3528_v43  ;;  %639 = vmatprep.subr.bf16.mxu0 %v3528_v43  ;;  %v3485_v43 = vtrunc.f32 %v3949_v22  ;;  %v4004_v5 = vcvt.f32.s32 %v3483_v59 }
  0x1e   :  { %v4006_v6 = vcvt.f32.s32 %v3489_v60  ;;  %v4068_v60 = vld [vmem:[%s5880_s0 + $0x70] sm:$0xff] }
  0x1f   :  { %127 = vperm.xlu1 %3504, %v3819_v28   ;;  %124 = vperm.xlu0 %3503, %v3821_v29  }
  0x20   :  { %3422 = vmatpush1.bf16.msra.mxu1 %v3530_v51  ;;  %640 = vmatpush1.bf16.msra.mxu0 %v3530_v51  ;;  %v3545_v51 = vld [vmem:[%s5881_s1 + $0x74] ss:$8 sps:$4 sm:$0xff]  }
  0x21   :  { %3415 = vmatprep.subr.bf16.mxu1 %v3531_v52  ;;  %641 = vmatprep.subr.bf16.mxu0 %v3531_v52  ;;  %v3991_v52 = vcvt.f32.s32 %v3479_v42  ;;  %v4057_v42 = vld [vmem:[%s5880_s0 + $0x78] sm:$0xff] }
  0x23   :  { %133 = vperm.xlu1 %3504, %v3843_v36   ;;  %3505 = vset.pattern.permute.xlu0 %v3683_v44 }
  0x24   :  { %362 = vperm.xlu0 %3505, %v3845_v37   ;;  %3423 = vmatpush1.bf16.msra.mxu1 %v3533_v56 }
  0x25   :  { %642 = vmatpush1.bf16.msra.mxu0 %v3533_v56  ;;  %3416 = vmatprep.subr.bf16.mxu1 %v3534_v61  ;;  %v3993_v56 = vcvt.f32.s32 %v3485_v43 }
  0x26   :  { %643 = vmatprep.subr.bf16.mxu0 %v3534_v61  ;;  %v4000_v61 = vld [vmem:[%s5880_s0 + $0xf0] sm:$0xff] }
  0x27   :  { %3506 = vset.pattern.permute.xlu1 %v3683_v44 }
  0x28   :  { %365 = vperm.xlu1 %3506, %v3878_v47   ;;  %371 = vperm.xlu0 %3505, %v3880_v48  }
  0x29   :  { %3424 = vmatpush1.bf16.msra.mxu1 %v3536_v15  ;;  %644 = vmatpush1.bf16.msra.mxu0 %v3536_v15  ;;  %v3487_v15 = vtrunc.f32 %v4000_v61 }
  0x2a   :  { %3417 = vmatprep.subr.bf16.mxu1 %v3537_v16  ;;  %645 = vmatprep.subr.bf16.mxu0 %v3537_v16 }
  0x2b   :  { %v4011_v16 = vcvt.f32.s32 %v3487_v15  ;;  %v3455_v15 = vtrunc.f32 %v4068_v60 }
  0x2c   :  { %368 = vperm.xlu1 %3506, %v3907_v57   ;;  %377 = vperm.xlu0 %3505, %v3909_v58  }
  0x2d   :  { %3425 = vmatpush1.bf16.msra.mxu1 %v3539_v25  ;;  %646 = vmatpush1.bf16.msra.mxu0 %v3539_v25  ;;  %v4022_v25 = vld [vmem:[%s5880_s0 + $0x40] sm:$0xff] }
  0x2e   :  { %3418 = vmatprep.subr.bf16.mxu1 %v3540_v34  ;;  %647 = vmatprep.subr.bf16.mxu0 %v3540_v34  ;;  %v3443_v30 = vtrunc.f32 %v4022_v25  ;;  %v4052_v34 = vld [vmem:[%s5880_s0 + $0x68] sm:$0xff] }
  0x2f   :  { %v3453_v43 = vtrunc.f32 %v4052_v34 }
  0x30   :  { %374 = vperm.xlu1 %3506, %v3924_v63   ;;  %383 = vperm.xlu0 %3505, %v3926_v4  }
  0x31   :  { %3426 = vmatpush1.bf16.msra.mxu1 %v3542_v50  ;;  %648 = vmatpush1.bf16.msra.mxu0 %v3542_v50  ;;  %v3457_v50 = vtrunc.f32 %v4057_v42 }
  0x32   :  { %906 = vmatprep.subr.bf16.mxu1 %v3545_v51  ;;  %v3454_v51 = vcvt.f32.s32 %v3453_v43  ;;  %v1613_v43 = vmul.f32 3.0, %v4068_v60 }
  0x33   :  { %v3458_v59 = vcvt.f32.s32 %v3457_v50 }
  0x34   :  { %380 = vperm.xlu1 %3506, %v3956_v26   ;;  %389 = vperm.xlu0 %3505, %v3958_v27  }
  0x38   :  { %386 = vperm.xlu1 %3506, %v3972_v38   ;;  %395 = vperm.xlu0 %3505, %v3974_v39  }
  0x3c   :  { %392 = vperm.xlu1 %3506, %v3991_v52   ;;  %401 = vperm.xlu0 %3505, %v3993_v56  }
  0x40   :  { %398 = vperm.xlu1 %3506, %v4004_v5   ;;  %407 = vperm.xlu0 %3505, %v4006_v6  }
  0x44   :  { %404 = vperm.xlu1 %3506, %v4011_v16   ;;  %317 = vperm.xlu0 %3505, %v3776_v14  }
  0x48   :  { %314 = vperm.xlu1 %3506, %v3770_v12   ;;  %323 = vperm.xlu0 %3505, %v3774_v13   ;;  %v4030_v12 = vld [vmem:[%s5880_s0 + $0x50] sm:$0xff]  ;;  %v3444_v13 = vcvt.f32.s32 %v3443_v30  ;;  %v3456_v30 = vcvt.f32.s32 %v3455_v15  ;;  %v3554_v15 = vld [vmem:[%s5881_s1 + $0x44] ss:$8 sps:$4 sm:$0xff]  }
  0x49   :  { %v3447_v14 = vtrunc.f32 %v4030_v12 }
  0x4c   :  { %320 = vperm.xlu1 %3506, %v3768_v11   ;;  %329 = vperm.xlu0 %3505, %v3792_v19   ;;  %v4035_v11 = vld [vmem:[%s5880_s0 + $0x58] sm:$0xff] }
  0x4d   :  { %v3449_v19 = vtrunc.f32 %v4035_v11 }
  0x4f   :  { %v3450_v31 = vcvt.f32.s32 %v3449_v19  ;;  %v3686_v19 = vmov 1.0|1.0  }
  0x50   :  { %326 = vperm.xlu1 %3506, %v3794_v20   ;;  %335 = vperm.xlu0 %3505, %v3819_v28   ;;  %v4044_v20 = vld [vmem:[%s5880_s0 + $0x60] sm:$0xff]  ;;  %v3448_v28 = vcvt.f32.s32 %v3447_v14 }
  0x51   :  { %v1611_v14 = vmul.f32 3.0, %v4044_v20 }
  0x54   :  { %332 = vperm.xlu1 %3506, %v3821_v29   ;;  %341 = vperm.xlu0 %3505, %v3843_v36   ;;  %v3451_v29 = vtrunc.f32 %v4044_v20 }
  0x56   :  { %v3452_v36 = vcvt.f32.s32 %v3451_v29  ;;  %v3546_v29 = vld [vmem:[%s5881_s1 + $0x60] ss:$8 sps:$4 sm:$0xff]  }
  0x58   :  { %338 = vperm.xlu1 %3506, %v3444_v13   ;;  %3507 = vset.pattern.permute.xlu0 %v3682_v0 }
  0x59   :  { %130 = vperm.xlu0 %3507, %v3444_v13   ;;  %v3543_v13 = vld [vmem:[%s5881_s1 + $0x70] ss:$8 sps:$4 sm:$0xff]  }
  0x5c   :  { %3508 = vset.pattern.permute.xlu1 %v3682_v0 }
  0x5d   :  { %136 = vperm.xlu1 %3508, %v3448_v28   ;;  %139 = vperm.xlu0 %3507, %v3450_v31  }
  0x61   :  { %3509 = vset.pattern.permute.xlu1 %v3683_v44  ;;  %142 = vperm.xlu0 %3507, %v3452_v36  }
  0x62   :  { %344 = vperm.xlu1 %3509, %v3448_v28  }
  0x65   :  { %3511 = vset.pattern.permute.xlu0 %v3683_v44 }
  0x66   :  { %347 = vperm.xlu1 %3509, %v3450_v31   ;;  %350 = vperm.xlu0 %3511, %v3452_v36   ;;  %v3551_v36 = vld [vmem:[%s5881_s1 + $0x54] ss:$8 sps:$4 sm:$0xff]  }
  0x6a   :  { %3510 = vset.pattern.permute.xlu1 %v3682_v0  ;;  %3514 = vset.pattern.permute.xlu0 %v3682_v0 }
  0x6b   :  { %145 = vperm.xlu1 %3510, %v3454_v51   ;;  %151 = vperm.xlu0 %3514, %v3458_v59  }
  0x6f   :  { %3512 = vset.pattern.permute.xlu1 %v3683_v44  ;;  %154 = vperm.xlu0 %3514, %v3845_v37   ;;  %v1599_v37 = vmul.f32 3.0, %v3742_v2  ;;  %v1603_v2 = vmul.f32 3.0, %v3766_v10  ;;  %v1607_v10 = vmul.f32 3.0, %v4022_v25 }
  0x70   :  { %353 = vperm.xlu1 %3512, %v3454_v51  }
  0x73   :  { %160 = vperm.xlu0 %3514, %v3907_v57  }
  0x74   :  { %3513 = vset.pattern.permute.xlu1 %v3682_v0 }
  0x75   :  { %148 = vperm.xlu1 %3513, %v3456_v30  }
  0x77   :  { %166 = vperm.xlu0 %3514, %v3924_v63  }
  0x79   :  { %3515 = vset.pattern.permute.xlu1 %v3683_v44 }
  0x7a   :  { %356 = vperm.xlu1 %3515, %v3456_v30   ;;  %v1615_v30 = vmul.f32 3.0, %v3806_v24  ;;  %v3557_v24 = vld [vmem:[%s5881_s1 + $0x34] ss:$8 sps:$4 sm:$0xff]  }
  0x7b   :  { %172 = vperm.xlu0 %3514, %v3956_v26  }
  0x7e   :  { %359 = vperm.xlu1 %3515, %v3458_v59   ;;  %v3549_v59 = vld [vmem:[%s5881_s1 + $0x50] ss:$8 sps:$4 sm:$0xff]  }
  0x7f   :  { %178 = vperm.xlu0 %3514, %v3972_v38  }
  0x82   :  { %3516 = vset.pattern.permute.xlu1 %v3682_v0  ;;  %v1601_v0 = vmul.f32 3.0, %v3737_v1  ;;  %v1605_v1 = vmul.f32 3.0, %v3788_v18  ;;  %v1609_v18 = vmul.f32 3.0, %v4030_v12 }
  0x83   :  { %157 = vperm.xlu1 %3516, %v3878_v47   ;;  %184 = vperm.xlu0 %3514, %v3991_v52   ;;  %v1600_v52 = vmul.f32 3.0, %v3755_v7  ;;  %v3548_v7 = vld [vmem:[%s5881_s1 + $0x64] ss:$8 sps:$4 sm:$0xff]  }
  0x87   :  { %163 = vperm.xlu1 %3516, %v3880_v48   ;;  %190 = vperm.xlu0 %3514, %v4004_v5  }
  0x8b   :  { %169 = vperm.xlu1 %3516, %v3909_v58   ;;  %196 = vperm.xlu0 %3514, %v4011_v16  }
  0x8e   :  { %v4087_v44 = vpop.permute.xlu1 %112  ;;  %v4089_v57 = vpop.permute.xlu0 %106 }
  0x8f   :  { %175 = vperm.xlu1 %3516, %v3926_v4   ;;  %1663 = vrot.lane.b32.xlu0 %v1599_v37, %s3685_s9 }
  0x90   :  { %3517 = vset.pattern.permute.xlu0 %v3684_v53 }
  0x92   :  { %v4095_v47 = vpop.permute.xlu1 %115  ;;  %v4097_v48 = vpop.permute.xlu0 %109 }
  0x93   :  { %181 = vperm.xlu1 %3516, %v3958_v27   ;;  %1667 = vrot.lane.b32.xlu0 %v1601_v0, %s3685_s9  ;;  %v5887_v27 = vlaneseq }
  0x95   :  { %v4123_v5 = vand.u32 127, %v5887_v27 }
  0x96   :  { %v4102_v58 = vpop.permute.xlu1 %121  ;;  %v4104_v63 = vpop.permute.xlu0 %118 }
  0x97   :  { %187 = vperm.xlu1 %3516, %v3974_v39   ;;  %1671 = vrot.lane.b32.xlu0 %v1603_v2, %s3685_s9  ;;  %5913 = vst [vmem:[#allocation8_spill] sm:$0xff] %v4123_v5  ;;  %v1608_v2 = vmul.f32 3.0, %v3801_v23  ;;  %v1610_v23 = vmul.f32 3.0, %v4035_v11 }
  0x9a   :  { %v4109_v4 = vpop.permute.xlu1 %127  ;;  %v4111_v26 = vpop.permute.xlu0 %124 }
  0x9b   :  { %193 = vperm.xlu1 %3516, %v3993_v56   ;;  %1675 = vrot.lane.b32.xlu0 %v1605_v1, %s3685_s9  ;;  %v1617_v1 = vmul.f32 3.0, %v3852_v40  ;;  %v3560_v40 = vld [vmem:[%s5881_s1 + $0x24] ss:$8 sps:$4 sm:$0xff]  }
  0x9e   :  { %v4116_v38 = vpop.permute.xlu1 %133 }
  0x9f   :  { %199 = vperm.xlu1 %3516, %v4006_v6   ;;  %v363_v39 = vpop.permute.xlu0 %362  ;;  %1679 = vrot.lane.b32.xlu0 %v1607_v10, %s3685_s9  ;;  %v1602_v6 = vmul.f32 3.0, %v3747_v3  ;;  %v1604_v3 = vmul.f32 3.0, %v3761_v9  ;;  %v1606_v9 = vmul.f32 3.0, %v3783_v17  ;;  %v3552_v17 = vld [vmem:[%s5881_s1 + $0x40] ss:$8 sps:$4 sm:$0xff]  }
  0xa0   :  { %vm425_vm0 = vcmp.eq.s32.totalorder %v4123_v5, %v363_v39 }
  0xa3   :  { %v366_v56 = vpop.permute.xlu1 %365  ;;  %v372_v16 = vpop.permute.xlu0 %371  ;;  %1665 = vrot.lane.b32.xlu1 %v1600_v52, %s3685_s9  ;;  %1683 = vrot.lane.b32.xlu0 %v1609_v18, %s3685_s9  ;;  %v3555_v52 = vld [vmem:[%s5881_s1 + $0x30] ss:$8 sps:$4 sm:$0xff]   ;;  %v1619_v18 = vmul.f32 3.0, %v3870_v45  ;;  %v3563_v45 = vld [vmem:[%s5881_s1 + $0x14] ss:$8 sps:$4 sm:$0xff]  }
  0xa4   :  { %vm426_vm1 = vcmp.eq.s32.totalorder %v4123_v5, %v366_v56  ;;  %3518 = vset.pattern.permute.xlu1 %v3684_v53  ;;  %vm428_vm4 = vcmp.eq.s32.totalorder %v4123_v5, %v372_v16 }
  0xa5   :  { %vm2995_vm2 = vmpackc.low %vm426_vm1, %vm425_vm0 }
  0xa6   :  { %2996 = vmatmul.mubr.msk.bf16.vlgmr.msra.gmra.mxu1 %vm2995_vm2, %v3686_v19 }
  0xa7   :  { %907 = vmatpush1.bf16.msra.mxu1 %v3543_v13  ;;  %v369_v28 = vpop.permute.xlu1 %368  ;;  %v378_v31 = vpop.permute.xlu0 %377  ;;  %755 = vmatprep.mubr.bf16.mxu1 %v3684_v53  ;;  %v3558_v13 = vld [vmem:[%s5881_s1 + $0x20] ss:$8 sps:$4 sm:$0xff]  }
  0xa8   :  { %908 = vmatprep.subr.bf16.mxu1 %v3548_v7  ;;  %1669 = vrot.lane.b32.xlu1 %v1602_v6, %s3685_s9  ;;  %vm427_vm3 = vcmp.eq.s32.totalorder %v4123_v5, %v369_v28  ;;  %vm430_vm7 = vcmp.eq.s32.totalorder %v4123_v5, %v378_v31  ;;  %v1612_v7 = vmul.f32 3.0, %v4052_v34  ;;  %v1621_v6 = vmul.f32 3.0, %v3895_v54  ;;  %v3561_v31 = vld [vmem:[%s5881_s1 + $0x10] ss:$8 sps:$4 sm:$0xff]   ;;  %v3566_v54 = vld [vmem:[%s5881_s1 + $0x4] ss:$8 sps:$4 sm:$0xff]  }
  0xa9   :  { %1687 = vrot.lane.b32.xlu0 %v1611_v14, %s3685_s9  ;;  %vm2997_vm5 = vmpackc.low %vm428_vm4, %vm427_vm3 }
  0xab   :  { %v375_v50 = vpop.permute.xlu1 %374  ;;  %v384_v51 = vpop.permute.xlu0 %383  ;;  %909 = vmatpush1.bf16.msra.mxu1 %v3546_v29  ;;  %v1614_v29 = vmul.f32 3.0, %v4057_v42 }
  0xac   :  { %1673 = vrot.lane.b32.xlu1 %v1604_v3, %s3685_s9  ;;  %910 = vmatprep.subr.bf16.mxu1 %v3551_v36  ;;  %vm429_vm6 = vcmp.eq.s32.totalorder %v4123_v5, %v375_v50  ;;  %vm432_vm10 = vcmp.eq.s32.totalorder %v4123_v5, %v384_v51  ;;  %v1623_v3 = vmul.f32 3.0, %v3919_v62  ;;  %v3564_v50 = vld [vmem:[%s5881_s1] ss:$8 sps:$4 sm:$0xff]   ;;  %v1616_v51 = vmul.f32 3.0, %v3828_v32 }
  0xad   :  { %1691 = vrot.lane.b32.xlu0 %v1613_v43, %s3685_s9  ;;  %vm2999_vm8 = vmpackc.low %vm430_vm7, %vm429_vm6  ;;  %v1625_v62 = vmul.f32 3.0, %v3944_v21  ;;  %v1618_v32 = vmul.f32 3.0, %v3833_v33  ;;  %v1627_v21 = vmul.f32 3.0, %v3968_v35  ;;  %v1629_v33 = vmul.f32 3.0, %v4000_v61 }
  0xae   :  { %2998 = vmatmul.mubr.msk.bf16.gmra.mxu1 %vm2997_vm5, %v3686_v19 }
  0xaf   :  { %v381_v37 = vpop.permute.xlu1 %380  ;;  %v4163_v0 = vpop.permute.xlu0 %389  ;;  %765 = vmatprep.mubr.bf16.mxu1 %v3684_v53  ;;  %911 = vmatpush1.bf16.msra.mxu1 %v3549_v59 }
  0xb0   :  { %1677 = vrot.lane.b32.xlu1 %v1606_v9, %s3685_s9  ;;  %912 = vmatprep.subr.bf16.mxu1 %v3554_v15  ;;  %vm431_vm9 = vcmp.eq.s32.totalorder %v4123_v5, %v381_v37  ;;  %vm434_vm13 = vcmp.eq.s32.totalorder %v4123_v5, %v4163_v0  ;;  %v1620_v37 = vmul.f32 3.0, %v3857_v41  ;;  %v1622_v41 = vmul.f32 3.0, %v3875_v46 }
  0xb1   :  { %1695 = vrot.lane.b32.xlu0 %v1615_v30, %s3685_s9  ;;  %vm3001_vm11 = vmpackc.low %vm432_vm10, %vm431_vm9 }
  0xb3   :  { %v387_v10 = vpop.permute.xlu1 %386  ;;  %v4177_v39 = vpop.permute.xlu0 %395  ;;  %913 = vmatpush1.bf16.msra.mxu1 %v3552_v17 }
  0xb4   :  { %1681 = vrot.lane.b32.xlu1 %v1608_v2, %s3685_s9  ;;  %914 = vmatprep.subr.bf16.mxu1 %v3557_v24  ;;  %vm433_vm12 = vcmp.eq.s32.totalorder %v4123_v5, %v387_v10  ;;  %vm436_vm4 = vcmp.eq.s32.totalorder %v4123_v5, %v4177_v39  ;;  %v1624_v2 = vmul.f32 3.0, %v3900_v55  ;;  %v1628_v39 = vmul.f32 3.0, %v3949_v22 }
  0xb5   :  { %1699 = vrot.lane.b32.xlu0 %v1617_v1, %s3685_s9  ;;  %vm3003_vm14 = vmpackc.low %vm434_vm13, %vm433_vm12  ;;  %v1626_v1 = vmul.f32 3.0, %v3933_v8 }
  0xb6   :  { %3000 = vmatmul.mubr.msk.bf16.gmra.mxu1 %vm2999_vm8, %v3686_v19 }
  0xb7   :  { %v4191_v56 = vpop.permute.xlu1 %392  ;;  %v4193_v16 = vpop.permute.xlu0 %401  ;;  %775 = vmatprep.mubr.bf16.mxu1 %v3684_v53  ;;  %915 = vmatpush1.bf16.msra.mxu1 %v3555_v52  ;;  %v1630_v52 = vmul.f32 3.0, %v3981_v49 }
  0xb8   :  { %1685 = vrot.lane.b32.xlu1 %v1610_v23, %s3685_s9  ;;  %916 = vmatprep.subr.bf16.mxu1 %v3560_v40  ;;  %vm435_vm2 = vcmp.eq.s32.totalorder %v4123_v5, %v4191_v56  ;;  %vm438_vm10 = vcmp.eq.s32.totalorder %v4123_v5, %v4193_v16  ;;  %v3567_v16 = vld [vmem:[#allocation2 + $0x78] sm:$0xff]  }
  0xb9   :  { %1703 = vrot.lane.b32.xlu0 %v1619_v18, %s3685_s9  ;;  %vm3005_vm5 = vmpackc.low %vm436_vm4, %vm435_vm2  ;;  %vm201_vm4 = vcmp.eq.s32.totalorder %v4123_v5, %v4089_v57  ;;  %3299 = vmatprep.subr.bf16.mxu0 %v3567_v16 }
  0xbb   :  { %v4207_v14 = vpop.permute.xlu1 %398  ;;  %v4209_v28 = vpop.permute.xlu0 %407  ;;  %917 = vmatpush1.bf16.msra.mxu1 %v3558_v13 }
  0xbc   :  { %1689 = vrot.lane.b32.xlu1 %v1612_v7, %s3685_s9  ;;  %918 = vmatprep.subr.bf16.mxu1 %v3563_v45  ;;  %vm437_vm8 = vcmp.eq.s32.totalorder %v4123_v5, %v4207_v14  ;;  %v3568_v45 = vld [vmem:[#allocation2 + $0x38] sm:$0xff]  }
  0xbd   :  { %1707 = vrot.lane.b32.xlu0 %v1621_v6, %s3685_s9  ;;  %v3569_v6 = vld [vmem:[#allocation2 + $0x70] sm:$0xff]  }
  0xbe   :  { %3002 = vmatmul.mubr.msk.bf16.gmra.mxu1 %vm3001_vm11, %v3686_v19  ;;  %vm3007_vm11 = vmpackc.low %vm438_vm10, %vm437_vm8 }
  0xbf   :  { %v4223_v36 = vpop.permute.xlu1 %404  ;;  %v318_v43 = vpop.permute.xlu0 %317  ;;  %785 = vmatprep.mubr.bf16.mxu1 %v3684_v53  ;;  %919 = vmatpush1.bf16.msra.mxu1 %v3561_v31  ;;  %v3570_v31 = vld [vmem:[#allocation2 + $0x30] sm:$0xff]  }
  0xc0   :  { %1693 = vrot.lane.b32.xlu1 %v1614_v29, %s3685_s9  ;;  %920 = vmatprep.subr.bf16.mxu1 %v3566_v54  ;;  %vm410_vm15 = vcmp.eq.s32.totalorder %v4123_v5, %v318_v43  ;;  %v3571_v29 = vld [vmem:[#allocation2 + $0x68] sm:$0xff]  }
  0xc1   :  { %1711 = vrot.lane.b32.xlu0 %v1623_v3, %s3685_s9 }
  0xc3   :  { %v315_v59 = vpop.permute.xlu1 %314  ;;  %v324_v9 = vpop.permute.xlu0 %323  ;;  %921 = vmatpush1.bf16.msra.mxu1 %v3564_v50  ;;  %v4382_v50 = vld [vmem:[%s5880_s0] sm:$0xff] }
  0xc4   :  { %vm409_vm0 = vcmp.eq.s32.totalorder %v4123_v5, %v315_v59  ;;  %1697 = vrot.lane.b32.xlu1 %v1616_v51, %s3685_s9  ;;  %vm412_vm6 = vcmp.eq.s32.totalorder %v4123_v5, %v324_v9 }
  0xc5   :  { %vm2979_vm1 = vmpackc.low %vm410_vm15, %vm409_vm0  ;;  %1715 = vrot.lane.b32.xlu0 %v1625_v62, %s3685_s9  ;;  %vm440_vm0 = vcmp.eq.s32.totalorder %v4123_v5, %v4209_v28  ;;  %v3573_v62 = vld [vmem:[#allocation2 + $0x60] sm:$0xff]  }
  0xc6   :  { %2980 = vmatmul.mubr.msk.bf16.vlgmr.msra.gmra.mxu0 %vm2979_vm1, %v3686_v19  ;;  %3004 = vmatmul.mubr.msk.bf16.gmra.mxu1 %vm3003_vm14, %v3686_v19  ;;  %vm439_vm14 = vcmp.eq.s32.totalorder %v4123_v5, %v4223_v36  ;;  %v3572_v36 = vld [vmem:[#allocation2 + $0x28] sm:$0xff]  }
  0xc7   :  { %v321_v15 = vpop.permute.xlu1 %320  ;;  %v330_v30 = vpop.permute.xlu0 %329  ;;  %675 = vmatprep.mubr.bf16.mxu0 %v3684_v53  ;;  %795 = vmatprep.mubr.bf16.mxu1 %v3684_v53  ;;  %vm3009_vm1 = vmpackc.low %vm440_vm0, %vm439_vm14  ;;  %vm203_vm14 = vcmp.eq.s32.totalorder %v4123_v5, %v4087_v44 }
  0xc8   :  { %1701 = vrot.lane.b32.xlu1 %v1618_v32, %s3685_s9  ;;  %vm411_vm3 = vcmp.eq.s32.totalorder %v4123_v5, %v321_v15  ;;  %vm414_vm12 = vcmp.eq.s32.totalorder %v4123_v5, %v330_v30  ;;  %3300 = vmatpush3.bf16.msra.mxu0 %v3568_v45  ;;  %v3574_v32 = vld [vmem:[#allocation2 + $0x20] sm:$0xff]  }
  0xc9   :  { %1719 = vrot.lane.b32.xlu0 %v1627_v21, %s3685_s9  ;;  %vm2981_vm7 = vmpackc.low %vm412_vm6, %vm411_vm3  ;;  %3301 = vmatprep.subr.bf16.mxu0 %v3569_v6  ;;  %v4394_v21 = vld [vmem:[%s5880_s0 + $0x10] sm:$0xff] }
  0xcb   :  { %v327_v35 = vpop.permute.xlu1 %326  ;;  %v336_v0 = vpop.permute.xlu0 %335 }
  0xcc   :  { %1705 = vrot.lane.b32.xlu1 %v1620_v37, %s3685_s9  ;;  %vm413_vm9 = vcmp.eq.s32.totalorder %v4123_v5, %v327_v35  ;;  %vm416_vm2 = vcmp.eq.s32.totalorder %v4123_v5, %v336_v0  ;;  %3302 = vmatpush3.bf16.msra.mxu0 %v3570_v31  ;;  %v3575_v0 = vld [vmem:[#allocation2 + $0x58] sm:$0xff]  }
  0xcd   :  { %1723 = vrot.lane.b32.xlu0 %v1629_v33, %s3685_s9  ;;  %vm2983_vm13 = vmpackc.low %vm414_vm12, %vm413_vm9  ;;  %vm204_vm12 = vcmp.eq.s32.totalorder %v4123_v5, %v4095_v47  ;;  %3303 = vmatprep.subr.bf16.mxu0 %v3571_v29  ;;  %v4408_v33 = vld [vmem:[%s5880_s0 + $0x20] sm:$0xff] }
  0xce   :  { %2982 = vmatmul.mubr.msk.bf16.gmra.mxu0 %vm2981_vm7, %v3686_v19  ;;  %3006 = vmatmul.mubr.msk.bf16.gmra.mxu1 %vm3005_vm5, %v3686_v19  ;;  %vm202_vm5 = vcmp.eq.s32.totalorder %v4123_v5, %v4097_v48 }
  0xcf   :  { %v333_v61 = vpop.permute.xlu1 %332  ;;  %v342_v17 = vpop.permute.xlu0 %341  ;;  %685 = vmatprep.mubr.bf16.mxu0 %v3684_v53  ;;  %805 = vmatprep.mubr.bf16.mxu1 %v3684_v53  ;;  %vm3027_vm7 = vmpackc.low %vm202_vm5, %vm201_vm4 }
  0xd0   :  { %1709 = vrot.lane.b32.xlu1 %v1622_v41, %s3685_s9  ;;  %vm415_vm15 = vcmp.eq.s32.totalorder %v4123_v5, %v333_v61  ;;  %vm418_vm8 = vcmp.eq.s32.totalorder %v4123_v5, %v342_v17  ;;  %3304 = vmatpush3.bf16.msra.mxu0 %v3572_v36  ;;  %v3576_v17 = vld [vmem:[#allocation2 + $0x18] sm:$0xff]  }
  0xd1   :  { %vm2985_vm3 = vmpackc.low %vm416_vm2, %vm415_vm15  ;;  %vm206_vm2 = vcmp.eq.s32.totalorder %v4123_v5, %v4102_v58  ;;  %3305 = vmatprep.subr.bf16.mxu0 %v3573_v62 }
  0xd2   :  { %vm3029_vm15 = vmpackc.low %vm204_vm12, %vm203_vm14 }
  0xd3   :  { %v339_v46 = vpop.permute.xlu1 %338 }
  0xd4   :  { %v4271_v24 = vpop.permute.xlu0 %130  ;;  %1713 = vrot.lane.b32.xlu1 %v1624_v2, %s3685_s9  ;;  %vm417_vm6 = vcmp.eq.s32.totalorder %v4123_v5, %v339_v46  ;;  %3306 = vmatpush3.bf16.msra.mxu0 %v3574_v32  ;;  %v4420_v2 = vld [vmem:[%s5880_s0 + $0x30] sm:$0xff]  ;;  %v3581_v32 = vld [vmem:[#allocation2 + $0x40] sm:$0xff]  }
  0xd5   :  { %vm2987_vm9 = vmpackc.low %vm418_vm8, %vm417_vm6  ;;  %vm207_vm8 = vcmp.eq.s32.totalorder %v4123_v5, %v4111_v26  ;;  %vm209_vm12 = vcmp.eq.s32.totalorder %v4123_v5, %v4271_v24  ;;  %3307 = vmatprep.subr.bf16.mxu0 %v3575_v0  ;;  %v4521_v0 = vld [vmem:[%s5880_s0 + $0xa0] sm:$0xff] }
  0xd6   :  { %2984 = vmatmul.mubr.msk.bf16.gmra.mxu0 %vm2983_vm13, %v3686_v19  ;;  %3008 = vmatmul.mubr.msk.bf16.gmra.mxu1 %vm3007_vm11, %v3686_v19 }
  0xd7   :  { %695 = vmatprep.mubr.bf16.mxu0 %v3684_v53  ;;  %815 = vmatprep.mubr.bf16.mxu1 %v3684_v53 }
  0xd8   :  { %v4279_v55 = vpop.permute.xlu1 %136  ;;  %1717 = vrot.lane.b32.xlu1 %v1626_v1, %s3685_s9  ;;  %v4282_v10 = vpop.permute.xlu0 %139  ;;  %3308 = vmatpush3.bf16.msra.mxu0 %v3576_v17  ;;  %v4534_v17 = vld [vmem:[%s5880_s0 + $0xb0] sm:$0xff] }
  0xdc   :  { %1721 = vrot.lane.b32.xlu1 %v1628_v39, %s3685_s9  ;;  %v4292_v8 = vpop.permute.xlu0 %142 }
  0xdd   :  { %v345_v23 = vpop.permute.xlu1 %344 }
  0xde   :  { %2986 = vmatmul.mubr.msk.bf16.gmra.mxu0 %vm2985_vm3, %v3686_v19  ;;  %3010 = vmatmul.mubr.msk.bf16.gmra.mxu1 %vm3009_vm1, %v3686_v19  ;;  %vm419_vm10 = vcmp.eq.s32.totalorder %v4123_v5, %v345_v23  ;;  %vm205_vm3 = vcmp.eq.s32.totalorder %v4123_v5, %v4104_v63  ;;  %v4438_v23 = vld [vmem:[%s5880_s0 + $0x8] sm:$0xff] }
  0xdf   :  { %705 = vmatprep.mubr.bf16.mxu0 %v3684_v53  ;;  %938 = vmatprep.mubr.bf16.mxu1 %v3684_v53  ;;  %vm3031_vm5 = vmpackc.low %vm206_vm2, %vm205_vm3 }
  0xe0   :  { %1725 = vrot.lane.b32.xlu1 %v1630_v52, %s3685_s9  ;;  %v3578_v52 = vld [vmem:[#allocation2 + $0x10] sm:$0xff]  }
  0xe1   :  { %v348_v22 = vpop.permute.xlu1 %347  ;;  %v351_v49 = vpop.permute.xlu0 %350 }
  0xe2   :  { %vm420_vm11 = vcmp.eq.s32.totalorder %v4123_v5, %v348_v22  ;;  %vm421_vm0 = vcmp.eq.s32.totalorder %v4123_v5, %v351_v49 }
  0xe3   :  { %vm2989_vm13 = vmpackc.low %vm420_vm11, %vm419_vm10 }
  0xe6   :  { %2988 = vmatmul.mubr.msk.bf16.gmra.mxu0 %vm2987_vm9, %v3686_v19  ;;  %3028 = vmatmul.mubr.msk.bf16.vlgmr.msra.gmra.mxu1 %vm3027_vm7, %v3686_v19  ;;  %v4308_v40 = vpop.permute.xlu1 %145  ;;  %v4310_v18 = vpop.permute.xlu0 %151  ;;  %vm208_vm7 = vcmp.eq.s32.totalorder %v4123_v5, %v4109_v4 }
  0xe7   :  { %948 = vmatprep.mubr.bf16.mxu1 %v3684_v53  ;;  %715 = vmatprep.mubr.bf16.mxu0 %v3684_v53  ;;  %vm3033_vm11 = vmpackc.low %vm208_vm7, %vm207_vm8 }
  0xea   :  { %v4318_v57 = vpop.permute.xlu0 %154 }
  0xeb   :  { %v354_v48 = vpop.permute.xlu1 %353 }
  0xec   :  { %vm422_vm1 = vcmp.eq.s32.totalorder %v4123_v5, %v354_v48 }
  0xed   :  { %vm2991_vm4 = vmpackc.low %vm422_vm1, %vm421_vm0  ;;  %vm212_vm0 = vcmp.eq.s32.totalorder %v4123_v5, %v4282_v10  ;;  %v3577_v10 = vld [vmem:[#allocation2 + $0x50] sm:$0xff]  }
  0xee   :  { %3030 = vmatmul.mubr.msk.bf16.gmra.mxu1 %vm3029_vm15, %v3686_v19  ;;  %v4323_v56 = vpop.permute.xlu0 %160  ;;  %2990 = vmatmul.mubr.msk.bf16.gmra.mxu0 %vm2989_vm13, %v3686_v19  ;;  %vm210_vm13 = vcmp.eq.s32.totalorder %v4123_v5, %v4116_v38  ;;  %vm211_vm15 = vcmp.eq.s32.totalorder %v4123_v5, %v4279_v55 }
  0xef   :  { %958 = vmatprep.mubr.bf16.mxu1 %v3684_v53  ;;  %725 = vmatprep.mubr.bf16.mxu0 %v3684_v53  ;;  %vm3035_vm14 = vmpackc.low %vm210_vm13, %vm209_vm12 }
  0xf0   :  { %v4330_v47 = vpop.permute.xlu1 %148  ;;  %vm3037_vm2 = vmpackc.low %vm212_vm0, %vm211_vm15  ;;  %3309 = vmatprep.subr.bf16.mxu0 %v3577_v10  ;;  %vm217_vm15 = vcmp.eq.s32.totalorder %v4123_v5, %v4318_v57  ;;  %v3579_v57 = vld [vmem:[#allocation2 + $0x48] sm:$0xff]   ;;  %v4549_v10 = vld [vmem:[%s5880_s0 + $0xc0] sm:$0xff] }
  0xf1   :  { %3310 = vmatpush3.bf16.msra.mxu0 %v3578_v52  ;;  %v4567_v52 = vld [vmem:[%s5880_s0 + $0xd0] sm:$0xff] }
  0xf2   :  { %v4336_v44 = vpop.permute.xlu0 %166  ;;  %3311 = vmatprep.subr.bf16.mxu0 %v3579_v57 }
  0xf5   :  { %v357_v13 = vpop.permute.xlu1 %356 }
  0xf6   :  { %3032 = vmatmul.mubr.msk.bf16.gmra.mxu1 %vm3031_vm5, %v3686_v19  ;;  %v4339_v7 = vpop.permute.xlu0 %172  ;;  %2992 = vmatmul.mubr.msk.bf16.gmra.mxu0 %vm2991_vm4, %v3686_v19  ;;  %vm423_vm6 = vcmp.eq.s32.totalorder %v4123_v5, %v357_v13  ;;  %vm213_vm4 = vcmp.eq.s32.totalorder %v4123_v5, %v4292_v8  ;;  %vm214_vm5 = vcmp.eq.s32.totalorder %v4123_v5, %v4308_v40  ;;  %v4466_v13 = vld [vmem:[%s5880_s0 + $0x28] sm:$0xff] }
  0xf7   :  { %968 = vmatprep.mubr.bf16.mxu1 %v3684_v53  ;;  %735 = vmatprep.mubr.bf16.mxu0 %v3684_v53  ;;  %vm3039_vm7 = vmpackc.low %vm214_vm5, %vm213_vm4 }
  0xf9   :  { %v360_v58 = vpop.permute.xlu1 %359 }
  0xfa   :  { %vm424_vm9 = vcmp.eq.s32.totalorder %v4123_v5, %v360_v58  ;;  %v4350_v63 = vpop.permute.xlu0 %178 }
  0xfb   :  { %vm2993_vm10 = vmpackc.low %vm424_vm9, %vm423_vm6  ;;  %vm216_vm9 = vcmp.eq.s32.totalorder %v4123_v5, %v4310_v18 }
  0xfe   :  { %v4352_v14 = vpop.permute.xlu1 %157  ;;  %3034 = vmatmul.mubr.msk.bf16.gmra.mxu1 %vm3033_vm11, %v3686_v19  ;;  %v4355_v28 = vpop.permute.xlu0 %184  ;;  %2994 = vmatmul.mubr.msk.bf16.gmra.mxu0 %vm2993_vm10, %v3686_v19  ;;  %vm215_vm10 = vcmp.eq.s32.totalorder %v4123_v5, %v4330_v47 }
  0xff   :  { %978 = vmatprep.mubr.bf16.mxu1 %v3684_v53  ;;  %vm3041_vm12 = vmpackc.low %vm216_vm9, %vm215_vm10  ;;  %vm218_vm0 = vcmp.eq.s32.totalorder %v4123_v5, %v4352_v14  ;;  %v4488_v14 = vld [vmem:[%s5880_s0 + $0x80] sm:$0xff] }
 0x102   :  { %v4361_v4 = vpop.permute.xlu1 %163  ;;  %v4363_v26 = vpop.permute.xlu0 %190 }
 0x106   :  { %v4367_v54 = vpop.permute.xlu1 %169  ;;  %3036 = vmatmul.mubr.msk.bf16.gmra.mxu1 %vm3035_vm14, %v3686_v19  ;;  %v4370_v3 = vpop.permute.xlu0 %196 }
 0x107   :  { %988 = vmatprep.mubr.bf16.mxu1 %v3684_v53 }
 0x10a   :  { %v4377_v38 = vpop.permute.xlu1 %175  ;;  %v1664_v43 = vpop.permute.xlu0 %1663 }
 0x10b   :  { %vm1759_vm1 = vcmp.ge.f32.partialorder %v4382_v50, %v1664_v43  ;;  %v4499_v43 = vld [vmem:[%s5880_s0 + $0x48] sm:$0xff] }
 0x10c   :  { %v1791_v51 = vsel %vm1759_vm1, 1, %v3684_v53  ;;  %5914 = vst [vmem:[#allocation9_spill] sm:$0xff] %v4499_v43 }
 0x10d   :  { %1823 = vrot.lane.b32.xlu0 %v1791_v51, %s3687_s2  ;;  %v4506_v51 = vld [vmem:[%s5880_s0 + $0x90] sm:$0xff] }
 0x10e   :  { %v4387_v59 = vpop.permute.xlu1 %181  ;;  %3038 = vmatmul.mubr.msk.bf16.gmra.mxu1 %vm3037_vm2, %v3686_v19  ;;  %v1668_v9 = vpop.permute.xlu0 %1667 }
 0x10f   :  { %998 = vmatprep.mubr.bf16.mxu1 %v3684_v53  ;;  %vm1761_vm3 = vcmp.ge.f32.partialorder %v4394_v21, %v1668_v9 }
 0x110   :  { %v1793_v15 = vsel %vm1761_vm3, 1, %v3684_v53  ;;  %vm3043_vm3 = vmpackc.low %vm218_vm0, %vm217_vm15 }
 0x111   :  { %1827 = vrot.lane.b32.xlu0 %v1793_v15, %s3687_s2 }
 0x112   :  { %v4403_v30 = vpop.permute.xlu1 %187  ;;  %v1672_v37 = vpop.permute.xlu0 %1671 }
 0x113   :  { %vm1763_vm6 = vcmp.ge.f32.partialorder %v4408_v33, %v1672_v37 }
 0x114   :  { %v1795_v35 = vsel %vm1763_vm6, 1, %v3684_v53  ;;  %vm219_vm6 = vcmp.eq.s32.totalorder %v4123_v5, %v4323_v56  ;;  %v3580_v56 = vld [vmem:[#allocation2 + $0x8] sm:$0xff]  }
 0x115   :  { %1831 = vrot.lane.b32.xlu0 %v1795_v35, %s3687_s2  ;;  %3312 = vmatpush3.bf16.msra.mxu0 %v3580_v56  ;;  %v3582_v35 = vld [vmem:[#allocation2] sm:$0xff]  }
 0x116   :  { %v4413_v41 = vpop.permute.xlu1 %193  ;;  %3040 = vmatmul.mubr.msk.bf16.gmra.mxu1 %vm3039_vm7, %v3686_v19  ;;  %v1676_v61 = vpop.permute.xlu0 %1675  ;;  %vm220_vm7 = vcmp.eq.s32.totalorder %v4123_v5, %v4361_v4  ;;  %3313 = vmatprep.subr.bf16.mxu0 %v3581_v32  ;;  %v4646_v32 = vld [vmem:[%s5880_s0 + $0xd8] sm:$0xff] }
 0x117   :  { %1008 = vmatprep.mubr.bf16.mxu1 %v3684_v53  ;;  %vm1765_vm8 = vcmp.ge.f32.partialorder %v4420_v2, %v1676_v61  ;;  %vm3045_vm10 = vmpackc.low %vm220_vm7, %vm219_vm6 }
 0x118   :  { %v1797_v46 = vsel %vm1765_vm8, 1, %v3684_v53 }
 0x119   :  { %1835 = vrot.lane.b32.xlu0 %v1797_v46, %s3687_s2  ;;  %3314 = vmatpush3.bf16.msra.mxu0 %v3582_v35 }
 0x11a   :  { %v4429_v24 = vpop.permute.xlu1 %199  ;;  %v1680_v1 = vpop.permute.xlu0 %1679 }
 0x11b   :  { %vm1767_vm11 = vcmp.ge.f32.partialorder %v4022_v25, %v1680_v1 }
 0x11c   :  { %v1799_v55 = vsel %vm1767_vm11, 1, %v3684_v53 }
 0x11d   :  { %1839 = vrot.lane.b32.xlu0 %v1799_v55, %s3687_s2 }
 0x11e   :  { %v1666_v39 = vpop.permute.xlu1 %1665  ;;  %3042 = vmatmul.mubr.msk.bf16.gmra.mxu1 %vm3041_vm12, %v3686_v19  ;;  %v1684_v8 = vpop.permute.xlu0 %1683 }
 0x11f   :  { %vm1760_vm13 = vcmp.ge.f32.partialorder %v4438_v23, %v1666_v39  ;;  %1018 = vmatprep.mubr.bf16.mxu1 %v3684_v53  ;;  %vm1769_vm14 = vcmp.ge.f32.partialorder %v4030_v12, %v1684_v8  ;;  %v4454_v12 = vld [vmem:[%s5880_s0 + $0x18] sm:$0xff] }
 0x120   :  { %v1792_v25 = vsel %vm1760_vm13, 1, %v3684_v53  ;;  %v1801_v22 = vsel %vm1769_vm14, 1, %v3684_v53  ;;  %vm221_vm13 = vcmp.eq.s32.totalorder %v4123_v5, %v4336_v44  ;;  %vm222_vm14 = vcmp.eq.s32.totalorder %v4123_v5, %v4367_v54 }
 0x121   :  { %1825 = vrot.lane.b32.xlu1 %v1792_v25, %s3687_s2  ;;  %1843 = vrot.lane.b32.xlu0 %v1801_v22, %s3687_s2 }
 0x122   :  { %v1670_v49 = vpop.permute.xlu1 %1669  ;;  %v1688_v40 = vpop.permute.xlu0 %1687 }
 0x123   :  { %vm1762_vm1 = vcmp.ge.f32.partialorder %v4454_v12, %v1670_v49  ;;  %vm1771_vm2 = vcmp.ge.f32.partialorder %v4044_v20, %v1688_v40 }
 0x124   :  { %v1794_v18 = vsel %vm1762_vm1, 1, %v3684_v53  ;;  %v1803_v48 = vsel %vm1771_vm2, 1, %v3684_v53  ;;  %vm3047_vm1 = vmpackc.low %vm222_vm14, %vm221_vm13 }
 0x125   :  { %1829 = vrot.lane.b32.xlu1 %v1794_v18, %s3687_s2  ;;  %1847 = vrot.lane.b32.xlu0 %v1803_v48, %s3687_s2  ;;  %v4581_v18 = vld [vmem:[%s5880_s0 + $0x98] sm:$0xff]  ;;  %v4587_v48 = vld [vmem:[%s5880_s0 + $0xe0] sm:$0xff] }
 0x126   :  { %v1674_v47 = vpop.permute.xlu1 %1673  ;;  %3044 = vmatmul.mubr.msk.bf16.gmra.mxu1 %vm3043_vm3, %v3686_v19  ;;  %v1692_v16 = vpop.permute.xlu0 %1691 }
 0x127   :  { %vm1764_vm4 = vcmp.ge.f32.partialorder %v4466_v13, %v1674_v47  ;;  %1028 = vmatprep.mubr.bf16.mxu1 %v3684_v53  ;;  %vm1773_vm5 = vcmp.ge.f32.partialorder %v4068_v60, %v1692_v16  ;;  %v4482_v60 = vld [vmem:[%s5880_s0 + $0x38] sm:$0xff]  ;;  %v4598_v16 = vld [vmem:[%s5880_s0 + $0xa8] sm:$0xff] }
 0x128   :  { %v1796_v20 = vsel %vm1764_vm4, 1, %v3684_v53  ;;  %v1805_v45 = vsel %vm1773_vm5, 1, %v3684_v53  ;;  %vm223_vm4 = vcmp.eq.s32.totalorder %v4123_v5, %v4339_v7  ;;  %vm224_vm5 = vcmp.eq.s32.totalorder %v4123_v5, %v4377_v38  ;;  %v4560_v38 = vld [vmem:[%s5880_s0 + $0x88] sm:$0xff] }
 0x129   :  { %1833 = vrot.lane.b32.xlu1 %v1796_v20, %s3687_s2  ;;  %1851 = vrot.lane.b32.xlu0 %v1805_v45, %s3687_s2  ;;  %v4605_v20 = vld [vmem:[%s5880_s0 + $0xf0] sm:$0xff] }
 0x12a   :  { %v1678_v58 = vpop.permute.xlu1 %1677  ;;  %v1696_v6 = vpop.permute.xlu0 %1695 }
 0x12b   :  { %vm1766_vm8 = vcmp.ge.f32.partialorder %v4482_v60, %v1678_v58  ;;  %vm1775_vm9 = vcmp.ge.f32.partialorder %v4488_v14, %v1696_v6  ;;  %v2015_v6 = vmul.f32 100.0, %v4382_v50 }
 0x12c   :  { %v1798_v31 = vsel %vm1766_vm8, 1, %v3684_v53  ;;  %v1807_v4 = vsel %vm1775_vm9, 1, %v3684_v53  ;;  %vm3049_vm8 = vmpackc.low %vm224_vm5, %vm223_vm4 }
 0x12d   :  { %1837 = vrot.lane.b32.xlu1 %v1798_v31, %s3687_s2  ;;  %1855 = vrot.lane.b32.xlu0 %v1807_v4, %s3687_s2  ;;  %v4620_v31 = vld [vmem:[%s5880_s0 + $0xb8] sm:$0xff] }
 0x12e   :  { %v1682_v29 = vpop.permute.xlu1 %1681  ;;  %3046 = vmatmul.mubr.msk.bf16.gmra.mxu1 %vm3045_vm10, %v3686_v19  ;;  %v1700_v36 = vpop.permute.xlu0 %1699 }
 0x12f   :  { %vm1768_vm11 = vcmp.ge.f32.partialorder %v4499_v43, %v1682_v29  ;;  %1038 = vmatprep.mubr.bf16.mxu1 %v3684_v53  ;;  %vm1777_vm12 = vcmp.ge.f32.partialorder %v4506_v51, %v1700_v36 }
 0x130   :  { %v1800_v62 = vsel %vm1768_vm11, 1, %v3684_v53  ;;  %v1809_v9 = vsel %vm1777_vm12, 1, %v3684_v53  ;;  %vm225_vm11 = vcmp.eq.s32.totalorder %v4123_v5, %v4350_v63  ;;  %vm226_vm12 = vcmp.eq.s32.totalorder %v4123_v5, %v4387_v59 }
 0x131   :  { %1841 = vrot.lane.b32.xlu1 %v1800_v62, %s3687_s2  ;;  %1859 = vrot.lane.b32.xlu0 %v1809_v9, %s3687_s2  ;;  %v2019_v62 = vmul.f32 100.0, %v4408_v33 }
 0x132   :  { %v1686_v15 = vpop.permute.xlu1 %1685  ;;  %v1704_v37 = vpop.permute.xlu0 %1703 }
 0x133   :  { %vm1770_vm15 = vcmp.ge.f32.partialorder %v4035_v11, %v1686_v15  ;;  %vm1779_vm0 = vcmp.ge.f32.partialorder %v4521_v0, %v1704_v37 }
 0x134   :  { %v1802_v61 = vsel %vm1770_vm15, 1, %v3684_v53  ;;  %v1811_v44 = vsel %vm1779_vm0, 1, %v3684_v53  ;;  %vm3051_vm15 = vmpackc.low %vm226_vm12, %vm225_vm11  ;;  %vm231_vm12 = vcmp.eq.s32.totalorder %v4123_v5, %v4370_v3  ;;  %v4687_v3 = vld [vmem:[%s5880_s0 + $0x50] sm:$0xff] }
 0x135   :  { %1845 = vrot.lane.b32.xlu1 %v1802_v61, %s3687_s2  ;;  %1863 = vrot.lane.b32.xlu0 %v1811_v44, %s3687_s2  ;;  %v4667_v61 = vld [vmem:[%s5880_s0 + $0x40] sm:$0xff] }
 0x136   :  { %v1690_v54 = vpop.permute.xlu1 %1689  ;;  %3048 = vmatmul.mubr.msk.bf16.gmra.mxu1 %vm3047_vm1, %v3686_v19  ;;  %v1708_v11 = vpop.permute.xlu0 %1707  ;;  %v2023_v44 = vmul.f32 100.0, %v4667_v61 }
 0x137   :  { %vm1772_vm2 = vcmp.ge.f32.partialorder %v4052_v34, %v1690_v54  ;;  %1048 = vmatprep.mubr.bf16.mxu1 %v3684_v53  ;;  %vm1781_vm3 = vcmp.ge.f32.partialorder %v4534_v17, %v1708_v11  ;;  %v4677_v11 = vld [vmem:[%s5880_s0 + $0xf8] sm:$0xff] }
 0x138   :  { %v1804_v46 = vsel %vm1772_vm2, 1, %v3684_v53  ;;  %v1813_v1 = vsel %vm1781_vm3, 1, %v3684_v53  ;;  %vm227_vm2 = vcmp.eq.s32.totalorder %v4123_v5, %v4355_v28  ;;  %vm228_vm3 = vcmp.eq.s32.totalorder %v4123_v5, %v4403_v30  ;;  %v4631_v30 = vld [vmem:[%s5880_s0 + $0xc8] sm:$0xff] }
 0x139   :  { %1849 = vrot.lane.b32.xlu1 %v1804_v46, %s3687_s2  ;;  %1867 = vrot.lane.b32.xlu0 %v1813_v1, %s3687_s2  ;;  %vm3053_vm5 = vmpackc.low %vm228_vm3, %vm227_vm2  ;;  %v2017_v28 = vmul.f32 100.0, %v4394_v21  ;;  %v2016_v1 = vmul.f32 100.0, %v4438_v23 }
 0x13a   :  { %v1694_v34 = vpop.permute.xlu1 %1693  ;;  %v1712_v55 = vpop.permute.xlu0 %1711 }
 0x13b   :  { %vm1774_vm6 = vcmp.ge.f32.partialorder %v4057_v42, %v1694_v34  ;;  %vm1783_vm7 = vcmp.ge.f32.partialorder %v4549_v10, %v1712_v55  ;;  %v4697_v34 = vld [vmem:[%s5880_s0 + $0x60] sm:$0xff] }
 0x13c   :  { %v1806_v39 = vsel %vm1774_vm6, 1, %v3684_v53  ;;  %v1815_v8 = vsel %vm1783_vm7, 1, %v3684_v53  ;;  %vm229_vm7 = vcmp.eq.s32.totalorder %v4123_v5, %v4363_v26  ;;  %v2021_v26 = vmul.f32 100.0, %v4420_v2 }
 0x13d   :  { %1853 = vrot.lane.b32.xlu1 %v1806_v39, %s3687_s2  ;;  %1871 = vrot.lane.b32.xlu0 %v1815_v8, %s3687_s2  ;;  %v2027_v55 = vmul.f32 100.0, %v4697_v34  ;;  %v2020_v39 = vmul.f32 100.0, %v4466_v13 }
 0x13e   :  { %v1698_v7 = vpop.permute.xlu1 %1697  ;;  %3050 = vmatmul.mubr.msk.bf16.gmra.mxu1 %vm3049_vm8, %v3686_v19  ;;  %v1716_v42 = vpop.permute.xlu0 %1715  ;;  %vm230_vm8 = vcmp.eq.s32.totalorder %v4123_v5, %v4413_v41  ;;  %v4657_v41 = vld [vmem:[%s5880_s0 + $0xe8] sm:$0xff] }
 0x13f   :  { %vm1776_vm9 = vcmp.ge.f32.partialorder %v4560_v38, %v1698_v7  ;;  %1058 = vmatprep.mubr.bf16.mxu1 %v3684_v53  ;;  %vm1785_vm10 = vcmp.ge.f32.partialorder %v4567_v52, %v1716_v42 }
 0x140   :  { %v1808_v25 = vsel %vm1776_vm9, 1, %v3684_v53  ;;  %v1817_v22 = vsel %vm1785_vm10, 1, %v3684_v53  ;;  %vm3055_vm10 = vmpackc.low %vm230_vm8, %vm229_vm7 }
 0x141   :  { %1857 = vrot.lane.b32.xlu1 %v1808_v25, %s3687_s2  ;;  %1875 = vrot.lane.b32.xlu0 %v1817_v22, %s3687_s2  ;;  %v2022_v25 = vmul.f32 100.0, %v4482_v60  ;;  %v2031_v22 = vmul.f32 100.0, %v4488_v14 }
 0x142   :  { %v1702_v49 = vpop.permute.xlu1 %1701  ;;  %v1720_v40 = vpop.permute.xlu0 %1719 }
 0x143   :  { %vm1778_vm13 = vcmp.ge.f32.partialorder %v4581_v18, %v1702_v49  ;;  %vm1787_vm14 = vcmp.ge.f32.partialorder %v4587_v48, %v1720_v40 }
 0x144   :  { %v1810_v63 = vsel %vm1778_vm13, 1, %v3684_v53  ;;  %v1819_v59 = vsel %vm1787_vm14, 1, %v3684_v53  ;;  %vm232_vm13 = vcmp.eq.s32.totalorder %v4123_v5, %v4429_v24  ;;  %v2025_v24 = vmul.f32 100.0, %v4687_v3 }
 0x145   :  { %1861 = vrot.lane.b32.xlu1 %v1810_v63, %s3687_s2  ;;  %1879 = vrot.lane.b32.xlu0 %v1819_v59, %s3687_s2  ;;  %v2024_v63 = vmul.f32 100.0, %v4499_v43  ;;  %v2033_v59 = vmul.f32 100.0, %v4506_v51 }
 0x146   :  { %v1706_v57 = vpop.permute.xlu1 %1705  ;;  %3052 = vmatmul.mubr.msk.bf16.gmra.mxu1 %vm3051_vm15, %v3686_v19  ;;  %v1724_v47 = vpop.permute.xlu0 %1723  ;;  %vm3057_vm15 = vmpackc.low %vm232_vm13, %vm231_vm12 }
 0x147   :  { %vm1780_vm0 = vcmp.ge.f32.partialorder %v4598_v16, %v1706_v57  ;;  %1068 = vmatprep.mubr.bf16.mxu1 %v3684_v53  ;;  %vm1789_vm1 = vcmp.ge.f32.partialorder %v4605_v20, %v1724_v47 }
 0x148   :  { %v1812_v45 = vsel %vm1780_vm0, 1, %v3684_v53  ;;  %v1821_v58 = vsel %vm1789_vm1, 1, %v3684_v53  ;;  %vm1568_vm1 = vcmp.le.f32.partialorder %v4438_v23, 2.0 }
 0x149   :  { %1865 = vrot.lane.b32.xlu1 %v1812_v45, %s3687_s2  ;;  %1883 = vrot.lane.b32.xlu0 %v1821_v58, %s3687_s2  ;;  %v4733_v45 = vld [vmem:[%s5880_s0 + $0x58] sm:$0xff] }
 0x14a   :  { %v1710_v56 = vpop.permute.xlu1 %1709  ;;  %5921 = vst [vmem:[#allocation16_spill] sm:$0xff] %v4733_v45  ;;  %v2026_v58 = vmul.f32 100.0, %v4733_v45 }
 0x14b   :  { %vm1782_vm4 = vcmp.ge.f32.partialorder %v4620_v31, %v1710_v56 }
 0x14c   :  { %v1814_v4 = vsel %vm1782_vm4, 1, %v3684_v53  ;;  %vm1570_vm4 = vcmp.le.f32.partialorder %v4454_v12, 2.0 }
 0x14d   :  { %1869 = vrot.lane.b32.xlu1 %v1814_v4, %s3687_s2  ;;  %2079 = vrot.lane.b32.xlu0 %v2015_v6, %s3688_s10  ;;  %v2035_v6 = vmul.f32 100.0, %v4521_v0 }
 0x14e   :  { %v1714_v29 = vpop.permute.xlu1 %1713  ;;  %3054 = vmatmul.mubr.msk.bf16.gmra.mxu1 %vm3053_vm5, %v3686_v19 }
 0x14f   :  { %vm1784_vm6 = vcmp.ge.f32.partialorder %v4631_v30, %v1714_v29  ;;  %1078 = vmatprep.mubr.bf16.mxu1 %v3684_v53 }
 0x150   :  { %v1816_v36 = vsel %vm1784_vm6, 1, %v3684_v53 }
 0x151   :  { %1873 = vrot.lane.b32.xlu1 %v1816_v36, %s3687_s2  ;;  %2083 = vrot.lane.b32.xlu0 %v2017_v28, %s3688_s10  ;;  %v4746_v28 = vld [vmem:[%s5880_s0 + $0x68] sm:$0xff]  ;;  %v2037_v36 = vmul.f32 100.0, %v4534_v17 }
 0x152   :  { %v1718_v9 = vpop.permute.xlu1 %1717  ;;  %5924 = vst [vmem:[#allocation19_spill] sm:$0xff] %v4746_v28  ;;  %v2028_v29 = vmul.f32 100.0, %v4746_v28 }
 0x153   :  { %vm1786_vm9 = vcmp.ge.f32.partialorder %v4646_v32, %v1718_v9 }
 0x154   :  { %v1818_v15 = vsel %vm1786_vm9, 1, %v3684_v53  ;;  %vm1572_vm9 = vcmp.le.f32.partialorder %v4466_v13, 2.0 }
 0x155   :  { %1877 = vrot.lane.b32.xlu1 %v1818_v15, %s3687_s2  ;;  %2087 = vrot.lane.b32.xlu0 %v2019_v62, %s3688_s10  ;;  %v4759_v15 = vld [vmem:[%s5880_s0 + $0x78] sm:$0xff] }
 0x156   :  { %v1722_v37 = vpop.permute.xlu1 %1721  ;;  %3056 = vmatmul.mubr.msk.bf16.gmra.mxu1 %vm3055_vm10, %v3686_v19  ;;  %5927 = vst [vmem:[#allocation22_spill] sm:$0xff] %v4759_v15 }
 0x157   :  { %vm1788_vm11 = vcmp.ge.f32.partialorder %v4657_v41, %v1722_v37  ;;  %1088 = vmatprep.mubr.bf16.mxu1 %v3684_v53  ;;  %v2039_v37 = vmul.f32 100.0, %v4549_v10 }
 0x158   :  { %v1820_v35 = vsel %vm1788_vm11, 1, %v3684_v53 }
 0x159   :  { %1881 = vrot.lane.b32.xlu1 %v1820_v35, %s3687_s2  ;;  %2091 = vrot.lane.b32.xlu0 %v2021_v26, %s3688_s10  ;;  %v2030_v26 = vmul.f32 100.0, %v4759_v15 }
 0x15a   :  { %v1726_v54 = vpop.permute.xlu1 %1725 }
 0x15b   :  { %vm1790_vm14 = vcmp.ge.f32.partialorder %v4677_v11, %v1726_v54  ;;  %v2032_v54 = vmul.f32 100.0, %v4560_v38 }
 0x15c   :  { %v1822_v46 = vsel %vm1790_vm14, 1, %v3684_v53  ;;  %v2018_v53 = vmul.f32 100.0, %v4454_v12 }
 0x15d   :  { %1885 = vrot.lane.b32.xlu1 %v1822_v46, %s3687_s2  ;;  %2095 = vrot.lane.b32.xlu0 %v2023_v44, %s3688_s10  ;;  %v2041_v46 = vmul.f32 100.0, %v4567_v52 }
 0x15e   :  { %3058 = vmatmul.mubr.msk.bf16.gmra.mxu1 %vm3057_vm15, %v3686_v19  ;;  %v4706_v19 = vld [vmem:[%s5880_s0 + $0x70] sm:$0xff]  ;;  %vm1574_vm15 = vcmp.le.f32.partialorder %v4482_v60, 2.0 }
 0x15f   :  { %v2029_v8 = vmul.f32 100.0, %v4706_v19 }
 0x161   :  { %2081 = vrot.lane.b32.xlu1 %v2016_v1, %s3688_s10  ;;  %2099 = vrot.lane.b32.xlu0 %v2025_v24, %s3688_s10 }
 0x165   :  { %2085 = vrot.lane.b32.xlu1 %v2018_v53, %s3688_s10  ;;  %2103 = vrot.lane.b32.xlu0 %v2027_v55, %s3688_s10  ;;  %v2034_v55 = vmul.f32 100.0, %v4581_v18 }
 0x166   :  { %v4709_v7 = vpop.f32.mrf.mxu1 }
 0x167   :  { %5915 = vst [vmem:[#allocation10_spill] sm:$0xff] %v4709_v7 }
 0x168   :  { %v4711_v42 = vpop.f32.mrf.mxu1 }
 0x169   :  { %5916 = vst [vmem:[#allocation11_spill] sm:$0xff] %v4711_v42  ;;  %2089 = vrot.lane.b32.xlu1 %v2020_v39, %s3688_s10  ;;  %2107 = vrot.lane.b32.xlu0 %v2029_v8, %s3688_s10  ;;  %v2043_v39 = vmul.f32 100.0, %v4587_v48 }
 0x16a   :  { %v4717_v49 = vpop.f32.mrf.mxu1 }
 0x16b   :  { %5917 = vst [vmem:[#allocation12_spill] sm:$0xff] %v4717_v49 }
 0x16c   :  { %v4719_v40 = vpop.f32.mrf.mxu1 }
 0x16d   :  { %5918 = vst [vmem:[#allocation13_spill] sm:$0xff] %v4719_v40  ;;  %2093 = vrot.lane.b32.xlu1 %v2022_v25, %s3688_s10  ;;  %2111 = vrot.lane.b32.xlu0 %v2031_v22, %s3688_s10 }
 0x16e   :  { %v4725_v57 = vpop.f32.mrf.mxu1 }
 0x16f   :  { %5919 = vst [vmem:[#allocation14_spill] sm:$0xff] %v4725_v57 }
 0x170   :  { %v4727_v47 = vpop.f32.mrf.mxu1 }
 0x171   :  { %5920 = vst [vmem:[#allocation15_spill] sm:$0xff] %v4727_v47  ;;  %2097 = vrot.lane.b32.xlu1 %v2024_v63, %s3688_s10  ;;  %2115 = vrot.lane.b32.xlu0 %v2033_v59, %s3688_s10  ;;  %v2036_v63 = vmul.f32 100.0, %v4598_v16  ;;  %v2045_v59 = vmul.f32 100.0, %v4605_v20 }
 0x172   :  { %v4738_v56 = vpop.f32.mrf.mxu1 }
 0x173   :  { %5922 = vst [vmem:[#allocation17_spill] sm:$0xff] %v4738_v56 }
 0x174   :  { %v4740_v4 = vpop.f32.mrf.mxu1 }
 0x175   :  { %5923 = vst [vmem:[#allocation18_spill] sm:$0xff] %v4740_v4  ;;  %2101 = vrot.lane.b32.xlu1 %v2026_v58, %s3688_s10  ;;  %2119 = vrot.lane.b32.xlu0 %v2035_v6, %s3688_s10 }
 0x176   :  { %v4751_v62 = vpop.f32.mrf.mxu1 }
 0x177   :  { %5925 = vst [vmem:[#allocation20_spill] sm:$0xff] %v4751_v62 }
 0x178   :  { %v4753_v9 = vpop.f32.mrf.mxu1 }
 0x179   :  { %5926 = vst [vmem:[#allocation21_spill] sm:$0xff] %v4753_v9  ;;  %2105 = vrot.lane.b32.xlu1 %v2028_v29, %s3688_s10  ;;  %2123 = vrot.lane.b32.xlu0 %v2037_v36, %s3688_s10 }
 0x17a   :  { %v4764_v35 = vpop.f32.mrf.mxu1 }
 0x17b   :  { %5928 = vst [vmem:[#allocation23_spill] sm:$0xff] %v4764_v35 }
 0x17c   :  { %v4766_v44 = vpop.f32.mrf.mxu1 }
 0x17d   :  { %5929 = vst [vmem:[#allocation24_spill] sm:$0xff] %v4766_v44  ;;  %2109 = vrot.lane.b32.xlu1 %v2030_v26, %s3688_s10  ;;  %2127 = vrot.lane.b32.xlu0 %v2039_v37, %s3688_s10  ;;  %v2038_v37 = vmul.f32 100.0, %v4620_v31 }
 0x17e   :  { %v4772_v1 = vpop.f32.mrf.mxu1 }
 0x17f   :  { %5930 = vst [vmem:[#allocation25_spill] sm:$0xff] %v4772_v1  ;;  %v4774_v24 = vpop.permute.xlu0 %1823 }
 0x180   :  { %v4776_v53 = vpop.f32.mrf.mxu1  ;;  %vm1887_vm5 = vcmp.ne.s32.totalorder %v4774_v24, 0 }
 0x181   :  { %5931 = vst [vmem:[#allocation26_spill] sm:$0xff] %v4776_v53  ;;  %2113 = vrot.lane.b32.xlu1 %v2032_v54, %s3688_s10  ;;  %2131 = vrot.lane.b32.xlu0 %v2041_v46, %s3688_s10  ;;  %v3108_v54 = vadd.f32 -1.0, %v4382_v50 }
 0x182   :  { %v4782_v8 = vpop.f32.mrf.mxu1 }
 0x183   :  { %5932 = vst [vmem:[#allocation27_spill] sm:$0xff] %v4782_v8  ;;  %v4784_v25 = vpop.permute.xlu0 %1827 }
 0x184   :  { %v4786_v22 = vpop.f32.mrf.mxu1 }
 0x185   :  { %5933 = vst [vmem:[#allocation28_spill] sm:$0xff] %v4786_v22  ;;  %2117 = vrot.lane.b32.xlu1 %v2034_v55, %s3688_s10  ;;  %2135 = vrot.lane.b32.xlu0 %v2043_v39, %s3688_s10 }
 0x186   :  { %v4792_v58 = vpop.f32.mrf.mxu0  ;;  %v4794_v6 = vpop.f32.mrf.mxu1 }
 0x187   :  { %5934 = vst [vmem:[#allocation29_spill] sm:$0xff] %v4794_v6  ;;  %v4796_v29 = vpop.permute.xlu0 %1831  ;;  %v3111_v6 = vadd.f32 -1.0, %v4454_v12 }
 0x188   :  { %5935 = vst [vmem:[#allocation30_spill] sm:$0xff] %v4796_v29  ;;  %v4798_v36 = vpop.f32.mrf.mxu0  ;;  %v4800_v26 = vpop.f32.mrf.mxu1 }
 0x189   :  { %5936 = vst [vmem:[#allocation31_spill] sm:$0xff] %v4800_v26  ;;  %2121 = vrot.lane.b32.xlu1 %v2036_v63, %s3688_s10  ;;  %2139 = vrot.lane.b32.xlu0 %v2045_v59, %s3688_s10  ;;  %v2040_v63 = vmul.f32 100.0, %v4631_v30 }
 0x18a   :  { %v4806_v46 = vpop.f32.mrf.mxu0  ;;  %v4808_v55 = vpop.f32.mrf.mxu1 }
 0x18b   :  { %5937 = vst [vmem:[#allocation32_spill] sm:$0xff] %v4808_v55  ;;  %v4810_v39 = vpop.permute.xlu0 %1835 }
 0x18c   :  { %5938 = vst [vmem:[#allocation33_spill] sm:$0xff] %v4810_v39  ;;  %v4812_v27 = vpop.f32.mrf.mxu0  ;;  %v4814_v5 = vpop.f32.mrf.mxu1 }
 0x18d   :  { %5939 = vst [vmem:[#allocation34_spill] sm:$0xff] %v4814_v5  ;;  %2125 = vrot.lane.b32.xlu1 %v2038_v37, %s3688_s10  ;;  %2244 = vperm.xlu0 %3517, %v3108_v54   ;;  %v2042_v5 = vmul.f32 100.0, %v4646_v32  ;;  %v3113_v37 = vadd.f32 -1.0, %v4466_v13 }
 0x18e   :  { %v4819_v59 = vpop.f32.mrf.mxu0  ;;  %v4821_v50 = vpop.f32.mrf.mxu1 }
 0x18f   :  { %5940 = vst [vmem:[#allocation35_spill] sm:$0xff] %v4821_v50  ;;  %v4823_v26 = vpop.permute.xlu0 %1839  ;;  %v5974_v13 = vld [vmem:[#allocation30_spill] sm:$0xff] }
 0x190   :  { %5941 = vst [vmem:[#allocation36_spill] sm:$0xff] %v4823_v26  ;;  %v4825_v55 = vpop.f32.mrf.mxu0  ;;  %v4827_v22 = vpop.f32.mrf.mxu1 }
 0x191   :  { %5942 = vst [vmem:[#allocation37_spill] sm:$0xff] %v4827_v22  ;;  %2129 = vrot.lane.b32.xlu1 %v2040_v63, %s3688_s10  ;;  %2259 = vperm.xlu0 %3517, %v3111_v6   ;;  %v2044_v63 = vmul.f32 100.0, %v4657_v41  ;;  %v3115_v6 = vadd.f32 -1.0, %v4482_v60 }
 0x192   :  { %v4832_v54 = vpop.f32.mrf.mxu0  ;;  %v4834_v8 = vpop.f32.mrf.mxu1 }
 0x193   :  { %5943 = vst [vmem:[#allocation38_spill] sm:$0xff] %v4834_v8  ;;  %v4836_v1 = vpop.permute.xlu1 %1825  ;;  %v4838_v50 = vpop.permute.xlu0 %1843 }
 0x194   :  { %5944 = vst [vmem:[#allocation39_spill] sm:$0xff] %v4838_v50  ;;  %v4840_v53 = vpop.f32.mrf.mxu0  ;;  %v4842_v44 = vpop.f32.mrf.mxu1  ;;  %vm1888_vm0 = vcmp.ne.s32.totalorder %v4836_v1, 0  ;;  %v3615_v1 = vld [vmem:[%s5880_s0] sm:$0xff] }
 0x195   :  { %5945 = vst [vmem:[#allocation40_spill] sm:$0xff] %v4842_v44  ;;  %2133 = vrot.lane.b32.xlu1 %v2042_v5, %s3688_s10  ;;  %2269 = vperm.xlu0 %3517, %v3113_v37   ;;  %v2046_v5 = vmul.f32 100.0, %v4677_v11  ;;  %v3117_v37 = vadd.f32 -1.0, %v4499_v43  ;;  %vm5032_vm2 = vmor %vm1568_vm1, %vm1888_vm0  ;;  %vm1567_vm6 = vcmp.le.f32.partialorder %v3615_v1, 2.0  ;;  %vm1889_vm0 = vcmp.ne.s32.totalorder %v4784_v25, 0 }
 0x196   :  { %v4847_v22 = vpop.f32.mrf.mxu0  ;;  %v4849_v35 = vpop.f32.mrf.mxu1  ;;  %vm5067_vm10 = vmor %vm1567_vm6, %vm1887_vm5  ;;  %vm1891_vm1 = vcmp.ne.s32.totalorder %v5974_v13, 0 }
 0x197   :  { %5946 = vst [vmem:[#allocation41_spill] sm:$0xff] %v4849_v35  ;;  %v4851_v8 = vpop.permute.xlu1 %1829  ;;  %v4853_v62 = vpop.permute.xlu0 %1847 }
 0x198   :  { %5947 = vst [vmem:[#allocation42_spill] sm:$0xff] %v4853_v62  ;;  %v4855_v9 = vpop.f32.mrf.mxu0  ;;  %v4857_v4 = vpop.f32.mrf.mxu1  ;;  %v5956_v62 = vlaneseq  ;;  %vm1890_vm3 = vcmp.ne.s32.totalorder %v4851_v8, 0 }
 0x199   :  { %5948 = vst [vmem:[#allocation43_spill] sm:$0xff] %v4857_v4  ;;  %2137 = vrot.lane.b32.xlu1 %v2044_v63, %s3688_s10  ;;  %2279 = vperm.xlu0 %3517, %v3115_v6   ;;  %v3109_v63 = vadd.f32 -1.0, %v4438_v23  ;;  %v3119_v6 = vadd.f32 -1.0, %v4733_v45  ;;  %vm5057_vm7 = vmor %vm1570_vm4, %vm1890_vm3 }
 0x19a   :  { %v4862_v44 = vpop.f32.mrf.mxu0  ;;  %v4864_v56 = vpop.f32.mrf.mxu1  ;;  %v1102_v50 = vshrl.u32 %v5956_v62, 7  ;;  %v1099_v62 = vld [vmem:[%s5883_s3] sm:$0x3] }
 0x19b   :  { %5949 = vst [vmem:[#allocation44_spill] sm:$0xff] %v4864_v56  ;;  %v4866_v35 = vpop.permute.xlu1 %1833  ;;  %v4868_v57 = vpop.permute.xlu0 %1851 }
 0x19c   :  { %5950 = vst [vmem:[#allocation45_spill] sm:$0xff] %v4868_v57  ;;  %v4870_v47 = vpop.f32.mrf.mxu0  ;;  %v4872_v40 = vpop.f32.mrf.mxu1  ;;  %vm1892_vm8 = vcmp.ne.s32.totalorder %v4866_v35, 0 }
 0x19d   :  { %5951 = vst [vmem:[#allocation46_spill] sm:$0xff] %v4872_v40  ;;  %2141 = vrot.lane.b32.xlu1 %v2046_v5, %s3688_s10  ;;  %2289 = vperm.xlu0 %3517, %v3117_v37   ;;  %v3110_v5 = vadd.f32 -1.0, %v4394_v21  ;;  %v3121_v37 = vadd.f32 -1.0, %v4746_v28  ;;  %v3123_v21 = vadd.f32 -1.0, %v4759_v15  ;;  %v1103_v28 = vsub.s32 0, %v1102_v50  ;;  %vm5089_vm13 = vmor %vm1572_vm9, %vm1892_vm8 }
 0x19e   :  { %v4877_v4 = vpop.f32.mrf.mxu0  ;;  %v4879_v49 = vpop.f32.mrf.mxu1  ;;  %vm1575_vm9 = vcmp.le.f32.partialorder %v4667_v61, 2.0 }
 0x19f   :  { %5952 = vst [vmem:[#allocation47_spill] sm:$0xff] %v4879_v49  ;;  %v4881_v56 = vpop.permute.xlu1 %1837  ;;  %v4883_v7 = vpop.permute.xlu0 %1855  ;;  %v4919_v15 = vrot.slane %v1099_v62, %v1103_v28  ;;  %v3127_v28 = vadd.f32 -1.0, %v4581_v18  ;;  %v3118_v18 = vadd.f32 -1.0, %v4687_v3 }
 0x1a0   :  { %5953 = vst [vmem:[#allocation48_spill] sm:$0xff] %v4883_v7  ;;  %v4885_v57 = vpop.f32.mrf.mxu0  ;;  %v4887_v42 = vpop.f32.mrf.mxu1  ;;  %vm1894_vm14 = vcmp.ne.s32.totalorder %v4881_v56, 0 }
 0x1a1   :  { %5954 = vst [vmem:[#allocation49_spill] sm:$0xff] %v4887_v42  ;;  %2249 = vperm.xlu1 %3518, %v3109_v63   ;;  %2299 = vperm.xlu0 %3517, %v3119_v6   ;;  %v1107_v42 = vsub.s32 1, %v1102_v50  ;;  %v3112_v63 = vadd.f32 -1.0, %v4408_v33  ;;  %v3114_v33 = vadd.f32 -1.0, %v4420_v2  ;;  %v3125_v50 = vadd.f32 -1.0, %v4560_v38  ;;  %vm5116_vm3 = vmor %vm1574_vm15, %vm1894_vm14 }
 0x1a2   :  { %v4891_v40 = vpop.f32.mrf.mxu1  ;;  %v4898_v39 = vpop.f32.mrf.mxu0 }
 0x1a3   :  { %5955 = vst [vmem:[#allocation50_spill] sm:$0xff] %v4891_v40  ;;  %v4894_v26 = vpop.permute.xlu1 %1841  ;;  %v4896_v49 = vpop.permute.xlu0 %1859  ;;  %v4914_v43 = vrot.slane %v1099_v62, %v1107_v42 }
 0x1a4   :  { %5957 = vst [vmem:[#allocation51_spill] sm:$0xff] %v4894_v26  ;;  %5958 = vst [vmem:[#allocation52_spill] sm:$0xff] %v4896_v49  ;;  %v4900_v7 = vpop.f32.mrf.mxu1  ;;  %v4911_v45 = vpop.f32.mrf.mxu0 }
 0x1a5   :  { %5959 = vst [vmem:[#allocation53_spill] sm:$0xff] %v4900_v7  ;;  %2254 = vperm.xlu1 %3518, %v3110_v5   ;;  %2309 = vperm.xlu0 %3517, %v3121_v37  }
 0x1a6   :  { %v940_v6 = vpop.f32.mrf.mxu1 }
 0x1a7   :  { %v4907_v40 = vpop.permute.xlu1 %1845  ;;  %v4909_v49 = vpop.permute.xlu0 %1863  ;;  %v941_v37 = vadd.f32 %v940_v6, %v4792_v58 }
 0x1a8   :  { %5960 = vst [vmem:[#allocation54_spill] sm:$0xff] %v4907_v40  ;;  %5961 = vst [vmem:[#allocation55_spill] sm:$0xff] %v4909_v49  ;;  %v942_v7 = vpop.f32.mrf.mxu1 }
 0x1a9   :  { %v943_v5 = vadd.f32 %v942_v7, %v4798_v36  ;;  %2264 = vperm.xlu1 %3518, %v3112_v63   ;;  %2319 = vperm.xlu0 %3517, %v3123_v21   ;;  %v4926_v7 = vpop.f32.mrf.mxu0  ;;  %v3116_v36 = vadd.f32 -1.0, %v4667_v61 }
 0x1aa   :  { %v944_v40 = vpop.f32.mrf.mxu1 }
 0x1ab   :  { %v945_v49 = vadd.f32 %v944_v40, %v4806_v46  ;;  %v4922_v26 = vpop.permute.xlu1 %1849  ;;  %v4924_v29 = vpop.permute.xlu0 %1867  ;;  %v1112_v2 = vadd.f32 %v4914_v43, %v943_v5  ;;  %v1111_v40 = vadd.f32 %v4919_v15, %v941_v37 }
 0x1ac   :  { %5962 = vst [vmem:[#allocation56_spill] sm:$0xff] %v4922_v26  ;;  %5963 = vst [vmem:[#allocation57_spill] sm:$0xff] %v4924_v29  ;;  %v946_v42 = vpop.f32.mrf.mxu1  ;;  %v4939_v62 = vpop.f32.mrf.mxu0 }
 0x1ad   :  { %v1113_v38 = vadd.f32 %v4919_v15, %v945_v49  ;;  %v947_v58 = vadd.f32 %v946_v42, %v4812_v27  ;;  %2274 = vperm.xlu1 %3518, %v3114_v33   ;;  %2329 = vperm.xlu0 %3517, %v3125_v50   ;;  %v1176_v49 = vmax.f32 %v1112_v2, 0.0  ;;  %v1175_v33 = vmax.f32 %v1111_v40, 0.0 }
 0x1ae   :  { %v950_v46 = vpop.f32.mrf.mxu1  ;;  %v3129_v42 = vadd.f32 -1.0, %v4598_v16  ;;  %v4950_v2 = vpop.f32.mrf.mxu0  ;;  %v3120_v16 = vadd.f32 -1.0, %v4697_v34 }
 0x1af   :  { %v1114_v63 = vadd.f32 %v4914_v43, %v947_v58  ;;  %v4935_v21 = vpop.permute.xlu1 %1853  ;;  %v4937_v6 = vpop.permute.xlu0 %1871  ;;  %v1177_v5 = vmax.f32 %v1113_v38, 0.0  ;;  %v951_v50 = vadd.f32 %v950_v46, %v4819_v59 }
 0x1b0   :  { %5964 = vst [vmem:[#allocation58_spill] sm:$0xff] %v4935_v21  ;;  %5965 = vst [vmem:[#allocation59_spill] sm:$0xff] %v4937_v6  ;;  %v952_v29 = vpop.f32.mrf.mxu1 }
 0x1b1   :  { %v1178_v26 = vmax.f32 %v1114_v63, 0.0  ;;  %v953_v27 = vadd.f32 %v952_v29, %v4825_v55  ;;  %2284 = vperm.xlu1 %3518, %v3116_v36   ;;  %2339 = vperm.xlu0 %3517, %v3127_v28   ;;  %v1239_v29 = vpack.c.bf16 %v1177_v5, %v1175_v33 }
 0x1b2   :  { %v954_v37 = vpop.f32.mrf.mxu1 }
 0x1b3   :  { %v955_v58 = vadd.f32 %v954_v37, %v4832_v54  ;;  %v4946_v6 = vpop.permute.xlu1 %1857  ;;  %v1240_v38 = vpack.c.bf16 %v1178_v26, %v1176_v49  ;;  %v4948_v21 = vpop.permute.xlu0 %1875  ;;  %v1116_v36 = vadd.f32 %v4914_v43, %v953_v27  ;;  %v1115_v54 = vadd.f32 %v4919_v15, %v951_v50 }
 0x1b4   :  { %v956_v55 = vpop.f32.mrf.mxu1  ;;  %v3131_v26 = vadd.f32 -1.0, %v4620_v31  ;;  %v4963_v49 = vpop.f32.mrf.mxu0  ;;  %v3122_v50 = vadd.f32 -1.0, %v4706_v19 }
 0x1b5   :  { %v1117_v28 = vadd.f32 %v4919_v15, %v955_v58  ;;  %v957_v59 = vadd.f32 %v956_v55, %v4840_v53  ;;  %2294 = vperm.xlu1 %3518, %v3118_v18   ;;  %1438 = vmatprep.mubr.bf16.mxu0 %v1240_v38  ;;  %v1180_v18 = vmax.f32 %v1116_v36, 0.0 }
 0x1b6   :  { %v960_v40 = vpop.f32.mrf.mxu1  ;;  %1439 = vmatmul.mubr.bf16.vlgmr.msra.gmra.mxu0 %v1239_v29  ;;  %2349 = vperm.xlu0 %3517, %v3129_v42   ;;  %v1179_v42 = vmax.f32 %v1115_v54, 0.0  ;;  %v4968_v38 = vpop.f32.mrf.mxu0  ;;  %v3133_v29 = vadd.f32 -1.0, %v4631_v30 }
 0x1b7   :  { %v1118_v46 = vadd.f32 %v4914_v43, %v957_v59  ;;  %v4959_v63 = vpop.permute.xlu1 %1861  ;;  %v4961_v5 = vpop.permute.xlu0 %1879  ;;  %v1181_v53 = vmax.f32 %v1117_v28, 0.0  ;;  %v961_v31 = vadd.f32 %v960_v40, %v4847_v22  ;;  %v3124_v40 = vadd.f32 -1.0, %v4488_v14 }
 0x1b8   :  { %v962_v27 = vpop.f32.mrf.mxu1 }
 0x1b9   :  { %v1182_v33 = vmax.f32 %v1118_v46, 0.0  ;;  %v963_v37 = vadd.f32 %v962_v27, %v4855_v9  ;;  %2304 = vperm.xlu1 %3518, %v3120_v16   ;;  %v1241_v16 = vpack.c.bf16 %v1181_v53, %v1179_v42  ;;  %v1119_v30 = vadd.f32 %v4919_v15, %v961_v31 }
 0x1ba   :  { %v964_v58 = vpop.f32.mrf.mxu1  ;;  %2359 = vperm.xlu0 %3517, %v3131_v26   ;;  %v3135_v27 = vadd.f32 -1.0, %v4646_v32  ;;  %v3126_v31 = vadd.f32 -1.0, %v4506_v51  ;;  %v3137_v32 = vadd.f32 -1.0, %v4657_v41  ;;  %v3128_v41 = vadd.f32 -1.0, %v4521_v0 }
 0x1bb   :  { %v965_v55 = vadd.f32 %v964_v58, %v4862_v44  ;;  %v4972_v28 = vpop.permute.xlu1 %1865  ;;  %v1242_v36 = vpack.c.bf16 %v1182_v33, %v1180_v18  ;;  %v4974_v59 = vpop.permute.xlu0 %1883  ;;  %v1120_v46 = vadd.f32 %v4914_v43, %v963_v37  ;;  %v1183_v58 = vmax.f32 %v1119_v30, 0.0 }
 0x1bc   :  { %v966_v9 = vpop.f32.mrf.mxu1  ;;  %v4981_v44 = vpop.f32.mrf.mxu0 }
 0x1bd   :  { %v1121_v54 = vadd.f32 %v4919_v15, %v965_v55  ;;  %v967_v22 = vadd.f32 %v966_v9, %v4870_v47  ;;  %2314 = vperm.xlu1 %3518, %v3122_v50   ;;  %1446 = vmatprep.mubr.bf16.mxu0 %v1242_v36  ;;  %v1184_v50 = vmax.f32 %v1120_v46, 0.0 }
 0x1be   :  { %v970_v26 = vpop.f32.mrf.mxu1  ;;  %1447 = vmatmul.mubr.bf16.gmra.mxu0 %v1241_v16  ;;  %2369 = vperm.xlu0 %3517, %v3133_v29   ;;  %v4993_v36 = vpop.f32.mrf.mxu0 }
 0x1bf   :  { %v1122_v53 = vadd.f32 %v4914_v43, %v967_v22  ;;  %v4985_v18 = vpop.permute.xlu1 %1869  ;;  %v4987_v33 = vpop.permute.xlu0 %2079  ;;  %v1185_v47 = vmax.f32 %v1121_v54, 0.0  ;;  %v971_v29 = vadd.f32 %v970_v26, %v4877_v4  ;;  %v3139_v26 = vadd.f32 -1.0, %v4677_v11 }
 0x1c0   :  { %v972_v37 = vpop.f32.mrf.mxu1 }
 0x1c1   :  { %v1186_v42 = vmax.f32 %v1122_v53, 0.0  ;;  %v973_v14 = vadd.f32 %v972_v37, %v4885_v57  ;;  %2324 = vperm.xlu1 %3518, %v3124_v40   ;;  %v1243_v22 = vpack.c.bf16 %v1185_v47, %v1183_v58  ;;  %v1123_v30 = vadd.f32 %v4919_v15, %v971_v29 }
 0x1c2   :  { %v974_v55 = vpop.f32.mrf.mxu1  ;;  %2379 = vperm.xlu0 %3517, %v3135_v27   ;;  %v5006_v27 = vpop.f32.mrf.mxu0 }
 0x1c3   :  { %v975_v9 = vadd.f32 %v974_v55, %v4898_v39  ;;  %v4996_v16 = vpop.permute.xlu1 %1873  ;;  %v1244_v46 = vpack.c.bf16 %v1186_v42, %v1184_v50  ;;  %v4998_v57 = vpop.permute.xlu0 %2083  ;;  %v1124_v51 = vadd.f32 %v4914_v43, %v973_v14  ;;  %v1187_v58 = vmax.f32 %v1123_v30, 0.0 }
 0x1c4   :  { %v976_v54 = vpop.f32.mrf.mxu1  ;;  %v5012_v0 = vpop.f32.mrf.mxu0 }
 0x1c5   :  { %v1125_v40 = vadd.f32 %v4919_v15, %v975_v9  ;;  %v977_v4 = vadd.f32 %v976_v54, %v4911_v45  ;;  %2334 = vperm.xlu1 %3518, %v3126_v31   ;;  %1454 = vmatprep.mubr.bf16.mxu0 %v1244_v46  ;;  %v1188_v45 = vmax.f32 %v1124_v51, 0.0  ;;  %v3130_v31 = vadd.f32 -1.0, %v4534_v17 }
 0x1c6   :  { %v980_v39 = vpop.f32.mrf.mxu1  ;;  %1455 = vmatmul.mubr.bf16.gmra.mxu0 %v1243_v22  ;;  %2389 = vperm.xlu0 %3517, %v3137_v32  }
 0x1c7   :  { %v1126_v53 = vadd.f32 %v4914_v43, %v977_v4  ;;  %v5009_v47 = vpop.permute.xlu1 %1877  ;;  %v1189_v37 = vmax.f32 %v1125_v40, 0.0  ;;  %v981_v11 = vadd.f32 %v980_v39, %v4926_v7  ;;  %v5016_v55 = vpop.permute.xlu0 %2087  ;;  %v3132_v40 = vadd.f32 -1.0, %v4549_v10 }
 0x1c8   :  { %v982_v50 = vpop.f32.mrf.mxu1  ;;  %v5025_v7 = vpop.f32.mrf.mxu0  ;;  %v3134_v39 = vadd.f32 -1.0, %v4567_v52 }
 0x1c9   :  { %v1190_v42 = vmax.f32 %v1126_v53, 0.0  ;;  %v983_v14 = vadd.f32 %v982_v50, %v4939_v62  ;;  %2344 = vperm.xlu1 %3518, %v3128_v41   ;;  %v1245_v54 = vpack.c.bf16 %v1189_v37, %v1187_v58 }
 0x1ca   :  { %v984_v29 = vpop.f32.mrf.mxu1  ;;  %2399 = vperm.xlu0 %3517, %v3139_v26   ;;  %v731_v50 = vpop.f32.mrf.mxu0 }
 0x1cb   :  { %v985_v32 = vadd.f32 %v984_v29, %v4950_v2  ;;  %v5020_v9 = vpop.permute.xlu1 %1881  ;;  %v1246_v46 = vpack.c.bf16 %v1190_v42, %v1188_v45  ;;  %v1128_v17 = vadd.f32 %v4914_v43, %v983_v14  ;;  %v1127_v2 = vadd.f32 %v4919_v15, %v981_v11  ;;  %v5046_v26 = vpop.permute.xlu0 %2091 }
 0x1cc   :  { %v986_v62 = vpop.f32.mrf.mxu1  ;;  %v3689_v42 = vmov 0.0  }
 0x1cd   :  { %v1129_v22 = vadd.f32 %v4919_v15, %v985_v32  ;;  %v987_v51 = vadd.f32 %v986_v62, %v4963_v49  ;;  %2354 = vperm.xlu1 %3518, %v3130_v31   ;;  %1462 = vmatprep.mubr.bf16.mxu0 %v1246_v46  ;;  %v1192_v53 = vmax.f32 %v1128_v17, 0.0  ;;  %v3077_v14 = vsel %vm5032_vm2, 1.0, %v3689_v42 }
 0x1ce   :  { %v990_v4 = vpop.f32.mrf.mxu1  ;;  %1463 = vmatmul.mubr.bf16.gmra.mxu0 %v1245_v54  ;;  %v1191_v31 = vmax.f32 %v1127_v2, 0.0  ;;  %v3136_v62 = vadd.f32 -1.0, %v4587_v48  ;;  %v733_v54 = vpop.f32.mrf.mxu0  ;;  %v3079_v24 = vsel %vm5057_vm7, 1.0, %v3689_v42  ;;  %v5987_v2 = vld [vmem:[#allocation54_spill] sm:$0xff] }
 0x1cf   :  { %v1130_v41 = vadd.f32 %v4914_v43, %v987_v51  ;;  %v5038_v30 = vpop.permute.xlu1 %1885  ;;  %v1193_v10 = vmax.f32 %v1129_v22, 0.0  ;;  %v991_v58 = vadd.f32 %v990_v4, %v4968_v38  ;;  %v3138_v4 = vadd.f32 -1.0, %v4605_v20  ;;  %v5094_v23 = vpop.permute.xlu0 %2095 }
 0x1d0   :  { %v992_v49 = vpop.f32.mrf.mxu1 }
 0x1d1   :  { %v1194_v37 = vmax.f32 %v1130_v41, 0.0  ;;  %v993_v45 = vadd.f32 %v992_v49, %v4981_v44  ;;  %2364 = vperm.xlu1 %3518, %v3132_v40   ;;  %v1247_v46 = vpack.c.bf16 %v1193_v10, %v1191_v31  ;;  %v1131_v51 = vadd.f32 %v4919_v15, %v991_v58  ;;  %v3616_v40 = vld [vmem:[%s5880_s0 + $0x10] sm:$0xff]  ;;  %v5100_v10 = vpop.f32.mrf.mxu0  ;;  %v5975_v31 = vld [vmem:[#allocation51_spill] sm:$0xff] }
 0x1d2   :  { %v994_v11 = vpop.f32.mrf.mxu1  ;;  %vm1569_vm11 = vcmp.le.f32.partialorder %v3616_v40, 2.0  ;;  %v3076_v41 = vsel %vm5067_vm10, 1.0, %v3689_v42  ;;  %vm1896_vm2 = vcmp.ne.s32.totalorder %v5975_v31, 0 }
 0x1d3   :  { %v995_v44 = vadd.f32 %v994_v11, %v4993_v36  ;;  %v2082_v29 = vpop.permute.xlu1 %2081  ;;  %v1248_v32 = vpack.c.bf16 %v1194_v37, %v1192_v53  ;;  %v1132_v17 = vadd.f32 %v4914_v43, %v993_v45  ;;  %v1195_v58 = vmax.f32 %v1131_v51, 0.0  ;;  %vm5124_vm5 = vmor %vm1569_vm11, %vm1889_vm0 }
 0x1d4   :  { %v2176_v12 = vadd.f32 %v3077_v14, %v2082_v29  ;;  %v996_v8 = vpop.f32.mrf.mxu1  ;;  %v3081_v14 = vsel %vm5089_vm13, 1.0, %v3689_v42  ;;  %v2175_v56 = vadd.f32 %v3076_v41, %v4987_v33  ;;  %v3078_v51 = vsel %vm5124_vm5, 1.0, %v3689_v42  ;;  %v5992_v29 = vld [vmem:[#allocation19_spill] sm:$0xff] }
 0x1d5   :  { %v1133_v36 = vadd.f32 %v4919_v15, %v995_v44  ;;  %v997_v22 = vadd.f32 %v996_v8, %v5006_v27  ;;  %2374 = vperm.xlu1 %3518, %v3134_v39   ;;  %1470 = vmatprep.mubr.bf16.mxu0 %v1248_v32  ;;  %v3617_v27 = vld [vmem:[%s5880_s0 + $0x20] sm:$0xff]  ;;  %v1196_v53 = vmax.f32 %v1132_v17, 0.0  ;;  %vm1580_vm0 = vcmp.le.f32.partialorder %v5992_v29, 2.0 }
 0x1d6   :  { %v1000_v48 = vpop.f32.mrf.mxu1  ;;  %1471 = vmatmul.mubr.bf16.gmra.mxu0 %v1247_v46  ;;  %2505 = vperm.xlu0 %3517, %v2176_v12   ;;  %vm1571_vm12 = vcmp.le.f32.partialorder %v3617_v27, 2.0  ;;  %v3618_v46 = vld [vmem:[%s5880_s0 + $0x30] sm:$0xff]  ;;  %v5986_v27 = vld [vmem:[#allocation33_spill] sm:$0xff]  ;;  %vm1579_vm5 = vcmp.le.f32.partialorder %v4697_v34, 2.0 }
 0x1d7   :  { %v1134_v35 = vadd.f32 %v4914_v43, %v997_v22  ;;  %v2086_v49 = vpop.permute.xlu1 %2085  ;;  %v1197_v20 = vmax.f32 %v1133_v36, 0.0  ;;  %v1001_v11 = vadd.f32 %v1000_v48, %v5012_v0  ;;  %v739_v0 = vpop.f32.mrf.mxu0  ;;  %vm5132_vm6 = vmor %vm1571_vm12, %vm1891_vm1  ;;  %vm1573_vm7 = vcmp.le.f32.partialorder %v3618_v46, 2.0  ;;  %v5985_v48 = vld [vmem:[#allocation16_spill] sm:$0xff] }
 0x1d8   :  { %v2178_v1 = vadd.f32 %v3079_v24, %v2086_v49  ;;  %v1002_v39 = vpop.f32.mrf.mxu1  ;;  %v3083_v22 = vsel %vm5116_vm3, 1.0, %v3689_v42  ;;  %vm1578_vm10 = vcmp.le.f32.partialorder %v5985_v48, 2.0  ;;  %vm1893_vm11 = vcmp.ne.s32.totalorder %v5986_v27, 0  ;;  %v5988_v49 = vld [vmem:[#allocation36_spill] sm:$0xff] }
 0x1d9   :  { %v1198_v37 = vmax.f32 %v1134_v35, 0.0  ;;  %v1003_v45 = vadd.f32 %v1002_v39, %v5025_v7  ;;  %2384 = vperm.xlu1 %3518, %v3136_v62   ;;  %v5978_v7 = vld [vmem:[#allocation9_spill] sm:$0xff]  ;;  %v1249_v62 = vpack.c.bf16 %v1197_v20, %v1195_v58  ;;  %vm1898_vm12 = vcmp.ne.s32.totalorder %v5987_v2, 0  ;;  %v741_v13 = vpop.f32.mrf.mxu0  ;;  %v5989_v58 = vld [vmem:[#allocation56_spill] sm:$0xff]  ;;  %vm5187_vm1 = vmor %vm1573_vm7, %vm1893_vm11 }
 0x1da   :  { %v1004_v52 = vpop.f32.mrf.mxu1  ;;  %2515 = vperm.xlu0 %3517, %v2178_v1   ;;  %vm1576_vm4 = vcmp.le.f32.partialorder %v5978_v7, 2.0  ;;  %vm1895_vm13 = vcmp.ne.s32.totalorder %v5988_v49, 0  ;;  %vm1900_vm14 = vcmp.ne.s32.totalorder %v5989_v58, 0  ;;  %vm5177_vm15 = vmor %vm1578_vm10, %vm1898_vm12  ;;  %vm1577_vm3 = vcmp.le.f32.partialorder %v4687_v3, 2.0  ;;  %v6009_v7 = vld [vmem:[#allocation12_spill] sm:$0xff] }
 0x1db   :  { %v1005_v32 = vadd.f32 %v1004_v52, %v731_v50  ;;  %v2090_v38 = vpop.permute.xlu1 %2089  ;;  %v1250_v12 = vpack.c.bf16 %v1198_v37, %v1196_v53  ;;  %v5139_v50 = vpop.permute.xlu0 %2099  ;;  %v1136_v17 = vadd.f32 %v4914_v43, %v1003_v45  ;;  %vm5150_vm8 = vmor %vm1576_vm4, %vm1896_vm2  ;;  %v2177_v37 = vadd.f32 %v3078_v51, %v4998_v57  ;;  %v5999_v51 = vld [vmem:[#allocation22_spill] sm:$0xff] }
 0x1dc   :  { %v2180_v8 = vadd.f32 %v3081_v14, %v2090_v38  ;;  %v1006_v25 = vpop.f32.mrf.mxu1  ;;  %v3085_v53 = vsel %vm5150_vm8, 1.0, %v3689_v42  ;;  %vm5196_vm2 = vmor %vm1575_vm9, %vm1895_vm13  ;;  %v3087_v61 = vsel %vm5177_vm15, 1.0, %v3689_v42  ;;  %vm1904_vm10 = vcmp.ne.s32.totalorder %v4946_v6, 0 }
 0x1dd   :  { %v1137_v33 = vadd.f32 %v4919_v15, %v1005_v32  ;;  %v1007_v36 = vadd.f32 %v1006_v25, %v733_v54  ;;  %2394 = vperm.xlu1 %3518, %v3138_v4   ;;  %1478 = vmatprep.mubr.bf16.mxu0 %v1250_v12  ;;  %v1135_v54 = vadd.f32 %v4919_v15, %v1001_v11  ;;  %v3080_v4 = vsel %vm5132_vm6, 1.0, %v3689_v42  ;;  %vm5210_vm4 = vmor %vm1580_vm0, %vm1900_vm14 }
 0x1de   :  { %v1010_v40 = vpop.f32.mrf.mxu1  ;;  %1479 = vmatmul.mubr.bf16.gmra.mxu0 %v1249_v62  ;;  %2525 = vperm.xlu0 %3517, %v2180_v8   ;;  %v1200_v45 = vmax.f32 %v1136_v17, 0.0  ;;  %v2179_v12 = vadd.f32 %v3080_v4, %v5016_v55  ;;  %vm1582_vm6 = vcmp.le.f32.partialorder %v5999_v51, 2.0  ;;  %v3084_v48 = vsel %vm5196_vm2, 1.0, %v3689_v42  ;;  %v6002_v4 = vld [vmem:[#allocation42_spill] sm:$0xff]  ;;  %v3621_v55 = vld [vmem:[%s5880_s0 + $0x98] sm:$0xff] }
 0x1df   :  { %v1138_v41 = vadd.f32 %v4914_v43, %v1007_v36  ;;  %v2094_v35 = vpop.permute.xlu1 %2093  ;;  %v1201_v20 = vmax.f32 %v1137_v33, 0.0  ;;  %v1199_v11 = vmax.f32 %v1135_v54, 0.0  ;;  %v1011_v52 = vadd.f32 %v1010_v40, %v5100_v10  ;;  %v5181_v57 = vpop.permute.xlu0 %2103  ;;  %v6000_v54 = vld [vmem:[#allocation39_spill] sm:$0xff]  ;;  %v6001_v40 = vld [vmem:[#allocation58_spill] sm:$0xff] }
 0x1e0   :  { %v2182_v1 = vadd.f32 %v3083_v22, %v2094_v35  ;;  %v1012_v39 = vpop.f32.mrf.mxu1  ;;  %v3082_v36 = vsel %vm5187_vm1, 1.0, %v3689_v42  ;;  %vm1897_vm7 = vcmp.ne.s32.totalorder %v6000_v54, 0  ;;  %vm1902_vm8 = vcmp.ne.s32.totalorder %v6001_v40, 0  ;;  %v6016_v54 = vld [vmem:[#allocation48_spill] sm:$0xff] }
 0x1e1   :  { %v1202_v14 = vmax.f32 %v1138_v41, 0.0  ;;  %v1013_v31 = vadd.f32 %v1012_v39, %v739_v0  ;;  %2500 = vperm.xlu1 %3518, %v2175_v56   ;;  %v743_v56 = vpop.f32.mrf.mxu0  ;;  %v1251_v46 = vpack.c.bf16 %v1201_v20, %v1199_v11  ;;  %v1139_v22 = vadd.f32 %v4919_v15, %v1011_v52  ;;  %vm5240_vm11 = vmor %vm1582_vm6, %vm1902_vm8 }
 0x1e2   :  { %v1014_v44 = vpop.f32.mrf.mxu1  ;;  %2535 = vperm.xlu0 %3517, %v2182_v1   ;;  %vm1899_vm9 = vcmp.ne.s32.totalorder %v6002_v4, 0  ;;  %v2181_v1 = vadd.f32 %v3082_v36, %v5046_v26  ;;  %v3619_v26 = vld [vmem:[%s5880_s0 + $0x88] sm:$0xff]  ;;  %vm5251_vm13 = vmor %vm1577_vm3, %vm1897_vm7  ;;  %vm1581_vm15 = vcmp.le.f32.partialorder %v4706_v19, 2.0  ;;  %v3091_v34 = vsel %vm5240_vm11, 1.0, %v3689_v42  ;;  %v3623_v19 = vld [vmem:[%s5880_s0 + $0x90] sm:$0xff] }
 0x1e3   :  { %v1015_v10 = vadd.f32 %v1014_v44, %v741_v13  ;;  %v2098_v32 = vpop.permute.xlu1 %2097  ;;  %v1252_v38 = vpack.c.bf16 %v1202_v14, %v1200_v45  ;;  %v1140_v62 = vadd.f32 %v4914_v43, %v1013_v31  ;;  %v3089_v13 = vsel %vm5210_vm4, 1.0, %v3689_v42  ;;  %v5230_v20 = vpop.permute.xlu0 %2107  ;;  %v6004_v31 = vld [vmem:[#allocation10_spill] sm:$0xff]  ;;  %vm5261_vm14 = vmor %vm1579_vm5, %vm1899_vm9  ;;  %v6015_v36 = vld [vmem:[#allocation45_spill] sm:$0xff] }
 0x1e4   :  { %v2184_v8 = vadd.f32 %v3085_v53, %v2098_v32  ;;  %v1016_v25 = vpop.f32.mrf.mxu1  ;;  %v1203_v14 = vmax.f32 %v1139_v22, 0.0  ;;  %vm1584_vm12 = vcmp.le.f32.partialorder %v3619_v26, 2.0  ;;  %v2183_v32 = vadd.f32 %v3084_v48, %v5094_v23 }
 0x1e5   :  { %v1141_v17 = vadd.f32 %v4919_v15, %v1015_v10  ;;  %v1017_v33 = vadd.f32 %v1016_v25, %v743_v56  ;;  %1486 = vmatprep.mubr.bf16.mxu0 %v1252_v38  ;;  %2510 = vperm.xlu1 %3518, %v2177_v37   ;;  %v1204_v39 = vmax.f32 %v1140_v62, 0.0  ;;  %v6003_v37 = vld [vmem:[#allocation11_spill] sm:$0xff]  ;;  %v6012_v25 = vld [vmem:[#allocation13_spill] sm:$0xff]  ;;  %vm5275_vm0 = vmor %vm1584_vm12, %vm1904_vm10  ;;  %v3086_v62 = vsel %vm5251_vm13, 1.0, %v3689_v42 }
 0x1e6   :  { %v1020_v24 = vpop.f32.mrf.mxu1  ;;  %1487 = vmatmul.mubr.bf16.gmra.mxu0 %v1251_v46  ;;  %2545 = vperm.xlu0 %3517, %v2184_v8   ;;  %vm1586_vm2 = vcmp.le.f32.partialorder %v3621_v55, 2.0  ;;  %vm1901_vm3 = vcmp.ne.s32.totalorder %v6015_v36, 0  ;;  %vm1906_vm4 = vcmp.ne.s32.totalorder %v4959_v63, 0  ;;  %v3088_v22 = vsel %vm5261_vm14, 1.0, %v3689_v42 }
 0x1e7   :  { %v1142_v27 = vadd.f32 %v4914_v43, %v1017_v33  ;;  %v2102_v2 = vpop.permute.xlu1 %2101  ;;  %v1205_v41 = vmax.f32 %v1141_v17, 0.0  ;;  %v1021_v58 = vadd.f32 %v1020_v24, %v6004_v31  ;;  %v5286_v6 = vpop.permute.xlu0 %2111  ;;  %vm1903_vm5 = vcmp.ne.s32.totalorder %v6016_v54, 0  ;;  %vm5308_vm7 = vmor %vm1586_vm2, %vm1906_vm4  ;;  %v6023_v31 = vld [vmem:[#allocation17_spill] sm:$0xff] }
 0x1e8   :  { %v2186_v35 = vadd.f32 %v3087_v61, %v2102_v2  ;;  %v1022_v49 = vpop.f32.mrf.mxu1  ;;  %v3620_v61 = vld [vmem:[%s5880_s0 + $0x80] sm:$0xff]  ;;  %v3093_v2 = vsel %vm5275_vm0, 1.0, %v3689_v42  ;;  %v2185_v4 = vadd.f32 %v3086_v62, %v5139_v50  ;;  %vm1908_vm6 = vcmp.ne.s32.totalorder %v4972_v28, 0  ;;  %v3622_v50 = vld [vmem:[%s5880_s0 + $0xa8] sm:$0xff]  ;;  %vm5319_vm9 = vmor %vm1581_vm15, %vm1901_vm3 }
 0x1e9   :  { %v1206_v53 = vmax.f32 %v1142_v27, 0.0  ;;  %v1023_v45 = vadd.f32 %v1022_v49, %v6003_v37  ;;  %2520 = vperm.xlu1 %3518, %v2179_v12   ;;  %v1253_v56 = vpack.c.bf16 %v1205_v41, %v1203_v14  ;;  %v1143_v17 = vadd.f32 %v4919_v15, %v1021_v58  ;;  %v6017_v49 = vld [vmem:[#allocation15_spill] sm:$0xff]  ;;  %v6031_v54 = vld [vmem:[#allocation21_spill] sm:$0xff]  ;;  %v3627_v14 = vld [vmem:[%s5880_s0 + $0xb0] sm:$0xff] }
 0x1ea   :  { %v1024_v11 = vpop.f32.mrf.mxu1  ;;  %2555 = vperm.xlu0 %3517, %v2186_v35   ;;  %vm1583_vm1 = vcmp.le.f32.partialorder %v3620_v61, 2.0  ;;  %vm1588_vm8 = vcmp.le.f32.partialorder %v3622_v50, 2.0  ;;  %v2187_v52 = vadd.f32 %v3088_v22, %v5181_v57  ;;  %vm1585_vm11 = vcmp.le.f32.partialorder %v3623_v19, 2.0  ;;  %v3625_v28 = vld [vmem:[%s5880_s0 + $0xb8] sm:$0xff] }
 0x1eb   :  { %v1025_v29 = vadd.f32 %v1024_v11, %v6009_v7  ;;  %v2106_v0 = vpop.permute.xlu1 %2105  ;;  %v1254_v10 = vpack.c.bf16 %v1206_v53, %v1204_v39  ;;  %v1144_v60 = vadd.f32 %v4914_v43, %v1023_v45  ;;  %v6018_v39 = vld [vmem:[#allocation14_spill] sm:$0xff]  ;;  %vm5328_vm10 = vmor %vm1583_vm1, %vm1903_vm5  ;;  %vm1590_vm14 = vcmp.le.f32.partialorder %v3625_v28, 2.0 }
 0x1ec   :  { %v2188_v12 = vadd.f32 %v3089_v13, %v2106_v0  ;;  %v1026_v3 = vpop.f32.mrf.mxu1  ;;  %vm5346_vm12 = vmor %vm1588_vm8, %vm1908_vm6  ;;  %vm1910_vm0 = vcmp.ne.s32.totalorder %v4985_v18, 0  ;;  %vm1912_vm2 = vcmp.ne.s32.totalorder %v4996_v16, 0  ;;  %v3629_v16 = vld [vmem:[%s5880_s0 + $0xd8] sm:$0xff] }
 0x1ed   :  { %v1145_v8 = vadd.f32 %v4919_v15, %v1025_v29  ;;  %v1027_v46 = vadd.f32 %v1026_v3, %v6012_v25  ;;  %1494 = vmatprep.mubr.bf16.mxu0 %v1254_v10  ;;  %2530 = vperm.xlu1 %3518, %v2181_v1   ;;  %v1208_v41 = vmax.f32 %v1144_v60, 0.0  ;;  %v1207_v1 = vmax.f32 %v1143_v17, 0.0  ;;  %v5335_v29 = vpop.permute.xlu0 %2115  ;;  %v3624_v25 = vld [vmem:[%s5880_s0 + $0xa0] sm:$0xff]  ;;  %v6030_v17 = vld [vmem:[#allocation55_spill] sm:$0xff]  ;;  %vm5377_vm3 = vmor %vm1590_vm14, %vm1910_vm0 }
 0x1ee   :  { %v1030_v33 = vpop.f32.mrf.mxu1  ;;  %1495 = vmatmul.mubr.bf16.gmra.mxu0 %v1253_v56  ;;  %2565 = vperm.xlu0 %3517, %v2188_v12   ;;  %v3095_v12 = vsel %vm5308_vm7, 1.0, %v3689_v42  ;;  %v3090_v56 = vsel %vm5319_vm9, 1.0, %v3689_v42  ;;  %vm1587_vm13 = vcmp.le.f32.partialorder %v3624_v25, 2.0  ;;  %vm1907_vm1 = vcmp.ne.s32.totalorder %v6030_v17, 0 }
 0x1ef   :  { %v1146_v24 = vadd.f32 %v4914_v43, %v1027_v46  ;;  %v2110_v51 = vpop.permute.xlu1 %2109  ;;  %v1209_v40 = vmax.f32 %v1145_v8, 0.0  ;;  %v1031_v53 = vadd.f32 %v1030_v33, %v6018_v39  ;;  %v6029_v46 = vld [vmem:[#allocation52_spill] sm:$0xff]  ;;  %v3097_v36 = vsel %vm5346_vm12, 1.0, %v3689_v42  ;;  %vm5396_vm6 = vmor %vm1587_vm13, %vm1907_vm1 }
 0x1f0   :  { %v2190_v48 = vadd.f32 %v3091_v34, %v2110_v51  ;;  %v1032_v27 = vpop.f32.mrf.mxu1  ;;  %vm1905_vm15 = vcmp.ne.s32.totalorder %v6029_v46, 0  ;;  %v3092_v34 = vsel %vm5328_vm10, 1.0, %v3689_v42  ;;  %v2189_v22 = vadd.f32 %v3090_v56, %v5230_v20  ;;  %v3626_v20 = vld [vmem:[%s5880_s0 + $0xc8] sm:$0xff] }
 0x1f1   :  { %v1210_v35 = vmax.f32 %v1146_v24, 0.0  ;;  %v1033_v13 = vadd.f32 %v1032_v27, %v6017_v49  ;;  %2540 = vperm.xlu1 %3518, %v2183_v32   ;;  %v1255_v0 = vpack.c.bf16 %v1209_v40, %v1207_v1  ;;  %v6026_v32 = vld [vmem:[#allocation18_spill] sm:$0xff]  ;;  %v1147_v60 = vadd.f32 %v4919_v15, %v1031_v53  ;;  %v6032_v27 = vld [vmem:[#allocation20_spill] sm:$0xff]  ;;  %vm5387_vm5 = vmor %vm1585_vm11, %vm1905_vm15 }
 0x1f2   :  { %v1034_v37 = vpop.f32.mrf.mxu1  ;;  %2575 = vperm.xlu0 %3517, %v2190_v48   ;;  %vm1592_vm4 = vcmp.le.f32.partialorder %v3626_v20, 2.0  ;;  %v2191_v53 = vadd.f32 %v3092_v34, %v5286_v6  ;;  %vm1589_vm7 = vcmp.le.f32.partialorder %v3627_v14, 2.0  ;;  %v6040_v6 = vld [vmem:[#allocation24_spill] sm:$0xff]  ;;  %vm1594_vm10 = vcmp.le.f32.partialorder %v3629_v16, 2.0 }
 0x1f3   :  { %v1035_v63 = vadd.f32 %v1034_v37, %v6023_v31  ;;  %v2114_v58 = vpop.permute.xlu1 %2113  ;;  %v1256_v11 = vpack.c.bf16 %v1210_v35, %v1208_v41  ;;  %v1148_v10 = vadd.f32 %v4914_v43, %v1033_v13  ;;  %v1211_v48 = vmax.f32 %v1147_v60, 0.0  ;;  %v6037_v13 = vld [vmem:[#allocation23_spill] sm:$0xff]  ;;  %vm5412_vm8 = vmor %vm1592_vm4, %vm1912_vm2  ;;  %v6054_v49 = vld [vmem:[#allocation28_spill] sm:$0xff] }
 0x1f4   :  { %v2192_v44 = vadd.f32 %v3093_v2, %v2114_v58  ;;  %v1036_v7 = vpop.f32.mrf.mxu1  ;;  %vm1914_vm12 = vcmp.ne.s32.totalorder %v5009_v47, 0  ;;  %v3101_v25 = vsel %vm5412_vm8, 1.0, %v3689_v42  ;;  %vm1916_vm14 = vcmp.ne.s32.totalorder %v5020_v9, 0 }
 0x1f5   :  { %v1149_v57 = vadd.f32 %v4919_v15, %v1035_v63  ;;  %v1037_v38 = vadd.f32 %v1036_v7, %v6026_v32  ;;  %1502 = vmatprep.mubr.bf16.mxu0 %v1256_v11  ;;  %2550 = vperm.xlu1 %3518, %v2185_v4   ;;  %v1212_v24 = vmax.f32 %v1148_v10, 0.0  ;;  %v2120_v4 = vpop.permute.xlu0 %2119  ;;  %v6043_v10 = vld [vmem:[#allocation57_spill] sm:$0xff]  ;;  %vm5443_vm15 = vmor %vm1594_vm10, %vm1914_vm12  ;;  %vm1915_vm8 = vcmp.ne.s32.totalorder %v4961_v5, 0 }
 0x1f6   :  { %v1040_v8 = vpop.f32.mrf.mxu1  ;;  %1503 = vmatmul.mubr.bf16.gmra.mxu0 %v1255_v0  ;;  %2585 = vperm.xlu0 %3517, %v2192_v44   ;;  %v3094_v44 = vsel %vm5387_vm5, 1.0, %v3689_v42  ;;  %v3628_v0 = vld [vmem:[%s5880_s0 + $0xc0] sm:$0xff]  ;;  %vm1909_vm11 = vcmp.ne.s32.totalorder %v6043_v10, 0  ;;  %vm1913_vm5 = vcmp.ne.s32.totalorder %v4948_v21, 0  ;;  %v6060_v10 = vld [vmem:[#allocation29_spill] sm:$0xff] }
 0x1f7   :  { %v1150_v23 = vadd.f32 %v4914_v43, %v1037_v38  ;;  %v2118_v62 = vpop.permute.xlu1 %2117  ;;  %v1213_v33 = vmax.f32 %v1149_v57, 0.0  ;;  %v1041_v2 = vadd.f32 %v1040_v8, %v6032_v27  ;;  %vm1591_vm9 = vcmp.le.f32.partialorder %v3628_v0, 2.0  ;;  %vm5453_vm1 = vmor %vm1589_vm7, %vm1909_vm11 }
 0x1f8   :  { %v2194_v61 = vadd.f32 %v3095_v12, %v2118_v62  ;;  %v1042_v55 = vpop.f32.mrf.mxu1  ;;  %v3096_v57 = vsel %vm5396_vm6, 1.0, %v3689_v42  ;;  %v6044_v12 = vld [vmem:[#allocation59_spill] sm:$0xff]  ;;  %v2193_v28 = vadd.f32 %v3094_v44, %v5335_v29  ;;  %v3630_v29 = vld [vmem:[%s5880_s0 + $0xe8] sm:$0xff]  ;;  %vm1918_vm6 = vcmp.ne.s32.totalorder %v5038_v30, 0 }
 0x1f9   :  { %v1214_v51 = vmax.f32 %v1150_v23, 0.0  ;;  %v1043_v40 = vadd.f32 %v1042_v55, %v6031_v54  ;;  %2560 = vperm.xlu1 %3518, %v2187_v52   ;;  %v1257_v31 = vpack.c.bf16 %v1213_v33, %v1211_v48  ;;  %v3099_v52 = vsel %vm5377_vm3, 1.0, %v3689_v42  ;;  %v2124_v56 = vpop.permute.xlu0 %2123  ;;  %v6045_v23 = vld [vmem:[#allocation26_spill] sm:$0xff]  ;;  %v6046_v33 = vld [vmem:[#allocation25_spill] sm:$0xff] }
 0x1fa   :  { %v1044_v41 = vpop.f32.mrf.mxu1  ;;  %2595 = vperm.xlu0 %3517, %v2194_v61   ;;  %v1151_v7 = vadd.f32 %v4919_v15, %v1041_v2  ;;  %vm1911_vm13 = vcmp.ne.s32.totalorder %v6044_v12, 0  ;;  %vm1596_vm0 = vcmp.le.f32.partialorder %v3630_v29, 2.0  ;;  %v6063_v12 = vld [vmem:[#allocation32_spill] sm:$0xff]  ;;  %v3634_v29 = vld [vmem:[%s5880_s0 + $0xf0] sm:$0xff] }
 0x1fb   :  { %v1045_v1 = vadd.f32 %v1044_v41, %v6037_v13  ;;  %v2122_v18 = vpop.permute.xlu1 %2121  ;;  %v1258_v39 = vpack.c.bf16 %v1214_v51, %v1212_v24  ;;  %v1152_v63 = vadd.f32 %v4914_v43, %v1043_v40  ;;  %v6051_v24 = vld [vmem:[#allocation27_spill] sm:$0xff]  ;;  %v2195_v40 = vadd.f32 %v3096_v57, %v2120_v4  ;;  %vm5461_vm2 = vmor %vm1591_vm9, %vm1911_vm13 }
 0x1fc   :  { %v2196_v45 = vadd.f32 %v3097_v36, %v2122_v18  ;;  %v1046_v50 = vpop.f32.mrf.mxu1  ;;  %v1215_v17 = vmax.f32 %v1151_v7, 0.0  ;;  %v3103_v4 = vsel %vm5443_vm15, 1.0, %v3689_v42  ;;  %vm5474_vm3 = vmor %vm1596_vm0, %vm1916_vm14  ;;  %v3631_v18 = vld [vmem:[%s5880_s0 + $0xf8] sm:$0xff]  ;;  %vm1597_vm13 = vcmp.le.f32.partialorder %v3634_v29, 2.0 }
 0x1fd   :  { %v1153_v58 = vadd.f32 %v4919_v15, %v1045_v1  ;;  %v1047_v11 = vadd.f32 %v1046_v50, %v6040_v6  ;;  %1510 = vmatprep.mubr.bf16.mxu0 %v1258_v39  ;;  %2570 = vperm.xlu1 %3518, %v2189_v22   ;;  %v1216_v46 = vmax.f32 %v1152_v63, 0.0  ;;  %vm1598_vm4 = vcmp.le.f32.partialorder %v3631_v18, 2.0  ;;  %v2128_v37 = vpop.permute.xlu0 %2127  ;;  %v3632_v50 = vld [vmem:[%s5880_s0 + $0xd0] sm:$0xff]  ;;  %v6057_v7 = vld [vmem:[#allocation31_spill] sm:$0xff] }
 0x1fe   :  { %v1050_v19 = vpop.f32.mrf.mxu1  ;;  %1511 = vmatmul.mubr.bf16.gmra.mxu0 %v1257_v31  ;;  %2605 = vperm.xlu0 %3517, %v2196_v45   ;;  %v3098_v39 = vsel %vm5453_vm1, 1.0, %v3689_v42  ;;  %vm1593_vm7 = vcmp.le.f32.partialorder %v3632_v50, 2.0  ;;  %v3100_v31 = vsel %vm5461_vm2, 1.0, %v3689_v42  ;;  %vm5502_vm9 = vmor %vm1598_vm4, %vm1918_vm6  ;;  %vm1917_vm14 = vcmp.ne.s32.totalorder %v4974_v59, 0  ;;  %v6069_v18 = vld [vmem:[#allocation38_spill] sm:$0xff] }
 0x1ff   :  { %v1154_v32 = vadd.f32 %v4914_v43, %v1047_v11  ;;  %v2126_v38 = vpop.permute.xlu1 %2125  ;;  %v1217_v3 = vmax.f32 %v1153_v58, 0.0  ;;  %v1051_v61 = vadd.f32 %v1050_v19, %v6046_v33  ;;  %v3105_v11 = vsel %vm5474_vm3, 1.0, %v3689_v42  ;;  %vm5513_vm11 = vmor %vm1593_vm7, %vm1913_vm5 }
 0x200   :  { %v2198_v60 = vadd.f32 %v3099_v52, %v2126_v38  ;;  %v1052_v8 = vpop.f32.mrf.mxu1  ;;  %v2197_v52 = vadd.f32 %v3098_v39, %v2124_v56  ;;  %vm1949_vm15 = vmor %vm1597_vm13, %vm1917_vm14 }
 0x201   :  { %v1218_v34 = vmax.f32 %v1154_v32, 0.0  ;;  %v1053_v62 = vadd.f32 %v1052_v8, %v6045_v23  ;;  %2580 = vperm.xlu1 %3518, %v2191_v53   ;;  %v1259_v41 = vpack.c.bf16 %v1217_v3, %v1215_v17  ;;  %v1155_v53 = vadd.f32 %v4919_v15, %v1051_v61  ;;  %v3633_v32 = vld [vmem:[%s5880_s0 + $0xe0] sm:$0xff]  ;;  %v6066_v17 = vld [vmem:[#allocation34_spill] sm:$0xff] }
 0x202   :  { %v1054_v55 = vpop.f32.mrf.mxu1  ;;  %2615 = vperm.xlu0 %3517, %v2198_v60   ;;  %vm1595_vm10 = vcmp.le.f32.partialorder %v3633_v32, 2.0  ;;  %v2199_v8 = vadd.f32 %v3100_v31, %v2128_v37  ;;  %v3107_v61 = vsel %vm5502_vm9, 1.0, %v3689_v42  ;;  %v6070_v31 = vld [vmem:[#allocation40_spill] sm:$0xff]  ;;  %v6072_v32 = vld [vmem:[#allocation41_spill] sm:$0xff] }
 0x203   :  { %v1055_v51 = vadd.f32 %v1054_v55, %v6051_v24  ;;  %v2130_v47 = vpop.permute.xlu1 %2129  ;;  %v1260_v54 = vpack.c.bf16 %v1218_v34, %v1216_v46  ;;  %v1156_v35 = vadd.f32 %v4914_v43, %v1053_v62  ;;  %v1219_v16 = vmax.f32 %v1155_v53, 0.0  ;;  %vm5521_vm12 = vmor %vm1595_vm10, %vm1915_vm8 }
 0x204   :  { %v2200_v27 = vadd.f32 %v3101_v25, %v2130_v47  ;;  %v1056_v2 = vpop.f32.mrf.mxu1  ;;  %v2132_v25 = vpop.permute.xlu0 %2131  ;;  %v3102_v55 = vsel %vm5513_vm11, 1.0, %v3689_v42 }
 0x205   :  { %v1157_v20 = vadd.f32 %v4919_v15, %v1055_v51  ;;  %v1057_v13 = vadd.f32 %v1056_v2, %v6054_v49  ;;  %1518 = vmatprep.mubr.bf16.mxu0 %v1260_v54  ;;  %2590 = vperm.xlu1 %3518, %v2193_v28   ;;  %v1220_v26 = vmax.f32 %v1156_v35, 0.0  ;;  %v3104_v51 = vsel %vm5521_vm12, 1.0, %v3689_v42 }
 0x206   :  { %v1060_v45 = vpop.f32.mrf.mxu1  ;;  %1519 = vmatmul.mubr.bf16.gmra.mxu0 %v1259_v41  ;;  %2625 = vperm.xlu0 %3517, %v2200_v27   ;;  %v2201_v48 = vadd.f32 %v3102_v55, %v2132_v25  ;;  %v6067_v41 = vld [vmem:[#allocation37_spill] sm:$0xff] }
 0x207   :  { %v1158_v9 = vadd.f32 %v4914_v43, %v1057_v13  ;;  %v2134_v14 = vpop.permute.xlu1 %2133  ;;  %v1221_v63 = vmax.f32 %v1157_v20, 0.0  ;;  %v1061_v57 = vadd.f32 %v1060_v45, %v6060_v10  ;;  %v6068_v13 = vld [vmem:[#allocation35_spill] sm:$0xff] }
 0x208   :  { %v2202_v58 = vadd.f32 %v3103_v4, %v2134_v14  ;;  %v1062_v6 = vpop.f32.mrf.mxu1  ;;  %v2136_v49 = vpop.permute.xlu0 %2135 }
 0x209   :  { %v1222_v44 = vmax.f32 %v1158_v9, 0.0  ;;  %v1063_v19 = vadd.f32 %v1062_v6, %v6057_v7  ;;  %2600 = vperm.xlu1 %3518, %v2195_v40   ;;  %v1261_v34 = vpack.c.bf16 %v1221_v63, %v1219_v16  ;;  %v1159_v5 = vadd.f32 %v4919_v15, %v1061_v57  ;;  %v6071_v16 = vld [vmem:[#allocation43_spill] sm:$0xff] }
 0x20a   :  { %v1064_v38 = vpop.f32.mrf.mxu1  ;;  %2635 = vperm.xlu0 %3517, %v2202_v58   ;;  %v2203_v37 = vadd.f32 %v3104_v51, %v2136_v49  ;;  %v3106_v58 = vsel %vm1949_vm15, 1.0, %v3689_v42  ;;  %v6073_v42 = vld [vmem:[#allocation44_spill] sm:$0xff]  ;;  %v6078_v49 = vld [vmem:[#allocation53_spill] sm:$0xff] }
 0x20b   :  { %v1065_v3 = vadd.f32 %v1064_v38, %v6063_v12  ;;  %v2138_v56 = vpop.permute.xlu1 %2137  ;;  %v1262_v60 = vpack.c.bf16 %v1222_v44, %v1220_v26  ;;  %v1160_v23 = vadd.f32 %v4914_v43, %v1063_v19  ;;  %v1223_v20 = vmax.f32 %v1159_v5, 0.0 }
 0x20c   :  { %v2204_v28 = vadd.f32 %v3105_v11, %v2138_v56  ;;  %v1066_v46 = vpop.f32.mrf.mxu1 }
 0x20d   :  { %v1161_v62 = vadd.f32 %v4919_v15, %v1065_v3  ;;  %v1067_v33 = vadd.f32 %v1066_v46, %v6066_v17  ;;  %1526 = vmatprep.mubr.bf16.mxu0 %v1262_v60  ;;  %2610 = vperm.xlu1 %3518, %v2197_v52   ;;  %v1224_v27 = vmax.f32 %v1160_v23, 0.0  ;;  %v2140_v52 = vpop.permute.xlu0 %2139 }
 0x20e   :  { %v1070_v36 = vpop.f32.mrf.mxu1  ;;  %1527 = vmatmul.mubr.bf16.gmra.mxu0 %v1261_v34  ;;  %2645 = vperm.xlu0 %3517, %v2204_v28   ;;  %v2205_v7 = vadd.f32 %v3106_v58, %v2140_v52  ;;  %v6074_v28 = vld [vmem:[#allocation46_spill] sm:$0xff] }
 0x20f   :  { %v1162_v22 = vadd.f32 %v4914_v43, %v1067_v33  ;;  %v2142_v24 = vpop.permute.xlu1 %2141  ;;  %v1225_v47 = vmax.f32 %v1161_v62, 0.0  ;;  %v1071_v4 = vadd.f32 %v1070_v36, %v6068_v13  ;;  %v6075_v36 = vld [vmem:[#allocation49_spill] sm:$0xff] }
 0x210   :  { %v2206_v54 = vadd.f32 %v3107_v61, %v2142_v24  ;;  %v1072_v40 = vpop.f32.mrf.mxu1  ;;  %v6076_v24 = vld [vmem:[#allocation47_spill] sm:$0xff] }
 0x211   :  { %v1226_v2 = vmax.f32 %v1162_v22, 0.0  ;;  %v1073_v35 = vadd.f32 %v1072_v40, %v6067_v41  ;;  %2620 = vperm.xlu1 %3518, %v2199_v8   ;;  %v1263_v9 = vpack.c.bf16 %v1225_v47, %v1223_v20  ;;  %v1163_v59 = vadd.f32 %v4919_v15, %v1071_v4  ;;  %v5564_v17 = vpop.permute.xlu0 %2244 }
 0x212   :  { %v1074_v1 = vpop.f32.mrf.mxu1  ;;  %2655 = vperm.xlu0 %3517, %v2206_v54   ;;  %v6077_v54 = vld [vmem:[#allocation50_spill] sm:$0xff] }
 0x213   :  { %v1075_v39 = vadd.f32 %v1074_v1, %v6069_v18  ;;  %v1264_v53 = vpack.c.bf16 %v1226_v2, %v1224_v27  ;;  %v1164_v50 = vadd.f32 %v4914_v43, %v1073_v35  ;;  %v1227_v57 = vmax.f32 %v1163_v59, 0.0 }
 0x214   :  { %v1076_v45 = vpop.f32.mrf.mxu1 }
 0x215   :  { %v1165_v14 = vadd.f32 %v4919_v15, %v1075_v39  ;;  %v1077_v63 = vadd.f32 %v1076_v45, %v6070_v31  ;;  %1534 = vmatprep.mubr.bf16.mxu0 %v1264_v53  ;;  %2630 = vperm.xlu1 %3518, %v2201_v48   ;;  %v1228_v19 = vmax.f32 %v1164_v50, 0.0  ;;  %v5574_v4 = vpop.permute.xlu0 %2259 }
 0x216   :  { %v1080_v6 = vpop.f32.mrf.mxu1  ;;  %1535 = vmatmul.mubr.bf16.gmra.mxu0 %v1263_v9 }
 0x217   :  { %v1166_v11 = vadd.f32 %v4914_v43, %v1077_v63  ;;  %v1229_v26 = vmax.f32 %v1165_v14, 0.0  ;;  %v1081_v38 = vadd.f32 %v1080_v6, %v6072_v32 }
 0x218   :  { %v1082_v44 = vpop.f32.mrf.mxu1 }
 0x219   :  { %v1230_v0 = vmax.f32 %v1166_v11, 0.0  ;;  %v1083_v10 = vadd.f32 %v1082_v44, %v6071_v16  ;;  %2640 = vperm.xlu1 %3518, %v2203_v37   ;;  %v1265_v60 = vpack.c.bf16 %v1229_v26, %v1227_v57  ;;  %v1167_v34 = vadd.f32 %v4919_v15, %v1081_v38  ;;  %v5580_v14 = vpop.permute.xlu0 %2269 }
 0x21a   :  { %v1084_v30 = vpop.f32.mrf.mxu1 }
 0x21b   :  { %v1085_v12 = vadd.f32 %v1084_v30, %v6073_v42  ;;  %v1266_v3 = vpack.c.bf16 %v1230_v0, %v1228_v19  ;;  %v1168_v8 = vadd.f32 %v4914_v43, %v1083_v10  ;;  %v1231_v22 = vmax.f32 %v1167_v34, 0.0  ;;  %v5638_v34 = vld [vmem:[%s5885_s5] ss:$0 sm:$0xff]  ;;  %s3690_s5 = smov [#allocation5]  }
 0x21c   :  { %v1086_v56 = vpop.f32.mrf.mxu1  ;;  %v5561_v23 = vpop.permute.xlu1 %2249  ;;  %s2887_s21 = sshll.u32 %s3690_s5, 4  ;;  %s2888_s21 = int_to_ptr.vmem [resolvable:$true] %s2887_s21 }
 0x21d   :  { %v1169_v25 = vadd.f32 %v4919_v15, %v1085_v12  ;;  %v1087_v46 = vadd.f32 %v1086_v56, %v6074_v28  ;;  %1542 = vmatprep.mubr.bf16.mxu0 %v1266_v3  ;;  %2650 = vperm.xlu1 %3518, %v2205_v7   ;;  %v1232_v55 = vmax.f32 %v1168_v8, 0.0  ;;  %v5584_v58 = vpop.permute.xlu0 %2279  ;;  %v6079_v8 = vld [vmem:[#allocation8_spill] sm:$0xff]  ;;  %s3655_s22 = scalar_lea.vmem %s2888_s21, 2048  ;;  %p3660_p6 = scmp.lt.s32.totalorder %s2888_s21, %s2888_s21 }
 0x21e   :  { %v1090_v21 = vpop.f32.mrf.mxu1  ;;  %1543 = vmatmul.mubr.bf16.gmra.mxu0 %v1265_v60  ;;  %vm2207_vm0 = vcmp.lt.s32.totalorder %v6079_v8, 8  ;;  %vm2208_vm5 = vcmp.eq.s32.totalorder %v6079_v8, 8  ;;  %p3656_p5 = scmp.ne.s32.totalorder %s2888_s21, %s3655_s22  ;;  %p3661_p7 = scmp.lt.s32.totalorder %s3655_s22, %s3655_s22 }
 0x21f   :  { %v1170_v62 = vadd.f32 %v4914_v43, %v1087_v46  ;;  %v1233_v33 = vmax.f32 %v1169_v25, 0.0  ;;  %v1091_v51 = vadd.f32 %v1090_v21, %v6076_v24  ;;  %v5631_v25 = vcvt.s32.f32 %v6079_v8 }
 0x220   :  { %v1092_v61 = vpop.f32.mrf.mxu1  ;;  %v5569_v27 = vpop.permute.xlu1 %2254  ;;  %p3662_p8 = por %p3661_p7, %p3660_p6 }
 0x221   :  { %v1234_v5 = vmax.f32 %v1170_v62, 0.0  ;;  %v1093_v29 = vadd.f32 %v1092_v61, %v6075_v36  ;;  %v1267_v41 = vpack.c.bf16 %v1233_v33, %v1231_v22  ;;  %v1171_v1 = vadd.f32 %v4919_v15, %v1091_v51  ;;  %v5588_v59 = vpop.permute.xlu0 %2289 }
 0x222   :  { %v1094_v47 = vpop.f32.mrf.mxu1  ;;  %vm2402_vm1 = vcmp.gt.f32.partialorder %v5631_v25, %v5564_v17  ;;  %vm2403_vm3 = vcmp.gt.f32.partialorder %v5631_v25, %v5561_v23  ;;  %vm2404_vm6 = vcmp.gt.f32.partialorder %v5631_v25, %v5569_v27  ;;  %vm2405_vm7 = vcmp.gt.f32.partialorder %v5631_v25, %v5574_v4  ;;  %p3663_p9 = pnand %p3662_p8, %p3656_p5 }
 0x223   :  { %v1095_v40 = vadd.f32 %v1094_v47, %v6077_v54  ;;  %v1268_v48 = vpack.c.bf16 %v1234_v5, %v1232_v55  ;;  %v1172_v35 = vadd.f32 %v4914_v43, %v1093_v29  ;;  %v1235_v45 = vmax.f32 %v1171_v1, 0.0  ;;  %vm5648_vm2 = vmand %vm2207_vm0, %vm2402_vm1 }
 0x224   :  { %v1096_v2 = vpop.f32.mrf.mxu1  ;;  %v5578_v9 = vpop.permute.xlu1 %2264  ;;  %vm2435_vm4 = vmand %vm2207_vm0, %vm2403_vm3  ;;  %vm2407_vm11 = vcmp.gt.f32.partialorder %v5631_v25, %v5580_v14  ;;  %vm2409_vm15 = vcmp.gt.f32.partialorder %v5631_v25, %v5584_v58 }
 0x225   :  { %v1173_v20 = vadd.f32 %v4919_v15, %v1095_v40  ;;  %v1097_v13 = vadd.f32 %v1096_v2, %v6078_v49  ;;  %1550 = vmatprep.mubr.bf16.mxu0 %v1268_v48  ;;  %v1236_v53 = vmax.f32 %v1172_v35, 0.0  ;;  %v5592_v6 = vpop.permute.xlu0 %2299  ;;  %vm2436_vm8 = vmand %vm2207_vm0, %vm2404_vm6  ;;  %vm2406_vm10 = vcmp.gt.f32.partialorder %v5631_v25, %v5578_v9 }
 0x226   :  { %1551 = vmatmul.mubr.bf16.gmra.mxu0 %v1267_v41  ;;  %vm2437_vm9 = vmand %vm2207_vm0, %vm2405_vm7 }
 0x227   :  { %v1174_v18 = vadd.f32 %v4914_v43, %v1097_v13  ;;  %v1237_v39 = vmax.f32 %v1173_v20, 0.0  ;;  %vm2438_vm12 = vmand %vm2207_vm0, %vm2406_vm10 }
 0x228   :  { %v5582_v63 = vpop.permute.xlu1 %2274  ;;  %vm2439_vm13 = vmand %vm2207_vm0, %vm2407_vm11 }
 0x229   :  { %v1238_v37 = vmax.f32 %v1174_v18, 0.0  ;;  %v1269_v31 = vpack.c.bf16 %v1237_v39, %v1235_v45  ;;  %v5596_v52 = vpop.permute.xlu0 %2309  ;;  %vm2408_vm14 = vcmp.gt.f32.partialorder %v5631_v25, %v5582_v63 }
 0x22a   :  { %vm2440_vm1 = vmand %vm2207_vm0, %vm2408_vm14 }
 0x22b   :  { %v1270_v50 = vpack.c.bf16 %v1238_v37, %v1236_v53 }
 0x22c   :  { %v5586_v15 = vpop.permute.xlu1 %2284 }
 0x22d   :  { %1558 = vmatprep.mubr.bf16.mxu0 %v1270_v50  ;;  %v5600_v44 = vpop.permute.xlu0 %2319  ;;  %vm2410_vm3 = vcmp.gt.f32.partialorder %v5631_v25, %v5586_v15 }
 0x22e   :  { %1559 = vmatmul.mubr.bf16.gmra.mxu0 %v1269_v31  ;;  %vm2442_vm6 = vmand %vm2207_vm0, %vm2410_vm3 }
 0x230   :  { %v5590_v43 = vpop.permute.xlu1 %2294 }
 0x231   :  { %v5604_v19 = vpop.permute.xlu0 %2329 }
 0x234   :  { %v5594_v11 = vpop.permute.xlu1 %2304 }
 0x235   :  { %v5608_v16 = vpop.permute.xlu0 %2339 }
 0x238   :  { %v5598_v26 = vpop.permute.xlu1 %2314 }
 0x239   :  { %v5612_v57 = vpop.permute.xlu0 %2349 }
 0x23c   :  { %v5602_v7 = vpop.permute.xlu1 %2324 }
 0x23d   :  { %v5616_v38 = vpop.permute.xlu0 %2359 }
 0x240   :  { %v5606_v0 = vpop.permute.xlu1 %2334 }
 0x241   :  { %v5620_v42 = vpop.permute.xlu0 %2369 }
 0x244   :  { %v5610_v10 = vpop.permute.xlu1 %2344 }
 0x245   :  { %v5624_v3 = vpop.permute.xlu0 %2379 }
 0x248   :  { %v5614_v32 = vpop.permute.xlu1 %2354 }
 0x249   :  { %v5628_v60 = vpop.permute.xlu0 %2389 }
 0x24c   :  { %v5618_v30 = vpop.permute.xlu1 %2364 }
 0x24d   :  { %v5643_v33 = vpop.permute.xlu0 %2399 }
 0x250   :  { %v5622_v12 = vpop.permute.xlu1 %2374 }
 0x251   :  { %v2506_v47 = vpop.permute.xlu0 %2505 }
 0x254   :  { %v5626_v56 = vpop.permute.xlu1 %2384 }
 0x255   :  { %v2516_v50 = vpop.permute.xlu0 %2515 }
 0x258   :  { %v5633_v46 = vpop.permute.xlu1 %2394 }
 0x25c   :  { %v2501_v22 = vpop.permute.xlu1 %2500 }
 0x260   :  { %v2511_v39 = vpop.permute.xlu1 %2510 }
 0x276   :  { %v3315_v28 = vpop.f32.mrf.mxu0 }
 0x278   :  { %v3316_v21 = vpop.f32.mrf.mxu0 }
 0x279   :  { %v3317_v62 = vadd.f32 %v3316_v21, %v3315_v28 }
 0x27a   :  { %v3318_v61 = vpop.f32.mrf.mxu0 }
 0x27b   :  { %v1441_v55 = vadd.f32 %v3317_v62, %v5638_v34 }
 0x27c   :  { %v3319_v5 = vpop.f32.mrf.mxu0 }
 0x27d   :  { %v3320_v29 = vadd.f32 %v3319_v5, %v3318_v61  ;;  %v2658_v51 = vsub.f32 %v1441_v55, %v2501_v22  ;;  %v2466_v54 = vsel %vm5648_vm2, -1e+09, %v1441_v55  ;;  %vm2441_vm2 = vmand %vm2207_vm0, %vm2409_vm15 }
 0x27e   :  { %v3321_v24 = vpop.f32.mrf.mxu0 }
 0x27f   :  { %v1444_v17 = vadd.f32 %v3320_v29, %v5638_v34  ;;  %v2690_v35 = vsel %vm2208_vm5, %v2658_v51, %v2466_v54  ;;  %v2526_v54 = vpop.permute.xlu0 %2525 }
 0x280   :  { %v3322_v40 = vpop.f32.mrf.mxu0 }
 0x281   :  { %v2467_v48 = vsel %vm2435_vm4, -1e+09, %v1444_v17  ;;  %v2659_v2 = vsub.f32 %v1444_v17, %v2506_v47  ;;  %v3323_v41 = vadd.f32 %v3322_v40, %v3321_v24  ;;  %v2521_v24 = vpop.permute.xlu1 %2520  ;;  %vm2411_vm4 = vcmp.gt.f32.partialorder %v5631_v25, %v5588_v59 }
 0x282   :  { %v3324_v23 = vpop.f32.mrf.mxu0  ;;  %vm2443_vm7 = vmand %vm2207_vm0, %vm2411_vm4 }
 0x283   :  { %v2691_v20 = vsel %vm2208_vm5, %v2659_v2, %v2467_v48  ;;  %v1449_v49 = vadd.f32 %v3323_v41, %v5638_v34 }
 0x284   :  { %v3207_v13 = vpack.c.bf16 %v2691_v20, %v2690_v35  ;;  %v3325_v1 = vpop.f32.mrf.mxu0 }
 0x285   :  { %v3326_v18 = vadd.f32 %v3325_v1, %v3324_v23  ;;  %v2660_v37 = vsub.f32 %v1449_v49, %v2511_v39  ;;  %v2468_v27 = vsel %vm2436_vm8, -1e+09, %v1449_v49  ;;  %vm2412_vm8 = vcmp.gt.f32.partialorder %v5631_v25, %v5590_v43 }
 0x286   :  { %3208 = vst [vmem:[#allocation5] sm:$0xff] %v3207_v13   ;;  %v3327_v53 = vpop.f32.mrf.mxu0  ;;  %vm2444_vm10 = vmand %vm2207_vm0, %vm2412_vm8 }
 0x287   :  { %v1452_v45 = vadd.f32 %v3326_v18, %v5638_v34  ;;  %v2692_v61 = vsel %vm2208_vm5, %v2660_v37, %v2468_v27  ;;  %v2531_v18 = vpop.permute.xlu1 %2530 }
 0x288   :  { %v3328_v31 = vpop.f32.mrf.mxu0 }
 0x289   :  { %v2469_v28 = vsel %vm2437_vm9, -1e+09, %v1452_v45  ;;  %v2661_v21 = vsub.f32 %v1452_v45, %v2516_v50  ;;  %v3329_v62 = vadd.f32 %v3328_v31, %v3327_v53  ;;  %v2536_v45 = vpop.permute.xlu0 %2535  ;;  %vm2413_vm9 = vcmp.gt.f32.partialorder %v5631_v25, %v5592_v6 }
 0x28a   :  { %v3330_v4 = vpop.f32.mrf.mxu0  ;;  %vm2445_vm11 = vmand %vm2207_vm0, %vm2413_vm9 }
 0x28b   :  { %v2693_v55 = vsel %vm2208_vm5, %v2661_v21, %v2469_v28  ;;  %v1457_v5 = vadd.f32 %v3329_v62, %v5638_v34 }
 0x28c   :  { %v3212_v36 = vpack.c.bf16 %v2693_v55, %v2692_v61  ;;  %v3331_v29 = vpop.f32.mrf.mxu0 }
 0x28d   :  { %v3332_v22 = vadd.f32 %v3331_v29, %v3330_v4  ;;  %v2662_v17 = vsub.f32 %v1457_v5, %v2521_v24  ;;  %v2470_v9 = vsel %vm2438_vm12, -1e+09, %v1457_v5  ;;  %vm2414_vm12 = vcmp.gt.f32.partialorder %v5631_v25, %v5594_v11 }
 0x28e   :  { %3284 = vst [vmem:[#allocation5 + $0x8] sm:$0xff] %v3212_v36   ;;  %v3333_v51 = vpop.f32.mrf.mxu0  ;;  %v2541_v36 = vpop.permute.xlu1 %2540  ;;  %vm2446_vm14 = vmand %vm2207_vm0, %vm2414_vm12 }
 0x28f   :  { %v1460_v47 = vadd.f32 %v3332_v22, %v5638_v34  ;;  %v2694_v23 = vsel %vm2208_vm5, %v2662_v17, %v2470_v9 }
 0x290   :  { %v3334_v40 = vpop.f32.mrf.mxu0 }
 0x291   :  { %v2471_v48 = vsel %vm2439_vm13, -1e+09, %v1460_v47  ;;  %v2663_v2 = vsub.f32 %v1460_v47, %v2526_v54  ;;  %v3335_v41 = vadd.f32 %v3334_v40, %v3333_v51  ;;  %v2546_v51 = vpop.permute.xlu0 %2545  ;;  %vm2415_vm13 = vcmp.gt.f32.partialorder %v5631_v25, %v5596_v52 }
 0x292   :  { %v3336_v14 = vpop.f32.mrf.mxu0  ;;  %vm2447_vm15 = vmand %vm2207_vm0, %vm2415_vm13 }
 0x293   :  { %v2695_v35 = vsel %vm2208_vm5, %v2663_v2, %v2471_v48  ;;  %v1465_v20 = vadd.f32 %v3335_v41, %v5638_v34 }
 0x294   :  { %v3217_v49 = vpack.c.bf16 %v2695_v35, %v2694_v23  ;;  %v3337_v13 = vpop.f32.mrf.mxu0  ;;  %v2551_v35 = vpop.permute.xlu1 %2550 }
 0x295   :  { %v3338_v1 = vadd.f32 %v3337_v13, %v3336_v14  ;;  %v2664_v53 = vsub.f32 %v1465_v20, %v2531_v18  ;;  %v2472_v63 = vsel %vm2440_vm1, -1e+09, %v1465_v20  ;;  %vm2416_vm1 = vcmp.gt.f32.partialorder %v5631_v25, %v5598_v26 }
 0x296   :  { %3285 = vst [vmem:[#allocation5 + $0x10] sm:$0xff] %v3217_v49   ;;  %v3339_v39 = vpop.f32.mrf.mxu0  ;;  %vm2448_vm3 = vmand %vm2207_vm0, %vm2416_vm1 }
 0x297   :  { %v1468_v37 = vadd.f32 %v3338_v1, %v5638_v34  ;;  %v2696_v21 = vsel %vm2208_vm5, %v2664_v53, %v2472_v63  ;;  %v2556_v1 = vpop.permute.xlu0 %2555 }
 0x298   :  { %v3340_v50 = vpop.f32.mrf.mxu0 }
 0x299   :  { %v2473_v27 = vsel %vm2441_vm2, -1e+09, %v1468_v37  ;;  %v2665_v31 = vsub.f32 %v1468_v37, %v2536_v45  ;;  %v3341_v28 = vadd.f32 %v3340_v50, %v3339_v39  ;;  %vm2417_vm2 = vcmp.gt.f32.partialorder %v5631_v25, %v5600_v44 }
 0x29a   :  { %v3342_v58 = vpop.f32.mrf.mxu0  ;;  %vm2449_vm4 = vmand %vm2207_vm0, %vm2417_vm2 }
 0x29b   :  { %v2697_v62 = vsel %vm2208_vm5, %v2665_v31, %v2473_v27  ;;  %v1473_v4 = vadd.f32 %v3341_v28, %v5638_v34 }
 0x29c   :  { %v3222_v61 = vpack.c.bf16 %v2697_v62, %v2696_v21  ;;  %v3343_v55 = vpop.f32.mrf.mxu0 }
 0x29d   :  { %v3344_v5 = vadd.f32 %v3343_v55, %v3342_v58  ;;  %v2666_v22 = vsub.f32 %v1473_v4, %v2541_v36  ;;  %v2474_v15 = vsel %vm2442_vm6, -1e+09, %v1473_v4  ;;  %v2561_v58 = vpop.permute.xlu1 %2560  ;;  %vm2418_vm6 = vcmp.gt.f32.partialorder %v5631_v25, %v5602_v7 }
 0x29e   :  { %3286 = vst [vmem:[#allocation5 + $0x18] sm:$0xff] %v3222_v61   ;;  %v3345_v29 = vpop.f32.mrf.mxu0  ;;  %v2566_v61 = vpop.permute.xlu0 %2565  ;;  %vm2450_vm8 = vmand %vm2207_vm0, %vm2418_vm6 }
 0x29f   :  { %v1476_v24 = vadd.f32 %v3344_v5, %v5638_v34  ;;  %v2698_v40 = vsel %vm2208_vm5, %v2666_v22, %v2474_v15 }
 0x2a0   :  { %v3346_v17 = vpop.f32.mrf.mxu0 }
 0x2a1   :  { %v2475_v47 = vsel %vm2443_vm7, -1e+09, %v1476_v24  ;;  %v2667_v54 = vsub.f32 %v1476_v24, %v2546_v51  ;;  %v3347_v9 = vadd.f32 %v3346_v17, %v3345_v29  ;;  %vm2419_vm7 = vcmp.gt.f32.partialorder %v5631_v25, %v5604_v19 }
 0x2a2   :  { %v3348_v59 = vpop.f32.mrf.mxu0  ;;  %vm2451_vm9 = vmand %vm2207_vm0, %vm2419_vm7 }
 0x2a3   :  { %v2699_v48 = vsel %vm2208_vm5, %v2667_v54, %v2475_v47  ;;  %v1481_v2 = vadd.f32 %v3347_v9, %v5638_v34  ;;  %v2571_v54 = vpop.permute.xlu1 %2570 }
 0x2a4   :  { %v3227_v41 = vpack.c.bf16 %v2699_v48, %v2698_v40  ;;  %v3349_v14 = vpop.f32.mrf.mxu0  ;;  %v2576_v48 = vpop.permute.xlu0 %2575 }
 0x2a5   :  { %v3350_v23 = vadd.f32 %v3349_v14, %v3348_v59  ;;  %v2668_v49 = vsub.f32 %v1481_v2, %v2551_v35  ;;  %v2476_v43 = vsel %vm2444_vm10, -1e+09, %v1481_v2  ;;  %vm2420_vm10 = vcmp.gt.f32.partialorder %v5631_v25, %v5606_v0 }
 0x2a6   :  { %3287 = vst [vmem:[#allocation5 + $0x20] sm:$0xff] %v3227_v41   ;;  %v3351_v20 = vpop.f32.mrf.mxu0  ;;  %vm2452_vm12 = vmand %vm2207_vm0, %vm2420_vm10 }
 0x2a7   :  { %v1484_v13 = vadd.f32 %v3350_v23, %v5638_v34  ;;  %v2700_v45 = vsel %vm2208_vm5, %v2668_v49, %v2476_v43 }
 0x2a8   :  { %v3352_v18 = vpop.f32.mrf.mxu0 }
 0x2a9   :  { %v2477_v39 = vsel %vm2445_vm11, -1e+09, %v1484_v13  ;;  %v2669_v53 = vsub.f32 %v1484_v13, %v2556_v1  ;;  %v3353_v37 = vadd.f32 %v3352_v18, %v3351_v20  ;;  %v2581_v18 = vpop.permute.xlu1 %2580  ;;  %vm2421_vm11 = vcmp.gt.f32.partialorder %v5631_v25, %v5608_v16 }
 0x2aa   :  { %v3354_v6 = vpop.f32.mrf.mxu0  ;;  %vm2453_vm13 = vmand %vm2207_vm0, %vm2421_vm11 }
 0x2ab   :  { %v2701_v63 = vsel %vm2208_vm5, %v2669_v53, %v2477_v39  ;;  %v1489_v50 = vadd.f32 %v3353_v37, %v5638_v34 }
 0x2ac   :  { %v3232_v27 = vpack.c.bf16 %v2701_v63, %v2700_v45  ;;  %v3355_v31 = vpop.f32.mrf.mxu0 }
 0x2ad   :  { %v3356_v28 = vadd.f32 %v3355_v31, %v3354_v6  ;;  %v2670_v62 = vsub.f32 %v1489_v50, %v2561_v58  ;;  %v2478_v11 = vsel %vm2446_vm14, -1e+09, %v1489_v50  ;;  %v2586_v6 = vpop.permute.xlu0 %2585  ;;  %vm2422_vm14 = vcmp.gt.f32.partialorder %v5631_v25, %v5610_v10 }
 0x2ae   :  { %3288 = vst [vmem:[#allocation5 + $0x28] sm:$0xff] %v3232_v27   ;;  %v3357_v21 = vpop.f32.mrf.mxu0  ;;  %vm2454_vm1 = vmand %vm2207_vm0, %vm2422_vm14 }
 0x2af   :  { %v1492_v4 = vadd.f32 %v3356_v28, %v5638_v34  ;;  %v2702_v22 = vsel %vm2208_vm5, %v2670_v62, %v2478_v11 }
 0x2b0   :  { %v3358_v55 = vpop.f32.mrf.mxu0 }
 0x2b1   :  { %v2479_v5 = vsel %vm2447_vm15, -1e+09, %v1492_v4  ;;  %v2671_v36 = vsub.f32 %v1492_v4, %v2566_v61  ;;  %v3359_v29 = vadd.f32 %v3358_v55, %v3357_v21  ;;  %v2591_v61 = vpop.permute.xlu1 %2590  ;;  %vm2423_vm15 = vcmp.gt.f32.partialorder %v5631_v25, %v5612_v57 }
 0x2b2   :  { %v3360_v52 = vpop.f32.mrf.mxu0  ;;  %vm2455_vm2 = vmand %vm2207_vm0, %vm2423_vm15 }
 0x2b3   :  { %v2703_v24 = vsel %vm2208_vm5, %v2671_v36, %v2479_v5  ;;  %v1497_v51 = vadd.f32 %v3359_v29, %v5638_v34  ;;  %v2596_v36 = vpop.permute.xlu0 %2595 }
 0x2b4   :  { %v3237_v15 = vpack.c.bf16 %v2703_v24, %v2702_v22  ;;  %v3361_v17 = vpop.f32.mrf.mxu0 }
 0x2b5   :  { %v3362_v47 = vadd.f32 %v3361_v17, %v3360_v52  ;;  %v2672_v59 = vsub.f32 %v1497_v51, %v2571_v54  ;;  %v2480_v26 = vsel %vm2448_vm3, -1e+09, %v1497_v51  ;;  %vm2424_vm3 = vcmp.gt.f32.partialorder %v5631_v25, %v5614_v32 }
 0x2b6   :  { %3289 = vst [vmem:[#allocation5 + $0x30] sm:$0xff] %v3237_v15   ;;  %v3363_v9 = vpop.f32.mrf.mxu0  ;;  %vm2456_vm6 = vmand %vm2207_vm0, %vm2424_vm3 }
 0x2b7   :  { %v1500_v40 = vadd.f32 %v3362_v47, %v5638_v34  ;;  %v2704_v35 = vsel %vm2208_vm5, %v2672_v59, %v2480_v26  ;;  %v2601_v59 = vpop.permute.xlu1 %2600 }
 0x2b8   :  { %v3364_v2 = vpop.f32.mrf.mxu0 }
 0x2b9   :  { %v2481_v41 = vsel %vm2449_vm4, -1e+09, %v1500_v40  ;;  %v2673_v14 = vsub.f32 %v1500_v40, %v2576_v48  ;;  %v3365_v23 = vadd.f32 %v3364_v2, %v3363_v9  ;;  %v2606_v2 = vpop.permute.xlu0 %2605  ;;  %vm2425_vm4 = vcmp.gt.f32.partialorder %v5631_v25, %v5616_v38 }
 0x2ba   :  { %v3366_v44 = vpop.f32.mrf.mxu0  ;;  %vm2457_vm7 = vmand %vm2207_vm0, %vm2425_vm4 }
 0x2bb   :  { %v2705_v20 = vsel %vm2208_vm5, %v2673_v14, %v2481_v41  ;;  %v1505_v49 = vadd.f32 %v3365_v23, %v5638_v34 }
 0x2bc   :  { %v3242_v13 = vpack.c.bf16 %v2705_v20, %v2704_v35  ;;  %v3367_v1 = vpop.f32.mrf.mxu0 }
 0x2bd   :  { %v3368_v43 = vadd.f32 %v3367_v1, %v3366_v44  ;;  %v2674_v53 = vsub.f32 %v1505_v49, %v2581_v18  ;;  %v2482_v7 = vsel %vm2450_vm8, -1e+09, %v1505_v49  ;;  %v2611_v18 = vpop.permute.xlu1 %2610  ;;  %vm2426_vm8 = vcmp.gt.f32.partialorder %v5631_v25, %v5618_v30 }
 0x2be   :  { %3290 = vst [vmem:[#allocation5 + $0x38] sm:$0xff] %v3242_v13   ;;  %v3369_v39 = vpop.f32.mrf.mxu0  ;;  %vm2458_vm10 = vmand %vm2207_vm0, %vm2426_vm8 }
 0x2bf   :  { %v1508_v37 = vadd.f32 %v3368_v43, %v5638_v34  ;;  %v2706_v31 = vsel %vm2208_vm5, %v2674_v53, %v2482_v7 }
 0x2c0   :  { %v3370_v45 = vpop.f32.mrf.mxu0 }
 0x2c1   :  { %v2483_v63 = vsel %vm2451_vm9, -1e+09, %v1508_v37  ;;  %v2675_v50 = vsub.f32 %v1508_v37, %v2586_v6  ;;  %v3371_v27 = vadd.f32 %v3370_v45, %v3369_v39  ;;  %v2616_v6 = vpop.permute.xlu0 %2615  ;;  %vm2427_vm9 = vcmp.gt.f32.partialorder %v5631_v25, %v5620_v42 }
 0x2c2   :  { %v3372_v19 = vpop.f32.mrf.mxu0  ;;  %vm2459_vm11 = vmand %vm2207_vm0, %vm2427_vm9 }
 0x2c3   :  { %v2707_v28 = vsel %vm2208_vm5, %v2675_v50, %v2483_v63  ;;  %v1513_v58 = vadd.f32 %v3371_v27, %v5638_v34 }
 0x2c4   :  { %v3247_v21 = vpack.c.bf16 %v2707_v28, %v2706_v31  ;;  %v3373_v62 = vpop.f32.mrf.mxu0 }
 0x2c5   :  { %v3374_v4 = vadd.f32 %v3373_v62, %v3372_v19  ;;  %v2676_v55 = vsub.f32 %v1513_v58, %v2591_v61  ;;  %v2484_v0 = vsel %vm2452_vm12, -1e+09, %v1513_v58  ;;  %v2621_v62 = vpop.permute.xlu1 %2620  ;;  %vm2428_vm12 = vcmp.gt.f32.partialorder %v5631_v25, %v5622_v12 }
 0x2c6   :  { %3291 = vst [vmem:[#allocation5 + $0x40] sm:$0xff] %v3247_v21   ;;  %v3375_v11 = vpop.f32.mrf.mxu0  ;;  %vm2460_vm14 = vmand %vm2207_vm0, %vm2428_vm12 }
 0x2c7   :  { %v1516_v5 = vadd.f32 %v3374_v4, %v5638_v34  ;;  %v2708_v51 = vsel %vm2208_vm5, %v2676_v55, %v2484_v0  ;;  %v2626_v55 = vpop.permute.xlu0 %2625 }
 0x2c8   :  { %v3376_v29 = vpop.f32.mrf.mxu0 }
 0x2c9   :  { %v2485_v52 = vsel %vm2453_vm13, -1e+09, %v1516_v5  ;;  %v2677_v22 = vsub.f32 %v1516_v5, %v2596_v36  ;;  %v3377_v24 = vadd.f32 %v3376_v29, %v3375_v11  ;;  %vm2429_vm13 = vcmp.gt.f32.partialorder %v5631_v25, %v5624_v3 }
 0x2ca   :  { %v3378_v16 = vpop.f32.mrf.mxu0  ;;  %vm2461_vm15 = vmand %vm2207_vm0, %vm2429_vm13 }
 0x2cb   :  { %v2709_v15 = vsel %vm2208_vm5, %v2677_v22, %v2485_v52  ;;  %v1521_v17 = vadd.f32 %v3377_v24, %v5638_v34 }
 0x2cc   :  { %v3252_v47 = vpack.c.bf16 %v2709_v15, %v2708_v51  ;;  %v3379_v54 = vpop.f32.mrf.mxu0 }
 0x2cd   :  { %v3380_v9 = vadd.f32 %v3379_v54, %v3378_v16  ;;  %v2678_v48 = vsub.f32 %v1521_v17, %v2601_v59  ;;  %v2486_v10 = vsel %vm2454_vm1, -1e+09, %v1521_v17  ;;  %v2631_v17 = vpop.permute.xlu1 %2630  ;;  %v2636_v59 = vpop.permute.xlu0 %2635  ;;  %vm2430_vm1 = vcmp.gt.f32.partialorder %v5631_v25, %v5626_v56 }
 0x2ce   :  { %3292 = vst [vmem:[#allocation5 + $0x48] sm:$0xff] %v3252_v47   ;;  %v3381_v40 = vpop.f32.mrf.mxu0  ;;  %vm2462_vm3 = vmand %vm2207_vm0, %vm2430_vm1 }
 0x2cf   :  { %v1524_v26 = vadd.f32 %v3380_v9, %v5638_v34  ;;  %v2710_v35 = vsel %vm2208_vm5, %v2678_v48, %v2486_v10 }
 0x2d0   :  { %v3382_v41 = vpop.f32.mrf.mxu0 }
 0x2d1   :  { %v2487_v14 = vsel %vm2455_vm2, -1e+09, %v1524_v26  ;;  %v2679_v23 = vsub.f32 %v1524_v26, %v2606_v2  ;;  %v3383_v44 = vadd.f32 %v3382_v41, %v3381_v40  ;;  %vm2431_vm2 = vcmp.gt.f32.partialorder %v5631_v25, %v5628_v60 }
 0x2d2   :  { %v3384_v57 = vpop.f32.mrf.mxu0  ;;  %vm2463_vm4 = vmand %vm2207_vm0, %vm2431_vm2 }
 0x2d3   :  { %v2711_v20 = vsel %vm2208_vm5, %v2679_v23, %v2487_v14  ;;  %v1529_v49 = vadd.f32 %v3383_v44, %v5638_v34 }
 0x2d4   :  { %v3257_v13 = vpack.c.bf16 %v2711_v20, %v2710_v35  ;;  %v3385_v1 = vpop.f32.mrf.mxu0  ;;  %v2641_v35 = vpop.permute.xlu1 %2640 }
 0x2d5   :  { %v3386_v43 = vadd.f32 %v3385_v1, %v3384_v57  ;;  %v2680_v53 = vsub.f32 %v1529_v49, %v2611_v18  ;;  %v2488_v32 = vsel %vm2456_vm6, -1e+09, %v1529_v49  ;;  %v2646_v1 = vpop.permute.xlu0 %2645  ;;  %vm2432_vm6 = vcmp.gt.f32.partialorder %v5631_v25, %v5633_v46 }
 0x2d6   :  { %3293 = vst [vmem:[#allocation5 + $0x50] sm:$0xff] %v3257_v13   ;;  %v3387_v39 = vpop.f32.mrf.mxu0  ;;  %vm2464_vm8 = vmand %vm2207_vm0, %vm2432_vm6 }
 0x2d7   :  { %v1532_v37 = vadd.f32 %v3386_v43, %v5638_v34  ;;  %v2712_v27 = vsel %vm2208_vm5, %v2680_v53, %v2488_v32 }
 0x2d8   :  { %v3388_v7 = vpop.f32.mrf.mxu0 }
 0x2d9   :  { %v2489_v45 = vsel %vm2457_vm7, -1e+09, %v1532_v37  ;;  %v2681_v63 = vsub.f32 %v1532_v37, %v2616_v6  ;;  %v3389_v50 = vadd.f32 %v3388_v7, %v3387_v39  ;;  %vm2433_vm7 = vcmp.gt.f32.partialorder %v5631_v25, %v5643_v33 }
 0x2da   :  { %v3390_v38 = vpop.f32.mrf.mxu0  ;;  %vm2465_vm9 = vmand %vm2207_vm0, %vm2433_vm7 }
 0x2db   :  { %v2713_v19 = vsel %vm2208_vm5, %v2681_v63, %v2489_v45  ;;  %v1537_v31 = vadd.f32 %v3389_v50, %v5638_v34  ;;  %v2651_v50 = vpop.permute.xlu1 %2650 }
 0x2dc   :  { %v3262_v28 = vpack.c.bf16 %v2713_v19, %v2712_v27  ;;  %v3391_v58 = vpop.f32.mrf.mxu0  ;;  %v2656_v19 = vpop.permute.xlu0 %2655 }
 0x2dd   :  { %v3392_v21 = vadd.f32 %v3391_v58, %v3390_v38  ;;  %v2682_v61 = vsub.f32 %v1537_v31, %v2621_v62  ;;  %v2490_v30 = vsel %vm2458_vm10, -1e+09, %v1537_v31 }
 0x2de   :  { %3294 = vst [vmem:[#allocation5 + $0x58] sm:$0xff] %v3262_v28   ;;  %v3393_v4 = vpop.f32.mrf.mxu0 }
 0x2df   :  { %v1540_v11 = vadd.f32 %v3392_v21, %v5638_v34  ;;  %v2714_v52 = vsel %vm2208_vm5, %v2682_v61, %v2490_v30 }
 0x2e0   :  { %v3394_v5 = vpop.f32.mrf.mxu0 }
 0x2e1   :  { %v2491_v36 = vsel %vm2459_vm11, -1e+09, %v1540_v11  ;;  %v2683_v0 = vsub.f32 %v1540_v11, %v2626_v55  ;;  %v3395_v29 = vadd.f32 %v3394_v5, %v3393_v4 }
 0x2e2   :  { %v3396_v42 = vpop.f32.mrf.mxu0 }
 0x2e3   :  { %v2715_v22 = vsel %vm2208_vm5, %v2683_v0, %v2491_v36  ;;  %v1545_v24 = vadd.f32 %v3395_v29, %v5638_v34 }
 0x2e4   :  { %v3267_v16 = vpack.c.bf16 %v2715_v22, %v2714_v52  ;;  %v3397_v51 = vpop.f32.mrf.mxu0 }
 0x2e5   :  { %v3398_v15 = vadd.f32 %v3397_v51, %v3396_v42  ;;  %v2684_v54 = vsub.f32 %v1545_v24, %v2631_v17  ;;  %v2492_v12 = vsel %vm2460_vm14, -1e+09, %v1545_v24 }
 0x2e6   :  { %3295 = vst [vmem:[#allocation5 + $0x60] sm:$0xff] %v3267_v16   ;;  %v3399_v47 = vpop.f32.mrf.mxu0 }
 0x2e7   :  { %v1548_v9 = vadd.f32 %v3398_v15, %v5638_v34  ;;  %v2716_v10 = vsel %vm2208_vm5, %v2684_v54, %v2492_v12 }
 0x2e8   :  { %v3400_v40 = vpop.f32.mrf.mxu0 }
 0x2e9   :  { %v2493_v48 = vsel %vm2461_vm15, -1e+09, %v1548_v9  ;;  %v2685_v26 = vsub.f32 %v1548_v9, %v2636_v59  ;;  %v3401_v2 = vadd.f32 %v3400_v40, %v3399_v47 }
 0x2ea   :  { %v3402_v3 = vpop.f32.mrf.mxu0 }
 0x2eb   :  { %v2717_v41 = vsel %vm2208_vm5, %v2685_v26, %v2493_v48  ;;  %v1553_v14 = vadd.f32 %v3401_v2, %v5638_v34 }
 0x2ec   :  { %v3272_v23 = vpack.c.bf16 %v2717_v41, %v2716_v10  ;;  %v3403_v44 = vpop.f32.mrf.mxu0 }
 0x2ed   :  { %v3404_v57 = vadd.f32 %v3403_v44, %v3402_v3  ;;  %v2686_v49 = vsub.f32 %v1553_v14, %v2641_v35  ;;  %v2494_v56 = vsel %vm2462_vm3, -1e+09, %v1553_v14 }
 0x2ee   :  { %3296 = vst [vmem:[#allocation5 + $0x68] sm:$0xff] %v3272_v23   ;;  %v3405_v20 = vpop.f32.mrf.mxu0 }
 0x2ef   :  { %v1556_v13 = vadd.f32 %v3404_v57, %v5638_v34  ;;  %v2718_v37 = vsel %vm2208_vm5, %v2686_v49, %v2494_v56 }
 0x2f0   :  { %v3406_v43 = vpop.f32.mrf.mxu0 }
 0x2f1   :  { %v2495_v18 = vsel %vm2463_vm4, -1e+09, %v1556_v13  ;;  %v2687_v39 = vsub.f32 %v1556_v13, %v2646_v1  ;;  %v3407_v53 = vadd.f32 %v3406_v43, %v3405_v20 }
 0x2f2   :  { %v3408_v60 = vpop.f32.mrf.mxu0 }
 0x2f3   :  { %v2719_v6 = vsel %vm2208_vm5, %v2687_v39, %v2495_v18  ;;  %v1561_v32 = vadd.f32 %v3407_v53, %v5638_v34 }
 0x2f4   :  { %v3277_v7 = vpack.c.bf16 %v2719_v6, %v2718_v37  ;;  %v3409_v45 = vpop.f32.mrf.mxu0 }
 0x2f5   :  { %v3410_v63 = vadd.f32 %v3409_v45, %v3408_v60  ;;  %v2688_v38 = vsub.f32 %v1561_v32, %v2651_v50  ;;  %v2496_v31 = vsel %vm2464_vm8, -1e+09, %v1561_v32 }
 0x2f6   :  { %3297 = vst [vmem:[#allocation5 + $0x70] sm:$0xff] %v3277_v7  }
 0x2f7   :  { %v1564_v27 = vadd.f32 %v3410_v63, %v5638_v34  ;;  %v2720_v25 = vsel %vm2208_vm5, %v2688_v38, %v2496_v31 }
 0x2f9   :  { %v2497_v46 = vsel %vm2465_vm9, -1e+09, %v1564_v27  ;;  %v2689_v28 = vsub.f32 %v1564_v27, %v2656_v19 }
 0x2fb   :  { %v2721_v33 = vsel %vm2208_vm5, %v2689_v28, %v2497_v46 }
 0x2fc   :  { %v3282_v58 = vpack.c.bf16 %v2721_v33, %v2720_v25 }
 0x2fe   :  { %3298 = vst [vmem:[#allocation5 + $0x78] sm:$0xff] %v3282_v58  }
 0x2ff   :  { %3666 = shalt.err (!%p3663_p9)
}
 0x300   :  { %2893 = dma.vmem_to_hbm [thread:$0]  %s2888_s21, 2048, %s5886_s6, [#allocation4], %s3680_s24, %s3680_s24, %s3681_s25  }
 0x301   :  { %3677 = dma.done.wait [#allocation4], 2048  }
 0x302   :  { %3678 = vsyncadd [#allocation4], 4294965248 }
 0x303   :  { %2897 = vsyncpa [#allocation3], 1 }
 0x304   :  { %2898 = vsyncpa [#allocation4], 1 }

</bundles_post_ra>
